<compile_context>
chip_gen: v7x
topology: tpu7x:2x2x1
jax: 0.10.0
libtpu: 0.0.40
codegen_flags: <defaults>
</compile_context>

<pallas_src>
import jax
import jax.numpy as jnp
from jax.experimental import pallas as pl
from jax.experimental.pallas import tpu as pltpu

# ---- static model config (consistent with the module) ----
BATCH = 2
SEQ = 8
INPUT_DIM = 6        # len(['RSI','MACD','ATR','Stoch','PCR','Close'])
HIDDEN_DIM = 32
NUM_LAYERS = 2       # kernel wavefront is specialized to 2 layers
OUTPUT_DIM = 1

HP = 128             # each gate / hidden block padded to one full lane tile
BP = 8               # batch padded to one full sublane tile


def gru_kernel(x_ref, wih1_ref, bi1_ref, w1_ref, whh2_ref, bi2_ref,
               bhn1_ref, bhn2_ref, fcw_ref, fcb_ref, out_ref):
    """2-layer wavefronted GRU + final Linear on the last timestep.

    x_ref:    (T*BP, HP)   t-major rows (t*BP + b); batch/features zero-padded
    wih1_ref: (HP, 3*HP)   layer-1 W_ih.T, gate blocks lane-aligned
    bi1_ref:  (1, 3*HP)    b_ih1 + [b_hr1, b_hz1, 0]
    w1_ref:   (HP, 6*HP)   [ W_hh1.T | W_ih2.T ]  (fused h1 consumers)
    whh2_ref: (HP, 3*HP)   layer-2 W_hh.T
    bi2_ref:  (1, 3*HP)    b_ih2 + [b_hr2, b_hz2, 0]
    bhn1_ref: (1, HP)      b_hn1 (stays inside r*(...))
    bhn2_ref: (1, HP)      b_hn2
    fcw_ref:  (HP, O)      fc.weight.T (rows >= H zero)
    fcb_ref:  (1, 1)       fc.bias (SMEM scalar)
    out_ref:  (BP, O)
    """
    TB, hp = x_ref.shape
    bp = out_ref.shape[0]
    T = TB // bp
    H3 = 3 * hp

    # ---- hoisted layer-1 input projection for the whole sequence ----
    gx_all = (jnp.dot(x_ref[...], wih1_ref[...],
                      preferred_element_type=jnp.float32)
              + bi1_ref[...])                                  # (T*BP, 3*HP)

    # Hoisted broadcasts (never inside the recurrent loop).
    bi2 = jnp.broadcast_to(bi2_ref[...], (bp, H3))
    bhn1 = jnp.broadcast_to(bhn1_ref[...], (bp, hp))
    bhn2 = jnp.broadcast_to(bhn2_ref[...], (bp, hp))

    w1 = w1_ref[...]            # (HP, 6*HP)
    whh2 = whh2_ref[...]        # (HP, 3*HP)

    def sigmoid(v):
        # EUP tanh; avoids the multi-op f32 divide of 1/(1+exp(-v)).
        return 0.5 * jnp.tanh(0.5 * v) + 0.5

    h1 = jnp.zeros((bp, hp), jnp.float32)
    h2 = jnp.zeros((bp, hp), jnp.float32)

    # ---- wavefront: wave step s = layer-1 timestep s + layer-2 timestep s-1.
    # Both recurrent dots read the previous wave's hidden states, so they are
    # independent and issued back-to-back to the MXU.
    for s in range(T + 1):
        g12 = jnp.dot(h1, w1, preferred_element_type=jnp.float32)     # (BP, 6HP)
        gh2 = jnp.dot(h2, whh2, preferred_element_type=jnp.float32)   # (BP, 3HP)

        new_h1 = h1
        if s < T:
            gx = gx_all[s * bp:(s + 1) * bp, :]      # sublane-tile-aligned slice
            gh1 = g12[:, 0:H3]
            r1 = sigmoid(gx[:, 0:hp] + gh1[:, 0:hp])
            z1 = sigmoid(gx[:, hp:2 * hp] + gh1[:, hp:2 * hp])
            n1 = jnp.tanh(gx[:, 2 * hp:H3] + r1 * (gh1[:, 2 * hp:H3] + bhn1))
            new_h1 = (1.0 - z1) * n1 + z1 * h1

        if s >= 1:
            gi2 = g12[:, H3:2 * H3] + bi2
            r2 = sigmoid(gi2[:, 0:hp] + gh2[:, 0:hp])
            z2 = sigmoid(gi2[:, hp:2 * hp] + gh2[:, hp:2 * hp])
            n2 = jnp.tanh(gi2[:, 2 * hp:H3] + r2 * (gh2[:, 2 * hp:H3] + bhn2))
            h2 = (1.0 - z2) * n2 + z2 * h2

        h1 = new_h1

    # Final Linear on the last timestep's top-layer hidden state.
    out_ref[...] = (jnp.dot(h2, fcw_ref[...],
                            preferred_element_type=jnp.float32)
                    + fcb_ref[0, 0])


# ---------------- parameter packing (done ONCE, outside the forward) --------

def _pad_gate_weight_t(w, hp):
    """w: (3H, Din) PyTorch layout -> (hp, 3*hp) transposed, gates lane-aligned."""
    H = w.shape[0] // 3
    din = w.shape[1]
    out = jnp.zeros((hp, 3 * hp), jnp.float32)
    for g in range(3):
        out = out.at[:din, g * hp:g * hp + H].set(w[g * H:(g + 1) * H, :].T)
    return out


def _pad_gate_bias(b, hp, gates=(0, 1, 2)):
    """b: (3H,) -> (1, 3*hp), selected gate blocks lane-aligned, rest zero."""
    H = b.shape[0] // 3
    out = jnp.zeros((1, 3 * hp), jnp.float32)
    for g in gates:
        out = out.at[0, g * hp:g * hp + H].set(b[g * H:(g + 1) * H])
    return out


def pack_params(params):
    """Pad / transpose / bias-fold all parameters once (input-independent)."""
    assert NUM_LAYERS == 2  # wavefront kernel is specialized to 2 layers
    w_ih_list, w_hh_list, b_ih_list, b_hh_list, fc_w, fc_b = params
    H = HIDDEN_DIM

    wih1_t = _pad_gate_weight_t(w_ih_list[0], HP)          # (HP, 3HP)
    whh1_t = _pad_gate_weight_t(w_hh_list[0], HP)          # (HP, 3HP)
    wih2_t = _pad_gate_weight_t(w_ih_list[1], HP)          # (HP, 3HP)
    whh2_t = _pad_gate_weight_t(w_hh_list[1], HP)          # (HP, 3HP)

    # Fused consumers of h1: layer-1 recurrent + layer-2 input projections.
    w1 = jnp.concatenate([whh1_t, wih2_t], axis=1)         # (HP, 6HP)

    # Fold b_hr / b_hz into the input-side bias (exact for r/z gates);
    # b_hn must stay with the recurrent term inside r*(...).
    bi1 = (_pad_gate_bias(b_ih_list[0], HP)
           + _pad_gate_bias(b_hh_list[0], HP, gates=(0, 1)))
    bhn1 = jnp.zeros((1, HP), jnp.float32).at[0, :H].set(b_hh_list[0][2 * H:])
    bi2 = (_pad_gate_bias(b_ih_list[1], HP)
           + _pad_gate_bias(b_hh_list[1], HP, gates=(0, 1)))
    bhn2 = jnp.zeros((1, HP), jnp.float32).at[0, :H].set(b_hh_list[1][2 * H:])

    fcw_t = jnp.zeros((HP, OUTPUT_DIM), jnp.float32).at[:H, :].set(fc_w.T)
    fcb = fc_b.reshape(1, 1)
    return (wih1_t, bi1, w1, whh2_t, bi2, bhn1, bhn2, fcw_t, fcb)


@jax.jit
def gru_model_forward(x, packed):
    """x: (B, T, INPUT_DIM) float32 -> (B, OUTPUT_DIM) float32."""
    wih1_t, bi1, w1, whh2_t, bi2, bhn1, bhn2, fcw_t, fcb = packed
    B, T, Din = x.shape

    # t-major layout, batch padded to a full sublane tile (8), features
    # zero-padded to HP lanes. Row index = t*BP + b. Zero padding is exact.
    x_tb = jnp.transpose(x, (1, 0, 2))                           # (T, B, Din)
    x_flat = jnp.zeros((T, BP, HP), jnp.float32).at[:, :B, :Din].set(x_tb)
    x_flat = x_flat.reshape(T * BP, HP)

    vmem = pl.BlockSpec(memory_space=pltpu.MemorySpace.VMEM)
    smem = pl.BlockSpec(memory_space=pltpu.MemorySpace.SMEM)
    out_pad = pl.pallas_call(
        gru_kernel,
        out_shape=jax.ShapeDtypeStruct((BP, OUTPUT_DIM), jnp.float32),
        in_specs=[vmem] * 9 + [smem],
        out_specs=vmem,
    )(x_flat, wih1_t, bi1, w1, whh2_t, bi2, bhn1, bhn2, fcw_t, fcb)
    return out_pad[:B, :]


# ---------------- init + pure-JAX reference ---------------------------------

def init_params(key):
    """PyTorch-style init: GRU & Linear params ~ U(-1/sqrt(H), 1/sqrt(H))."""
    H, Din, L, O = HIDDEN_DIM, INPUT_DIM, NUM_LAYERS, OUTPUT_DIM
    bound = 1.0 / jnp.sqrt(jnp.float32(H))
    keys = jax.random.split(key, 4 * L + 2)

    w_ih_list, w_hh_list, b_ih_list, b_hh_list = [], [], [], []
    k = 0
    for l in range(L):
        in_dim = Din if l == 0 else H
        w_ih_list.append(jax.random.uniform(keys[k], (3 * H, in_dim), jnp.float32,
                                            -bound, bound)); k += 1
        w_hh_list.append(jax.random.uniform(keys[k], (3 * H, H), jnp.float32,
                                            -bound, bound)); k += 1
        b_ih_list.append(jax.random.uniform(keys[k], (3 * H,), jnp.float32,
                                            -bound, bound)); k += 1
        b_hh_list.append(jax.random.uniform(keys[k], (3 * H,), jnp.float32,
                                            -bound, bound)); k += 1
    fc_w = jax.random.uniform(keys[k], (O, H), jnp.float32, -bound, bound); k += 1
    fc_b = jax.random.uniform(keys[k], (O,), jnp.float32, -bound, bound)
    return (w_ih_list, w_hh_list, b_ih_list, b_hh_list, fc_w, fc_b)


def gru_model_reference(x, params):
    """Pure-JAX reference of the PyTorch GRUModel forward pass."""
    w_ih_list, w_hh_list, b_ih_list, b_hh_list, fc_w, fc_b = params
    B, T, _ = x.shape
    H = HIDDEN_DIM
    layer_in = x
    for l in range(NUM_LAYERS):
        w_ih, w_hh = w_ih_list[l], w_hh_list[l]
        b_ih, b_hh = b_ih_list[l], b_hh_list[l]
        h = jnp.zeros((B, H), jnp.float32)
        outs = []
        for t in range(T):
            gi = layer_in[:, t, :] @ w_ih.T + b_ih
            gh = h @ w_hh.T + b_hh
            r = jax.nn.sigmoid(gi[:, :H] + gh[:, :H])
            z = jax.nn.sigmoid(gi[:, H:2 * H] + gh[:, H:2 * H])
            n = jnp.tanh(gi[:, 2 * H:] + r * gh[:, 2 * H:])
            h = (1.0 - z) * n + z * h
            outs.append(h)
        layer_in = jnp.stack(outs, axis=1)
    return layer_in[:, -1, :] @ fc_w.T + fc_b


if __name__ == "__main__":
    key = jax.random.PRNGKey(0)
    kx, kp = jax.random.split(key)
    x = jax.random.normal(kx, (BATCH, SEQ, INPUT_DIM), jnp.float32)
    params = init_params(kp)
    packed = pack_params(params)      # one-time parameter repacking

    out = gru_model_forward(x, packed)
    out = jax.block_until_ready(out)

    ref = gru_model_reference(x, params)
    assert out.shape == (BATCH, OUTPUT_DIM)
    assert jnp.allclose(out, ref, atol=1e-4, rtol=1e-4), (out, ref)

    print("KERNEL_OK")
</pallas_src>

<mosaic_0001>
module attributes {stable_mosaic.version = 11 : i64} {
  func.func @gru_kernel(%arg0: memref<64x128xf32, #tpu.memory_space<vmem>>, %arg1: memref<128x384xf32, #tpu.memory_space<vmem>>, %arg2: memref<1x384xf32, #tpu.memory_space<vmem>>, %arg3: memref<128x768xf32, #tpu.memory_space<vmem>>, %arg4: memref<128x384xf32, #tpu.memory_space<vmem>>, %arg5: memref<1x384xf32, #tpu.memory_space<vmem>>, %arg6: memref<1x128xf32, #tpu.memory_space<vmem>>, %arg7: memref<1x128xf32, #tpu.memory_space<vmem>>, %arg8: memref<128x1xf32, #tpu.memory_space<vmem>>, %arg9: memref<1x1xf32, #tpu.memory_space<smem>>, %arg10: memref<8x1xf32, #tpu.memory_space<vmem>>) attributes {dimension_semantics = [], scalar_prefetch = 0 : i64, scratch_operands = 0 : i64, tpu.core_type = #tpu.core_type<tc>} {
    %c0 = arith.constant 0 : index
    %c0_0 = arith.constant 0 : index
    %0 = vector.load %arg0[%c0, %c0_0] : memref<64x128xf32, #tpu.memory_space<vmem>>, vector<64x128xf32>
    %c0_1 = arith.constant 0 : index
    %c0_2 = arith.constant 0 : index
    %1 = vector.load %arg1[%c0_1, %c0_2] : memref<128x384xf32, #tpu.memory_space<vmem>>, vector<128x384xf32>
    %cst = arith.constant dense<0.000000e+00> : vector<64x384xf32>
    %2 = tpu.matmul %0, %1, %cst {dimension_numbers = #tpu.dot_dimension_numbers<[1], [0], [0], [1], [0, 0, 1, 1], [], []>} : vector<64x128xf32>, vector<128x384xf32>, vector<64x384xf32> -> vector<64x384xf32>
    %c0_3 = arith.constant 0 : index
    %c0_4 = arith.constant 0 : index
    %3 = vector.load %arg2[%c0_3, %c0_4] : memref<1x384xf32, #tpu.memory_space<vmem>>, vector<1x384xf32>
    %4 = vector.broadcast %3 : vector<1x384xf32> to vector<64x384xf32>
    %5 = arith.addf %2, %4 : vector<64x384xf32>
    %c0_5 = arith.constant 0 : index
    %c0_6 = arith.constant 0 : index
    %6 = vector.load %arg5[%c0_5, %c0_6] : memref<1x384xf32, #tpu.memory_space<vmem>>, vector<1x384xf32>
    %7 = vector.shape_cast %6 : vector<1x384xf32> to vector<1x384xf32>
    %8 = vector.broadcast %7 : vector<1x384xf32> to vector<8x384xf32>
    %c0_7 = arith.constant 0 : index
    %c0_8 = arith.constant 0 : index
    %9 = vector.load %arg6[%c0_7, %c0_8] : memref<1x128xf32, #tpu.memory_space<vmem>>, vector<1x128xf32>
    %10 = vector.shape_cast %9 : vector<1x128xf32> to vector<1x128xf32>
    %11 = vector.broadcast %10 : vector<1x128xf32> to vector<8x128xf32>
    %c0_9 = arith.constant 0 : index
    %c0_10 = arith.constant 0 : index
    %12 = vector.load %arg7[%c0_9, %c0_10] : memref<1x128xf32, #tpu.memory_space<vmem>>, vector<1x128xf32>
    %13 = vector.shape_cast %12 : vector<1x128xf32> to vector<1x128xf32>
    %14 = vector.broadcast %13 : vector<1x128xf32> to vector<8x128xf32>
    %c0_11 = arith.constant 0 : index
    %c0_12 = arith.constant 0 : index
    %15 = vector.load %arg3[%c0_11, %c0_12] : memref<128x768xf32, #tpu.memory_space<vmem>>, vector<128x768xf32>
    %c0_13 = arith.constant 0 : index
    %c0_14 = arith.constant 0 : index
    %16 = vector.load %arg4[%c0_13, %c0_14] : memref<128x384xf32, #tpu.memory_space<vmem>>, vector<128x384xf32>
    %cst_15 = arith.constant 0.000000e+00 : f32
    %17 = vector.broadcast %cst_15 : f32 to vector<8x128xf32>
    %cst_16 = arith.constant 0.000000e+00 : f32
    %18 = vector.broadcast %cst_16 : f32 to vector<8x128xf32>
    %cst_17 = arith.constant dense<0.000000e+00> : vector<8x768xf32>
    %19 = tpu.matmul %17, %15, %cst_17 {dimension_numbers = #tpu.dot_dimension_numbers<[1], [0], [0], [1], [0, 0, 1, 1], [], []>} : vector<8x128xf32>, vector<128x768xf32>, vector<8x768xf32> -> vector<8x768xf32>
    %20 = vector.extract_strided_slice %5 {offsets = [0, 0], sizes = [8, 384], strides = [1, 1]} : vector<64x384xf32> to vector<8x384xf32>
    %21 = vector.extract_strided_slice %19 {offsets = [0, 0], sizes = [8, 384], strides = [1, 1]} : vector<8x768xf32> to vector<8x384xf32>
    %22 = vector.extract_strided_slice %20 {offsets = [0, 0], sizes = [8, 128], strides = [1, 1]} : vector<8x384xf32> to vector<8x128xf32>
    %23 = vector.extract_strided_slice %21 {offsets = [0, 0], sizes = [8, 128], strides = [1, 1]} : vector<8x384xf32> to vector<8x128xf32>
    %24 = arith.addf %22, %23 : vector<8x128xf32>
    %cst_18 = arith.constant 5.000000e-01 : f32
    %25 = vector.broadcast %cst_18 : f32 to vector<8x128xf32>
    %26 = arith.mulf %25, %24 : vector<8x128xf32>
    %27 = math.tanh %26 : vector<8x128xf32>
    %cst_19 = arith.constant 5.000000e-01 : f32
    %28 = vector.broadcast %cst_19 : f32 to vector<8x128xf32>
    %29 = arith.mulf %28, %27 : vector<8x128xf32>
    %cst_20 = arith.constant 5.000000e-01 : f32
    %30 = vector.broadcast %cst_20 : f32 to vector<8x128xf32>
    %31 = arith.addf %29, %30 : vector<8x128xf32>
    %32 = vector.extract_strided_slice %20 {offsets = [0, 128], sizes = [8, 128], strides = [1, 1]} : vector<8x384xf32> to vector<8x128xf32>
    %33 = vector.extract_strided_slice %21 {offsets = [0, 128], sizes = [8, 128], strides = [1, 1]} : vector<8x384xf32> to vector<8x128xf32>
    %34 = arith.addf %32, %33 : vector<8x128xf32>
    %cst_21 = arith.constant 5.000000e-01 : f32
    %35 = vector.broadcast %cst_21 : f32 to vector<8x128xf32>
    %36 = arith.mulf %35, %34 : vector<8x128xf32>
    %37 = math.tanh %36 : vector<8x128xf32>
    %cst_22 = arith.constant 5.000000e-01 : f32
    %38 = vector.broadcast %cst_22 : f32 to vector<8x128xf32>
    %39 = arith.mulf %38, %37 : vector<8x128xf32>
    %cst_23 = arith.constant 5.000000e-01 : f32
    %40 = vector.broadcast %cst_23 : f32 to vector<8x128xf32>
    %41 = arith.addf %39, %40 : vector<8x128xf32>
    %42 = vector.extract_strided_slice %20 {offsets = [0, 256], sizes = [8, 128], strides = [1, 1]} : vector<8x384xf32> to vector<8x128xf32>
    %43 = vector.extract_strided_slice %21 {offsets = [0, 256], sizes = [8, 128], strides = [1, 1]} : vector<8x384xf32> to vector<8x128xf32>
    %44 = arith.addf %43, %11 : vector<8x128xf32>
    %45 = arith.mulf %31, %44 : vector<8x128xf32>
    %46 = arith.addf %42, %45 : vector<8x128xf32>
    %47 = math.tanh %46 : vector<8x128xf32>
    %cst_24 = arith.constant 1.000000e+00 : f32
    %48 = vector.broadcast %cst_24 : f32 to vector<8x128xf32>
    %49 = arith.subf %48, %41 : vector<8x128xf32>
    %50 = arith.mulf %49, %47 : vector<8x128xf32>
    %51 = arith.mulf %41, %17 : vector<8x128xf32>
    %52 = arith.addf %50, %51 : vector<8x128xf32>
    %cst_25 = arith.constant dense<0.000000e+00> : vector<8x768xf32>
    %53 = tpu.matmul %52, %15, %cst_25 {dimension_numbers = #tpu.dot_dimension_numbers<[1], [0], [0], [1], [0, 0, 1, 1], [], []>} : vector<8x128xf32>, vector<128x768xf32>, vector<8x768xf32> -> vector<8x768xf32>
    %cst_26 = arith.constant dense<0.000000e+00> : vector<8x384xf32>
    %54 = tpu.matmul %18, %16, %cst_26 {dimension_numbers = #tpu.dot_dimension_numbers<[1], [0], [0], [1], [0, 0, 1, 1], [], []>} : vector<8x128xf32>, vector<128x384xf32>, vector<8x384xf32> -> vector<8x384xf32>
    %55 = vector.extract_strided_slice %5 {offsets = [8, 0], sizes = [8, 384], strides = [1, 1]} : vector<64x384xf32> to vector<8x384xf32>
    %56 = vector.extract_strided_slice %53 {offsets = [0, 0], sizes = [8, 384], strides = [1, 1]} : vector<8x768xf32> to vector<8x384xf32>
    %57 = vector.extract_strided_slice %55 {offsets = [0, 0], sizes = [8, 128], strides = [1, 1]} : vector<8x384xf32> to vector<8x128xf32>
    %58 = vector.extract_strided_slice %56 {offsets = [0, 0], sizes = [8, 128], strides = [1, 1]} : vector<8x384xf32> to vector<8x128xf32>
    %59 = arith.addf %57, %58 : vector<8x128xf32>
    %cst_27 = arith.constant 5.000000e-01 : f32
    %60 = vector.broadcast %cst_27 : f32 to vector<8x128xf32>
    %61 = arith.mulf %60, %59 : vector<8x128xf32>
    %62 = math.tanh %61 : vector<8x128xf32>
    %cst_28 = arith.constant 5.000000e-01 : f32
    %63 = vector.broadcast %cst_28 : f32 to vector<8x128xf32>
    %64 = arith.mulf %63, %62 : vector<8x128xf32>
    %cst_29 = arith.constant 5.000000e-01 : f32
    %65 = vector.broadcast %cst_29 : f32 to vector<8x128xf32>
    %66 = arith.addf %64, %65 : vector<8x128xf32>
    %67 = vector.extract_strided_slice %55 {offsets = [0, 128], sizes = [8, 128], strides = [1, 1]} : vector<8x384xf32> to vector<8x128xf32>
    %68 = vector.extract_strided_slice %56 {offsets = [0, 128], sizes = [8, 128], strides = [1, 1]} : vector<8x384xf32> to vector<8x128xf32>
    %69 = arith.addf %67, %68 : vector<8x128xf32>
    %cst_30 = arith.constant 5.000000e-01 : f32
    %70 = vector.broadcast %cst_30 : f32 to vector<8x128xf32>
    %71 = arith.mulf %70, %69 : vector<8x128xf32>
    %72 = math.tanh %71 : vector<8x128xf32>
    %cst_31 = arith.constant 5.000000e-01 : f32
    %73 = vector.broadcast %cst_31 : f32 to vector<8x128xf32>
    %74 = arith.mulf %73, %72 : vector<8x128xf32>
    %cst_32 = arith.constant 5.000000e-01 : f32
    %75 = vector.broadcast %cst_32 : f32 to vector<8x128xf32>
    %76 = arith.addf %74, %75 : vector<8x128xf32>
    %77 = vector.extract_strided_slice %55 {offsets = [0, 256], sizes = [8, 128], strides = [1, 1]} : vector<8x384xf32> to vector<8x128xf32>
    %78 = vector.extract_strided_slice %56 {offsets = [0, 256], sizes = [8, 128], strides = [1, 1]} : vector<8x384xf32> to vector<8x128xf32>
    %79 = arith.addf %78, %11 : vector<8x128xf32>
    %80 = arith.mulf %66, %79 : vector<8x128xf32>
    %81 = arith.addf %77, %80 : vector<8x128xf32>
    %82 = math.tanh %81 : vector<8x128xf32>
    %cst_33 = arith.constant 1.000000e+00 : f32
    %83 = vector.broadcast %cst_33 : f32 to vector<8x128xf32>
    %84 = arith.subf %83, %76 : vector<8x128xf32>
    %85 = arith.mulf %84, %82 : vector<8x128xf32>
    %86 = arith.mulf %76, %52 : vector<8x128xf32>
    %87 = arith.addf %85, %86 : vector<8x128xf32>
    %88 = vector.extract_strided_slice %53 {offsets = [0, 384], sizes = [8, 384], strides = [1, 1]} : vector<8x768xf32> to vector<8x384xf32>
    %89 = arith.addf %88, %8 : vector<8x384xf32>
    %90 = vector.extract_strided_slice %89 {offsets = [0, 0], sizes = [8, 128], strides = [1, 1]} : vector<8x384xf32> to vector<8x128xf32>
    %91 = vector.extract_strided_slice %54 {offsets = [0, 0], sizes = [8, 128], strides = [1, 1]} : vector<8x384xf32> to vector<8x128xf32>
    %92 = arith.addf %90, %91 : vector<8x128xf32>
    %cst_34 = arith.constant 5.000000e-01 : f32
    %93 = vector.broadcast %cst_34 : f32 to vector<8x128xf32>
    %94 = arith.mulf %93, %92 : vector<8x128xf32>
    %95 = math.tanh %94 : vector<8x128xf32>
    %cst_35 = arith.constant 5.000000e-01 : f32
    %96 = vector.broadcast %cst_35 : f32 to vector<8x128xf32>
    %97 = arith.mulf %96, %95 : vector<8x128xf32>
    %cst_36 = arith.constant 5.000000e-01 : f32
    %98 = vector.broadcast %cst_36 : f32 to vector<8x128xf32>
    %99 = arith.addf %97, %98 : vector<8x128xf32>
    %100 = vector.extract_strided_slice %89 {offsets = [0, 128], sizes = [8, 128], strides = [1, 1]} : vector<8x384xf32> to vector<8x128xf32>
    %101 = vector.extract_strided_slice %54 {offsets = [0, 128], sizes = [8, 128], strides = [1, 1]} : vector<8x384xf32> to vector<8x128xf32>
    %102 = arith.addf %100, %101 : vector<8x128xf32>
    %cst_37 = arith.constant 5.000000e-01 : f32
    %103 = vector.broadcast %cst_37 : f32 to vector<8x128xf32>
    %104 = arith.mulf %103, %102 : vector<8x128xf32>
    %105 = math.tanh %104 : vector<8x128xf32>
    %cst_38 = arith.constant 5.000000e-01 : f32
    %106 = vector.broadcast %cst_38 : f32 to vector<8x128xf32>
    %107 = arith.mulf %106, %105 : vector<8x128xf32>
    %cst_39 = arith.constant 5.000000e-01 : f32
    %108 = vector.broadcast %cst_39 : f32 to vector<8x128xf32>
    %109 = arith.addf %107, %108 : vector<8x128xf32>
    %110 = vector.extract_strided_slice %89 {offsets = [0, 256], sizes = [8, 128], strides = [1, 1]} : vector<8x384xf32> to vector<8x128xf32>
    %111 = vector.extract_strided_slice %54 {offsets = [0, 256], sizes = [8, 128], strides = [1, 1]} : vector<8x384xf32> to vector<8x128xf32>
    %112 = arith.addf %111, %14 : vector<8x128xf32>
    %113 = arith.mulf %99, %112 : vector<8x128xf32>
    %114 = arith.addf %110, %113 : vector<8x128xf32>
    %115 = math.tanh %114 : vector<8x128xf32>
    %cst_40 = arith.constant 1.000000e+00 : f32
    %116 = vector.broadcast %cst_40 : f32 to vector<8x128xf32>
    %117 = arith.subf %116, %109 : vector<8x128xf32>
    %118 = arith.mulf %117, %115 : vector<8x128xf32>
    %119 = arith.mulf %109, %18 : vector<8x128xf32>
    %120 = arith.addf %118, %119 : vector<8x128xf32>
    %cst_41 = arith.constant dense<0.000000e+00> : vector<8x768xf32>
    %121 = tpu.matmul %87, %15, %cst_41 {dimension_numbers = #tpu.dot_dimension_numbers<[1], [0], [0], [1], [0, 0, 1, 1], [], []>} : vector<8x128xf32>, vector<128x768xf32>, vector<8x768xf32> -> vector<8x768xf32>
    %cst_42 = arith.constant dense<0.000000e+00> : vector<8x384xf32>
    %122 = tpu.matmul %120, %16, %cst_42 {dimension_numbers = #tpu.dot_dimension_numbers<[1], [0], [0], [1], [0, 0, 1, 1], [], []>} : vector<8x128xf32>, vector<128x384xf32>, vector<8x384xf32> -> vector<8x384xf32>
    %123 = vector.extract_strided_slice %5 {offsets = [16, 0], sizes = [8, 384], strides = [1, 1]} : vector<64x384xf32> to vector<8x384xf32>
    %124 = vector.extract_strided_slice %121 {offsets = [0, 0], sizes = [8, 384], strides = [1, 1]} : vector<8x768xf32> to vector<8x384xf32>
    %125 = vector.extract_strided_slice %123 {offsets = [0, 0], sizes = [8, 128], strides = [1, 1]} : vector<8x384xf32> to vector<8x128xf32>
    %126 = vector.extract_strided_slice %124 {offsets = [0, 0], sizes = [8, 128], strides = [1, 1]} : vector<8x384xf32> to vector<8x128xf32>
    %127 = arith.addf %125, %126 : vector<8x128xf32>
    %cst_43 = arith.constant 5.000000e-01 : f32
    %128 = vector.broadcast %cst_43 : f32 to vector<8x128xf32>
    %129 = arith.mulf %128, %127 : vector<8x128xf32>
    %130 = math.tanh %129 : vector<8x128xf32>
    %cst_44 = arith.constant 5.000000e-01 : f32
    %131 = vector.broadcast %cst_44 : f32 to vector<8x128xf32>
    %132 = arith.mulf %131, %130 : vector<8x128xf32>
    %cst_45 = arith.constant 5.000000e-01 : f32
    %133 = vector.broadcast %cst_45 : f32 to vector<8x128xf32>
    %134 = arith.addf %132, %133 : vector<8x128xf32>
    %135 = vector.extract_strided_slice %123 {offsets = [0, 128], sizes = [8, 128], strides = [1, 1]} : vector<8x384xf32> to vector<8x128xf32>
    %136 = vector.extract_strided_slice %124 {offsets = [0, 128], sizes = [8, 128], strides = [1, 1]} : vector<8x384xf32> to vector<8x128xf32>
    %137 = arith.addf %135, %136 : vector<8x128xf32>
    %cst_46 = arith.constant 5.000000e-01 : f32
    %138 = vector.broadcast %cst_46 : f32 to vector<8x128xf32>
    %139 = arith.mulf %138, %137 : vector<8x128xf32>
    %140 = math.tanh %139 : vector<8x128xf32>
    %cst_47 = arith.constant 5.000000e-01 : f32
    %141 = vector.broadcast %cst_47 : f32 to vector<8x128xf32>
    %142 = arith.mulf %141, %140 : vector<8x128xf32>
    %cst_48 = arith.constant 5.000000e-01 : f32
    %143 = vector.broadcast %cst_48 : f32 to vector<8x128xf32>
    %144 = arith.addf %142, %143 : vector<8x128xf32>
    %145 = vector.extract_strided_slice %123 {offsets = [0, 256], sizes = [8, 128], strides = [1, 1]} : vector<8x384xf32> to vector<8x128xf32>
    %146 = vector.extract_strided_slice %124 {offsets = [0, 256], sizes = [8, 128], strides = [1, 1]} : vector<8x384xf32> to vector<8x128xf32>
    %147 = arith.addf %146, %11 : vector<8x128xf32>
    %148 = arith.mulf %134, %147 : vector<8x128xf32>
    %149 = arith.addf %145, %148 : vector<8x128xf32>
    %150 = math.tanh %149 : vector<8x128xf32>
    %cst_49 = arith.constant 1.000000e+00 : f32
    %151 = vector.broadcast %cst_49 : f32 to vector<8x128xf32>
    %152 = arith.subf %151, %144 : vector<8x128xf32>
    %153 = arith.mulf %152, %150 : vector<8x128xf32>
    %154 = arith.mulf %144, %87 : vector<8x128xf32>
    %155 = arith.addf %153, %154 : vector<8x128xf32>
    %156 = vector.extract_strided_slice %121 {offsets = [0, 384], sizes = [8, 384], strides = [1, 1]} : vector<8x768xf32> to vector<8x384xf32>
    %157 = arith.addf %156, %8 : vector<8x384xf32>
    %158 = vector.extract_strided_slice %157 {offsets = [0, 0], sizes = [8, 128], strides = [1, 1]} : vector<8x384xf32> to vector<8x128xf32>
    %159 = vector.extract_strided_slice %122 {offsets = [0, 0], sizes = [8, 128], strides = [1, 1]} : vector<8x384xf32> to vector<8x128xf32>
    %160 = arith.addf %158, %159 : vector<8x128xf32>
    %cst_50 = arith.constant 5.000000e-01 : f32
    %161 = vector.broadcast %cst_50 : f32 to vector<8x128xf32>
    %162 = arith.mulf %161, %160 : vector<8x128xf32>
    %163 = math.tanh %162 : vector<8x128xf32>
    %cst_51 = arith.constant 5.000000e-01 : f32
    %164 = vector.broadcast %cst_51 : f32 to vector<8x128xf32>
    %165 = arith.mulf %164, %163 : vector<8x128xf32>
    %cst_52 = arith.constant 5.000000e-01 : f32
    %166 = vector.broadcast %cst_52 : f32 to vector<8x128xf32>
    %167 = arith.addf %165, %166 : vector<8x128xf32>
    %168 = vector.extract_strided_slice %157 {offsets = [0, 128], sizes = [8, 128], strides = [1, 1]} : vector<8x384xf32> to vector<8x128xf32>
    %169 = vector.extract_strided_slice %122 {offsets = [0, 128], sizes = [8, 128], strides = [1, 1]} : vector<8x384xf32> to vector<8x128xf32>
    %170 = arith.addf %168, %169 : vector<8x128xf32>
    %cst_53 = arith.constant 5.000000e-01 : f32
    %171 = vector.broadcast %cst_53 : f32 to vector<8x128xf32>
    %172 = arith.mulf %171, %170 : vector<8x128xf32>
    %173 = math.tanh %172 : vector<8x128xf32>
    %cst_54 = arith.constant 5.000000e-01 : f32
    %174 = vector.broadcast %cst_54 : f32 to vector<8x128xf32>
    %175 = arith.mulf %174, %173 : vector<8x128xf32>
    %cst_55 = arith.constant 5.000000e-01 : f32
    %176 = vector.broadcast %cst_55 : f32 to vector<8x128xf32>
    %177 = arith.addf %175, %176 : vector<8x128xf32>
    %178 = vector.extract_strided_slice %157 {offsets = [0, 256], sizes = [8, 128], strides = [1, 1]} : vector<8x384xf32> to vector<8x128xf32>
    %179 = vector.extract_strided_slice %122 {offsets = [0, 256], sizes = [8, 128], strides = [1, 1]} : vector<8x384xf32> to vector<8x128xf32>
    %180 = arith.addf %179, %14 : vector<8x128xf32>
    %181 = arith.mulf %167, %180 : vector<8x128xf32>
    %182 = arith.addf %178, %181 : vector<8x128xf32>
    %183 = math.tanh %182 : vector<8x128xf32>
    %cst_56 = arith.constant 1.000000e+00 : f32
    %184 = vector.broadcast %cst_56 : f32 to vector<8x128xf32>
    %185 = arith.subf %184, %177 : vector<8x128xf32>
    %186 = arith.mulf %185, %183 : vector<8x128xf32>
    %187 = arith.mulf %177, %120 : vector<8x128xf32>
    %188 = arith.addf %186, %187 : vector<8x128xf32>
    %cst_57 = arith.constant dense<0.000000e+00> : vector<8x768xf32>
    %189 = tpu.matmul %155, %15, %cst_57 {dimension_numbers = #tpu.dot_dimension_numbers<[1], [0], [0], [1], [0, 0, 1, 1], [], []>} : vector<8x128xf32>, vector<128x768xf32>, vector<8x768xf32> -> vector<8x768xf32>
    %cst_58 = arith.constant dense<0.000000e+00> : vector<8x384xf32>
    %190 = tpu.matmul %188, %16, %cst_58 {dimension_numbers = #tpu.dot_dimension_numbers<[1], [0], [0], [1], [0, 0, 1, 1], [], []>} : vector<8x128xf32>, vector<128x384xf32>, vector<8x384xf32> -> vector<8x384xf32>
    %191 = vector.extract_strided_slice %5 {offsets = [24, 0], sizes = [8, 384], strides = [1, 1]} : vector<64x384xf32> to vector<8x384xf32>
    %192 = vector.extract_strided_slice %189 {offsets = [0, 0], sizes = [8, 384], strides = [1, 1]} : vector<8x768xf32> to vector<8x384xf32>
    %193 = vector.extract_strided_slice %191 {offsets = [0, 0], sizes = [8, 128], strides = [1, 1]} : vector<8x384xf32> to vector<8x128xf32>
    %194 = vector.extract_strided_slice %192 {offsets = [0, 0], sizes = [8, 128], strides = [1, 1]} : vector<8x384xf32> to vector<8x128xf32>
    %195 = arith.addf %193, %194 : vector<8x128xf32>
    %cst_59 = arith.constant 5.000000e-01 : f32
    %196 = vector.broadcast %cst_59 : f32 to vector<8x128xf32>
    %197 = arith.mulf %196, %195 : vector<8x128xf32>
    %198 = math.tanh %197 : vector<8x128xf32>
    %cst_60 = arith.constant 5.000000e-01 : f32
    %199 = vector.broadcast %cst_60 : f32 to vector<8x128xf32>
    %200 = arith.mulf %199, %198 : vector<8x128xf32>
    %cst_61 = arith.constant 5.000000e-01 : f32
    %201 = vector.broadcast %cst_61 : f32 to vector<8x128xf32>
    %202 = arith.addf %200, %201 : vector<8x128xf32>
    %203 = vector.extract_strided_slice %191 {offsets = [0, 128], sizes = [8, 128], strides = [1, 1]} : vector<8x384xf32> to vector<8x128xf32>
    %204 = vector.extract_strided_slice %192 {offsets = [0, 128], sizes = [8, 128], strides = [1, 1]} : vector<8x384xf32> to vector<8x128xf32>
    %205 = arith.addf %203, %204 : vector<8x128xf32>
    %cst_62 = arith.constant 5.000000e-01 : f32
    %206 = vector.broadcast %cst_62 : f32 to vector<8x128xf32>
    %207 = arith.mulf %206, %205 : vector<8x128xf32>
    %208 = math.tanh %207 : vector<8x128xf32>
    %cst_63 = arith.constant 5.000000e-01 : f32
    %209 = vector.broadcast %cst_63 : f32 to vector<8x128xf32>
    %210 = arith.mulf %209, %208 : vector<8x128xf32>
    %cst_64 = arith.constant 5.000000e-01 : f32
    %211 = vector.broadcast %cst_64 : f32 to vector<8x128xf32>
    %212 = arith.addf %210, %211 : vector<8x128xf32>
    %213 = vector.extract_strided_slice %191 {offsets = [0, 256], sizes = [8, 128], strides = [1, 1]} : vector<8x384xf32> to vector<8x128xf32>
    %214 = vector.extract_strided_slice %192 {offsets = [0, 256], sizes = [8, 128], strides = [1, 1]} : vector<8x384xf32> to vector<8x128xf32>
    %215 = arith.addf %214, %11 : vector<8x128xf32>
    %216 = arith.mulf %202, %215 : vector<8x128xf32>
    %217 = arith.addf %213, %216 : vector<8x128xf32>
    %218 = math.tanh %217 : vector<8x128xf32>
    %cst_65 = arith.constant 1.000000e+00 : f32
    %219 = vector.broadcast %cst_65 : f32 to vector<8x128xf32>
    %220 = arith.subf %219, %212 : vector<8x128xf32>
    %221 = arith.mulf %220, %218 : vector<8x128xf32>
    %222 = arith.mulf %212, %155 : vector<8x128xf32>
    %223 = arith.addf %221, %222 : vector<8x128xf32>
    %224 = vector.extract_strided_slice %189 {offsets = [0, 384], sizes = [8, 384], strides = [1, 1]} : vector<8x768xf32> to vector<8x384xf32>
    %225 = arith.addf %224, %8 : vector<8x384xf32>
    %226 = vector.extract_strided_slice %225 {offsets = [0, 0], sizes = [8, 128], strides = [1, 1]} : vector<8x384xf32> to vector<8x128xf32>
    %227 = vector.extract_strided_slice %190 {offsets = [0, 0], sizes = [8, 128], strides = [1, 1]} : vector<8x384xf32> to vector<8x128xf32>
    %228 = arith.addf %226, %227 : vector<8x128xf32>
    %cst_66 = arith.constant 5.000000e-01 : f32
    %229 = vector.broadcast %cst_66 : f32 to vector<8x128xf32>
    %230 = arith.mulf %229, %228 : vector<8x128xf32>
    %231 = math.tanh %230 : vector<8x128xf32>
    %cst_67 = arith.constant 5.000000e-01 : f32
    %232 = vector.broadcast %cst_67 : f32 to vector<8x128xf32>
    %233 = arith.mulf %232, %231 : vector<8x128xf32>
    %cst_68 = arith.constant 5.000000e-01 : f32
    %234 = vector.broadcast %cst_68 : f32 to vector<8x128xf32>
    %235 = arith.addf %233, %234 : vector<8x128xf32>
    %236 = vector.extract_strided_slice %225 {offsets = [0, 128], sizes = [8, 128], strides = [1, 1]} : vector<8x384xf32> to vector<8x128xf32>
    %237 = vector.extract_strided_slice %190 {offsets = [0, 128], sizes = [8, 128], strides = [1, 1]} : vector<8x384xf32> to vector<8x128xf32>
    %238 = arith.addf %236, %237 : vector<8x128xf32>
    %cst_69 = arith.constant 5.000000e-01 : f32
    %239 = vector.broadcast %cst_69 : f32 to vector<8x128xf32>
    %240 = arith.mulf %239, %238 : vector<8x128xf32>
    %241 = math.tanh %240 : vector<8x128xf32>
    %cst_70 = arith.constant 5.000000e-01 : f32
    %242 = vector.broadcast %cst_70 : f32 to vector<8x128xf32>
    %243 = arith.mulf %242, %241 : vector<8x128xf32>
    %cst_71 = arith.constant 5.000000e-01 : f32
    %244 = vector.broadcast %cst_71 : f32 to vector<8x128xf32>
    %245 = arith.addf %243, %244 : vector<8x128xf32>
    %246 = vector.extract_strided_slice %225 {offsets = [0, 256], sizes = [8, 128], strides = [1, 1]} : vector<8x384xf32> to vector<8x128xf32>
    %247 = vector.extract_strided_slice %190 {offsets = [0, 256], sizes = [8, 128], strides = [1, 1]} : vector<8x384xf32> to vector<8x128xf32>
    %248 = arith.addf %247, %14 : vector<8x128xf32>
    %249 = arith.mulf %235, %248 : vector<8x128xf32>
    %250 = arith.addf %246, %249 : vector<8x128xf32>
    %251 = math.tanh %250 : vector<8x128xf32>
    %cst_72 = arith.constant 1.000000e+00 : f32
    %252 = vector.broadcast %cst_72 : f32 to vector<8x128xf32>
    %253 = arith.subf %252, %245 : vector<8x128xf32>
    %254 = arith.mulf %253, %251 : vector<8x128xf32>
    %255 = arith.mulf %245, %188 : vector<8x128xf32>
    %256 = arith.addf %254, %255 : vector<8x128xf32>
    %cst_73 = arith.constant dense<0.000000e+00> : vector<8x768xf32>
    %257 = tpu.matmul %223, %15, %cst_73 {dimension_numbers = #tpu.dot_dimension_numbers<[1], [0], [0], [1], [0, 0, 1, 1], [], []>} : vector<8x128xf32>, vector<128x768xf32>, vector<8x768xf32> -> vector<8x768xf32>
    %cst_74 = arith.constant dense<0.000000e+00> : vector<8x384xf32>
    %258 = tpu.matmul %256, %16, %cst_74 {dimension_numbers = #tpu.dot_dimension_numbers<[1], [0], [0], [1], [0, 0, 1, 1], [], []>} : vector<8x128xf32>, vector<128x384xf32>, vector<8x384xf32> -> vector<8x384xf32>
    %259 = vector.extract_strided_slice %5 {offsets = [32, 0], sizes = [8, 384], strides = [1, 1]} : vector<64x384xf32> to vector<8x384xf32>
    %260 = vector.extract_strided_slice %257 {offsets = [0, 0], sizes = [8, 384], strides = [1, 1]} : vector<8x768xf32> to vector<8x384xf32>
    %261 = vector.extract_strided_slice %259 {offsets = [0, 0], sizes = [8, 128], strides = [1, 1]} : vector<8x384xf32> to vector<8x128xf32>
    %262 = vector.extract_strided_slice %260 {offsets = [0, 0], sizes = [8, 128], strides = [1, 1]} : vector<8x384xf32> to vector<8x128xf32>
    %263 = arith.addf %261, %262 : vector<8x128xf32>
    %cst_75 = arith.constant 5.000000e-01 : f32
    %264 = vector.broadcast %cst_75 : f32 to vector<8x128xf32>
    %265 = arith.mulf %264, %263 : vector<8x128xf32>
    %266 = math.tanh %265 : vector<8x128xf32>
    %cst_76 = arith.constant 5.000000e-01 : f32
    %267 = vector.broadcast %cst_76 : f32 to vector<8x128xf32>
    %268 = arith.mulf %267, %266 : vector<8x128xf32>
    %cst_77 = arith.constant 5.000000e-01 : f32
    %269 = vector.broadcast %cst_77 : f32 to vector<8x128xf32>
    %270 = arith.addf %268, %269 : vector<8x128xf32>
    %271 = vector.extract_strided_slice %259 {offsets = [0, 128], sizes = [8, 128], strides = [1, 1]} : vector<8x384xf32> to vector<8x128xf32>
    %272 = vector.extract_strided_slice %260 {offsets = [0, 128], sizes = [8, 128], strides = [1, 1]} : vector<8x384xf32> to vector<8x128xf32>
    %273 = arith.addf %271, %272 : vector<8x128xf32>
    %cst_78 = arith.constant 5.000000e-01 : f32
    %274 = vector.broadcast %cst_78 : f32 to vector<8x128xf32>
    %275 = arith.mulf %274, %273 : vector<8x128xf32>
    %276 = math.tanh %275 : vector<8x128xf32>
    %cst_79 = arith.constant 5.000000e-01 : f32
    %277 = vector.broadcast %cst_79 : f32 to vector<8x128xf32>
    %278 = arith.mulf %277, %276 : vector<8x128xf32>
    %cst_80 = arith.constant 5.000000e-01 : f32
    %279 = vector.broadcast %cst_80 : f32 to vector<8x128xf32>
    %280 = arith.addf %278, %279 : vector<8x128xf32>
    %281 = vector.extract_strided_slice %259 {offsets = [0, 256], sizes = [8, 128], strides = [1, 1]} : vector<8x384xf32> to vector<8x128xf32>
    %282 = vector.extract_strided_slice %260 {offsets = [0, 256], sizes = [8, 128], strides = [1, 1]} : vector<8x384xf32> to vector<8x128xf32>
    %283 = arith.addf %282, %11 : vector<8x128xf32>
    %284 = arith.mulf %270, %283 : vector<8x128xf32>
    %285 = arith.addf %281, %284 : vector<8x128xf32>
    %286 = math.tanh %285 : vector<8x128xf32>
    %cst_81 = arith.constant 1.000000e+00 : f32
    %287 = vector.broadcast %cst_81 : f32 to vector<8x128xf32>
    %288 = arith.subf %287, %280 : vector<8x128xf32>
    %289 = arith.mulf %288, %286 : vector<8x128xf32>
    %290 = arith.mulf %280, %223 : vector<8x128xf32>
    %291 = arith.addf %289, %290 : vector<8x128xf32>
    %292 = vector.extract_strided_slice %257 {offsets = [0, 384], sizes = [8, 384], strides = [1, 1]} : vector<8x768xf32> to vector<8x384xf32>
    %293 = arith.addf %292, %8 : vector<8x384xf32>
    %294 = vector.extract_strided_slice %293 {offsets = [0, 0], sizes = [8, 128], strides = [1, 1]} : vector<8x384xf32> to vector<8x128xf32>
    %295 = vector.extract_strided_slice %258 {offsets = [0, 0], sizes = [8, 128], strides = [1, 1]} : vector<8x384xf32> to vector<8x128xf32>
    %296 = arith.addf %294, %295 : vector<8x128xf32>
    %cst_82 = arith.constant 5.000000e-01 : f32
    %297 = vector.broadcast %cst_82 : f32 to vector<8x128xf32>
    %298 = arith.mulf %297, %296 : vector<8x128xf32>
    %299 = math.tanh %298 : vector<8x128xf32>
    %cst_83 = arith.constant 5.000000e-01 : f32
    %300 = vector.broadcast %cst_83 : f32 to vector<8x128xf32>
    %301 = arith.mulf %300, %299 : vector<8x128xf32>
    %cst_84 = arith.constant 5.000000e-01 : f32
    %302 = vector.broadcast %cst_84 : f32 to vector<8x128xf32>
    %303 = arith.addf %301, %302 : vector<8x128xf32>
    %304 = vector.extract_strided_slice %293 {offsets = [0, 128], sizes = [8, 128], strides = [1, 1]} : vector<8x384xf32> to vector<8x128xf32>
    %305 = vector.extract_strided_slice %258 {offsets = [0, 128], sizes = [8, 128], strides = [1, 1]} : vector<8x384xf32> to vector<8x128xf32>
    %306 = arith.addf %304, %305 : vector<8x128xf32>
    %cst_85 = arith.constant 5.000000e-01 : f32
    %307 = vector.broadcast %cst_85 : f32 to vector<8x128xf32>
    %308 = arith.mulf %307, %306 : vector<8x128xf32>
    %309 = math.tanh %308 : vector<8x128xf32>
    %cst_86 = arith.constant 5.000000e-01 : f32
    %310 = vector.broadcast %cst_86 : f32 to vector<8x128xf32>
    %311 = arith.mulf %310, %309 : vector<8x128xf32>
    %cst_87 = arith.constant 5.000000e-01 : f32
    %312 = vector.broadcast %cst_87 : f32 to vector<8x128xf32>
    %313 = arith.addf %311, %312 : vector<8x128xf32>
    %314 = vector.extract_strided_slice %293 {offsets = [0, 256], sizes = [8, 128], strides = [1, 1]} : vector<8x384xf32> to vector<8x128xf32>
    %315 = vector.extract_strided_slice %258 {offsets = [0, 256], sizes = [8, 128], strides = [1, 1]} : vector<8x384xf32> to vector<8x128xf32>
    %316 = arith.addf %315, %14 : vector<8x128xf32>
    %317 = arith.mulf %303, %316 : vector<8x128xf32>
    %318 = arith.addf %314, %317 : vector<8x128xf32>
    %319 = math.tanh %318 : vector<8x128xf32>
    %cst_88 = arith.constant 1.000000e+00 : f32
    %320 = vector.broadcast %cst_88 : f32 to vector<8x128xf32>
    %321 = arith.subf %320, %313 : vector<8x128xf32>
    %322 = arith.mulf %321, %319 : vector<8x128xf32>
    %323 = arith.mulf %313, %256 : vector<8x128xf32>
    %324 = arith.addf %322, %323 : vector<8x128xf32>
    %cst_89 = arith.constant dense<0.000000e+00> : vector<8x768xf32>
    %325 = tpu.matmul %291, %15, %cst_89 {dimension_numbers = #tpu.dot_dimension_numbers<[1], [0], [0], [1], [0, 0, 1, 1], [], []>} : vector<8x128xf32>, vector<128x768xf32>, vector<8x768xf32> -> vector<8x768xf32>
    %cst_90 = arith.constant dense<0.000000e+00> : vector<8x384xf32>
    %326 = tpu.matmul %324, %16, %cst_90 {dimension_numbers = #tpu.dot_dimension_numbers<[1], [0], [0], [1], [0, 0, 1, 1], [], []>} : vector<8x128xf32>, vector<128x384xf32>, vector<8x384xf32> -> vector<8x384xf32>
    %327 = vector.extract_strided_slice %5 {offsets = [40, 0], sizes = [8, 384], strides = [1, 1]} : vector<64x384xf32> to vector<8x384xf32>
    %328 = vector.extract_strided_slice %325 {offsets = [0, 0], sizes = [8, 384], strides = [1, 1]} : vector<8x768xf32> to vector<8x384xf32>
    %329 = vector.extract_strided_slice %327 {offsets = [0, 0], sizes = [8, 128], strides = [1, 1]} : vector<8x384xf32> to vector<8x128xf32>
    %330 = vector.extract_strided_slice %328 {offsets = [0, 0], sizes = [8, 128], strides = [1, 1]} : vector<8x384xf32> to vector<8x128xf32>
    %331 = arith.addf %329, %330 : vector<8x128xf32>
    %cst_91 = arith.constant 5.000000e-01 : f32
    %332 = vector.broadcast %cst_91 : f32 to vector<8x128xf32>
    %333 = arith.mulf %332, %331 : vector<8x128xf32>
    %334 = math.tanh %333 : vector<8x128xf32>
    %cst_92 = arith.constant 5.000000e-01 : f32
    %335 = vector.broadcast %cst_92 : f32 to vector<8x128xf32>
    %336 = arith.mulf %335, %334 : vector<8x128xf32>
    %cst_93 = arith.constant 5.000000e-01 : f32
    %337 = vector.broadcast %cst_93 : f32 to vector<8x128xf32>
    %338 = arith.addf %336, %337 : vector<8x128xf32>
    %339 = vector.extract_strided_slice %327 {offsets = [0, 128], sizes = [8, 128], strides = [1, 1]} : vector<8x384xf32> to vector<8x128xf32>
    %340 = vector.extract_strided_slice %328 {offsets = [0, 128], sizes = [8, 128], strides = [1, 1]} : vector<8x384xf32> to vector<8x128xf32>
    %341 = arith.addf %339, %340 : vector<8x128xf32>
    %cst_94 = arith.constant 5.000000e-01 : f32
    %342 = vector.broadcast %cst_94 : f32 to vector<8x128xf32>
    %343 = arith.mulf %342, %341 : vector<8x128xf32>
    %344 = math.tanh %343 : vector<8x128xf32>
    %cst_95 = arith.constant 5.000000e-01 : f32
    %345 = vector.broadcast %cst_95 : f32 to vector<8x128xf32>
    %346 = arith.mulf %345, %344 : vector<8x128xf32>
    %cst_96 = arith.constant 5.000000e-01 : f32
    %347 = vector.broadcast %cst_96 : f32 to vector<8x128xf32>
    %348 = arith.addf %346, %347 : vector<8x128xf32>
    %349 = vector.extract_strided_slice %327 {offsets = [0, 256], sizes = [8, 128], strides = [1, 1]} : vector<8x384xf32> to vector<8x128xf32>
    %350 = vector.extract_strided_slice %328 {offsets = [0, 256], sizes = [8, 128], strides = [1, 1]} : vector<8x384xf32> to vector<8x128xf32>
    %351 = arith.addf %350, %11 : vector<8x128xf32>
    %352 = arith.mulf %338, %351 : vector<8x128xf32>
    %353 = arith.addf %349, %352 : vector<8x128xf32>
    %354 = math.tanh %353 : vector<8x128xf32>
    %cst_97 = arith.constant 1.000000e+00 : f32
    %355 = vector.broadcast %cst_97 : f32 to vector<8x128xf32>
    %356 = arith.subf %355, %348 : vector<8x128xf32>
    %357 = arith.mulf %356, %354 : vector<8x128xf32>
    %358 = arith.mulf %348, %291 : vector<8x128xf32>
    %359 = arith.addf %357, %358 : vector<8x128xf32>
    %360 = vector.extract_strided_slice %325 {offsets = [0, 384], sizes = [8, 384], strides = [1, 1]} : vector<8x768xf32> to vector<8x384xf32>
    %361 = arith.addf %360, %8 : vector<8x384xf32>
    %362 = vector.extract_strided_slice %361 {offsets = [0, 0], sizes = [8, 128], strides = [1, 1]} : vector<8x384xf32> to vector<8x128xf32>
    %363 = vector.extract_strided_slice %326 {offsets = [0, 0], sizes = [8, 128], strides = [1, 1]} : vector<8x384xf32> to vector<8x128xf32>
    %364 = arith.addf %362, %363 : vector<8x128xf32>
    %cst_98 = arith.constant 5.000000e-01 : f32
    %365 = vector.broadcast %cst_98 : f32 to vector<8x128xf32>
    %366 = arith.mulf %365, %364 : vector<8x128xf32>
    %367 = math.tanh %366 : vector<8x128xf32>
    %cst_99 = arith.constant 5.000000e-01 : f32
    %368 = vector.broadcast %cst_99 : f32 to vector<8x128xf32>
    %369 = arith.mulf %368, %367 : vector<8x128xf32>
    %cst_100 = arith.constant 5.000000e-01 : f32
    %370 = vector.broadcast %cst_100 : f32 to vector<8x128xf32>
    %371 = arith.addf %369, %370 : vector<8x128xf32>
    %372 = vector.extract_strided_slice %361 {offsets = [0, 128], sizes = [8, 128], strides = [1, 1]} : vector<8x384xf32> to vector<8x128xf32>
    %373 = vector.extract_strided_slice %326 {offsets = [0, 128], sizes = [8, 128], strides = [1, 1]} : vector<8x384xf32> to vector<8x128xf32>
    %374 = arith.addf %372, %373 : vector<8x128xf32>
    %cst_101 = arith.constant 5.000000e-01 : f32
    %375 = vector.broadcast %cst_101 : f32 to vector<8x128xf32>
    %376 = arith.mulf %375, %374 : vector<8x128xf32>
    %377 = math.tanh %376 : vector<8x128xf32>
    %cst_102 = arith.constant 5.000000e-01 : f32
    %378 = vector.broadcast %cst_102 : f32 to vector<8x128xf32>
    %379 = arith.mulf %378, %377 : vector<8x128xf32>
    %cst_103 = arith.constant 5.000000e-01 : f32
    %380 = vector.broadcast %cst_103 : f32 to vector<8x128xf32>
    %381 = arith.addf %379, %380 : vector<8x128xf32>
    %382 = vector.extract_strided_slice %361 {offsets = [0, 256], sizes = [8, 128], strides = [1, 1]} : vector<8x384xf32> to vector<8x128xf32>
    %383 = vector.extract_strided_slice %326 {offsets = [0, 256], sizes = [8, 128], strides = [1, 1]} : vector<8x384xf32> to vector<8x128xf32>
    %384 = arith.addf %383, %14 : vector<8x128xf32>
    %385 = arith.mulf %371, %384 : vector<8x128xf32>
    %386 = arith.addf %382, %385 : vector<8x128xf32>
    %387 = math.tanh %386 : vector<8x128xf32>
    %cst_104 = arith.constant 1.000000e+00 : f32
    %388 = vector.broadcast %cst_104 : f32 to vector<8x128xf32>
    %389 = arith.subf %388, %381 : vector<8x128xf32>
    %390 = arith.mulf %389, %387 : vector<8x128xf32>
    %391 = arith.mulf %381, %324 : vector<8x128xf32>
    %392 = arith.addf %390, %391 : vector<8x128xf32>
    %cst_105 = arith.constant dense<0.000000e+00> : vector<8x768xf32>
    %393 = tpu.matmul %359, %15, %cst_105 {dimension_numbers = #tpu.dot_dimension_numbers<[1], [0], [0], [1], [0, 0, 1, 1], [], []>} : vector<8x128xf32>, vector<128x768xf32>, vector<8x768xf32> -> vector<8x768xf32>
    %cst_106 = arith.constant dense<0.000000e+00> : vector<8x384xf32>
    %394 = tpu.matmul %392, %16, %cst_106 {dimension_numbers = #tpu.dot_dimension_numbers<[1], [0], [0], [1], [0, 0, 1, 1], [], []>} : vector<8x128xf32>, vector<128x384xf32>, vector<8x384xf32> -> vector<8x384xf32>
    %395 = vector.extract_strided_slice %5 {offsets = [48, 0], sizes = [8, 384], strides = [1, 1]} : vector<64x384xf32> to vector<8x384xf32>
    %396 = vector.extract_strided_slice %393 {offsets = [0, 0], sizes = [8, 384], strides = [1, 1]} : vector<8x768xf32> to vector<8x384xf32>
    %397 = vector.extract_strided_slice %395 {offsets = [0, 0], sizes = [8, 128], strides = [1, 1]} : vector<8x384xf32> to vector<8x128xf32>
    %398 = vector.extract_strided_slice %396 {offsets = [0, 0], sizes = [8, 128], strides = [1, 1]} : vector<8x384xf32> to vector<8x128xf32>
    %399 = arith.addf %397, %398 : vector<8x128xf32>
    %cst_107 = arith.constant 5.000000e-01 : f32
    %400 = vector.broadcast %cst_107 : f32 to vector<8x128xf32>
    %401 = arith.mulf %400, %399 : vector<8x128xf32>
    %402 = math.tanh %401 : vector<8x128xf32>
    %cst_108 = arith.constant 5.000000e-01 : f32
    %403 = vector.broadcast %cst_108 : f32 to vector<8x128xf32>
    %404 = arith.mulf %403, %402 : vector<8x128xf32>
    %cst_109 = arith.constant 5.000000e-01 : f32
    %405 = vector.broadcast %cst_109 : f32 to vector<8x128xf32>
    %406 = arith.addf %404, %405 : vector<8x128xf32>
    %407 = vector.extract_strided_slice %395 {offsets = [0, 128], sizes = [8, 128], strides = [1, 1]} : vector<8x384xf32> to vector<8x128xf32>
    %408 = vector.extract_strided_slice %396 {offsets = [0, 128], sizes = [8, 128], strides = [1, 1]} : vector<8x384xf32> to vector<8x128xf32>
    %409 = arith.addf %407, %408 : vector<8x128xf32>
    %cst_110 = arith.constant 5.000000e-01 : f32
    %410 = vector.broadcast %cst_110 : f32 to vector<8x128xf32>
    %411 = arith.mulf %410, %409 : vector<8x128xf32>
    %412 = math.tanh %411 : vector<8x128xf32>
    %cst_111 = arith.constant 5.000000e-01 : f32
    %413 = vector.broadcast %cst_111 : f32 to vector<8x128xf32>
    %414 = arith.mulf %413, %412 : vector<8x128xf32>
    %cst_112 = arith.constant 5.000000e-01 : f32
    %415 = vector.broadcast %cst_112 : f32 to vector<8x128xf32>
    %416 = arith.addf %414, %415 : vector<8x128xf32>
    %417 = vector.extract_strided_slice %395 {offsets = [0, 256], sizes = [8, 128], strides = [1, 1]} : vector<8x384xf32> to vector<8x128xf32>
    %418 = vector.extract_strided_slice %396 {offsets = [0, 256], sizes = [8, 128], strides = [1, 1]} : vector<8x384xf32> to vector<8x128xf32>
    %419 = arith.addf %418, %11 : vector<8x128xf32>
    %420 = arith.mulf %406, %419 : vector<8x128xf32>
    %421 = arith.addf %417, %420 : vector<8x128xf32>
    %422 = math.tanh %421 : vector<8x128xf32>
    %cst_113 = arith.constant 1.000000e+00 : f32
    %423 = vector.broadcast %cst_113 : f32 to vector<8x128xf32>
    %424 = arith.subf %423, %416 : vector<8x128xf32>
    %425 = arith.mulf %424, %422 : vector<8x128xf32>
    %426 = arith.mulf %416, %359 : vector<8x128xf32>
    %427 = arith.addf %425, %426 : vector<8x128xf32>
    %428 = vector.extract_strided_slice %393 {offsets = [0, 384], sizes = [8, 384], strides = [1, 1]} : vector<8x768xf32> to vector<8x384xf32>
    %429 = arith.addf %428, %8 : vector<8x384xf32>
    %430 = vector.extract_strided_slice %429 {offsets = [0, 0], sizes = [8, 128], strides = [1, 1]} : vector<8x384xf32> to vector<8x128xf32>
    %431 = vector.extract_strided_slice %394 {offsets = [0, 0], sizes = [8, 128], strides = [1, 1]} : vector<8x384xf32> to vector<8x128xf32>
    %432 = arith.addf %430, %431 : vector<8x128xf32>
    %cst_114 = arith.constant 5.000000e-01 : f32
    %433 = vector.broadcast %cst_114 : f32 to vector<8x128xf32>
    %434 = arith.mulf %433, %432 : vector<8x128xf32>
    %435 = math.tanh %434 : vector<8x128xf32>
    %cst_115 = arith.constant 5.000000e-01 : f32
    %436 = vector.broadcast %cst_115 : f32 to vector<8x128xf32>
    %437 = arith.mulf %436, %435 : vector<8x128xf32>
    %cst_116 = arith.constant 5.000000e-01 : f32
    %438 = vector.broadcast %cst_116 : f32 to vector<8x128xf32>
    %439 = arith.addf %437, %438 : vector<8x128xf32>
    %440 = vector.extract_strided_slice %429 {offsets = [0, 128], sizes = [8, 128], strides = [1, 1]} : vector<8x384xf32> to vector<8x128xf32>
    %441 = vector.extract_strided_slice %394 {offsets = [0, 128], sizes = [8, 128], strides = [1, 1]} : vector<8x384xf32> to vector<8x128xf32>
    %442 = arith.addf %440, %441 : vector<8x128xf32>
    %cst_117 = arith.constant 5.000000e-01 : f32
    %443 = vector.broadcast %cst_117 : f32 to vector<8x128xf32>
    %444 = arith.mulf %443, %442 : vector<8x128xf32>
    %445 = math.tanh %444 : vector<8x128xf32>
    %cst_118 = arith.constant 5.000000e-01 : f32
    %446 = vector.broadcast %cst_118 : f32 to vector<8x128xf32>
    %447 = arith.mulf %446, %445 : vector<8x128xf32>
    %cst_119 = arith.constant 5.000000e-01 : f32
    %448 = vector.broadcast %cst_119 : f32 to vector<8x128xf32>
    %449 = arith.addf %447, %448 : vector<8x128xf32>
    %450 = vector.extract_strided_slice %429 {offsets = [0, 256], sizes = [8, 128], strides = [1, 1]} : vector<8x384xf32> to vector<8x128xf32>
    %451 = vector.extract_strided_slice %394 {offsets = [0, 256], sizes = [8, 128], strides = [1, 1]} : vector<8x384xf32> to vector<8x128xf32>
    %452 = arith.addf %451, %14 : vector<8x128xf32>
    %453 = arith.mulf %439, %452 : vector<8x128xf32>
    %454 = arith.addf %450, %453 : vector<8x128xf32>
    %455 = math.tanh %454 : vector<8x128xf32>
    %cst_120 = arith.constant 1.000000e+00 : f32
    %456 = vector.broadcast %cst_120 : f32 to vector<8x128xf32>
    %457 = arith.subf %456, %449 : vector<8x128xf32>
    %458 = arith.mulf %457, %455 : vector<8x128xf32>
    %459 = arith.mulf %449, %392 : vector<8x128xf32>
    %460 = arith.addf %458, %459 : vector<8x128xf32>
    %cst_121 = arith.constant dense<0.000000e+00> : vector<8x768xf32>
    %461 = tpu.matmul %427, %15, %cst_121 {dimension_numbers = #tpu.dot_dimension_numbers<[1], [0], [0], [1], [0, 0, 1, 1], [], []>} : vector<8x128xf32>, vector<128x768xf32>, vector<8x768xf32> -> vector<8x768xf32>
    %cst_122 = arith.constant dense<0.000000e+00> : vector<8x384xf32>
    %462 = tpu.matmul %460, %16, %cst_122 {dimension_numbers = #tpu.dot_dimension_numbers<[1], [0], [0], [1], [0, 0, 1, 1], [], []>} : vector<8x128xf32>, vector<128x384xf32>, vector<8x384xf32> -> vector<8x384xf32>
    %463 = vector.extract_strided_slice %5 {offsets = [56, 0], sizes = [8, 384], strides = [1, 1]} : vector<64x384xf32> to vector<8x384xf32>
    %464 = vector.extract_strided_slice %461 {offsets = [0, 0], sizes = [8, 384], strides = [1, 1]} : vector<8x768xf32> to vector<8x384xf32>
    %465 = vector.extract_strided_slice %463 {offsets = [0, 0], sizes = [8, 128], strides = [1, 1]} : vector<8x384xf32> to vector<8x128xf32>
    %466 = vector.extract_strided_slice %464 {offsets = [0, 0], sizes = [8, 128], strides = [1, 1]} : vector<8x384xf32> to vector<8x128xf32>
    %467 = arith.addf %465, %466 : vector<8x128xf32>
    %cst_123 = arith.constant 5.000000e-01 : f32
    %468 = vector.broadcast %cst_123 : f32 to vector<8x128xf32>
    %469 = arith.mulf %468, %467 : vector<8x128xf32>
    %470 = math.tanh %469 : vector<8x128xf32>
    %cst_124 = arith.constant 5.000000e-01 : f32
    %471 = vector.broadcast %cst_124 : f32 to vector<8x128xf32>
    %472 = arith.mulf %471, %470 : vector<8x128xf32>
    %cst_125 = arith.constant 5.000000e-01 : f32
    %473 = vector.broadcast %cst_125 : f32 to vector<8x128xf32>
    %474 = arith.addf %472, %473 : vector<8x128xf32>
    %475 = vector.extract_strided_slice %463 {offsets = [0, 128], sizes = [8, 128], strides = [1, 1]} : vector<8x384xf32> to vector<8x128xf32>
    %476 = vector.extract_strided_slice %464 {offsets = [0, 128], sizes = [8, 128], strides = [1, 1]} : vector<8x384xf32> to vector<8x128xf32>
    %477 = arith.addf %475, %476 : vector<8x128xf32>
    %cst_126 = arith.constant 5.000000e-01 : f32
    %478 = vector.broadcast %cst_126 : f32 to vector<8x128xf32>
    %479 = arith.mulf %478, %477 : vector<8x128xf32>
    %480 = math.tanh %479 : vector<8x128xf32>
    %cst_127 = arith.constant 5.000000e-01 : f32
    %481 = vector.broadcast %cst_127 : f32 to vector<8x128xf32>
    %482 = arith.mulf %481, %480 : vector<8x128xf32>
    %cst_128 = arith.constant 5.000000e-01 : f32
    %483 = vector.broadcast %cst_128 : f32 to vector<8x128xf32>
    %484 = arith.addf %482, %483 : vector<8x128xf32>
    %485 = vector.extract_strided_slice %463 {offsets = [0, 256], sizes = [8, 128], strides = [1, 1]} : vector<8x384xf32> to vector<8x128xf32>
    %486 = vector.extract_strided_slice %464 {offsets = [0, 256], sizes = [8, 128], strides = [1, 1]} : vector<8x384xf32> to vector<8x128xf32>
    %487 = arith.addf %486, %11 : vector<8x128xf32>
    %488 = arith.mulf %474, %487 : vector<8x128xf32>
    %489 = arith.addf %485, %488 : vector<8x128xf32>
    %490 = math.tanh %489 : vector<8x128xf32>
    %cst_129 = arith.constant 1.000000e+00 : f32
    %491 = vector.broadcast %cst_129 : f32 to vector<8x128xf32>
    %492 = arith.subf %491, %484 : vector<8x128xf32>
    %493 = arith.mulf %492, %490 : vector<8x128xf32>
    %494 = arith.mulf %484, %427 : vector<8x128xf32>
    %495 = arith.addf %493, %494 : vector<8x128xf32>
    %496 = vector.extract_strided_slice %461 {offsets = [0, 384], sizes = [8, 384], strides = [1, 1]} : vector<8x768xf32> to vector<8x384xf32>
    %497 = arith.addf %496, %8 : vector<8x384xf32>
    %498 = vector.extract_strided_slice %497 {offsets = [0, 0], sizes = [8, 128], strides = [1, 1]} : vector<8x384xf32> to vector<8x128xf32>
    %499 = vector.extract_strided_slice %462 {offsets = [0, 0], sizes = [8, 128], strides = [1, 1]} : vector<8x384xf32> to vector<8x128xf32>
    %500 = arith.addf %498, %499 : vector<8x128xf32>
    %cst_130 = arith.constant 5.000000e-01 : f32
    %501 = vector.broadcast %cst_130 : f32 to vector<8x128xf32>
    %502 = arith.mulf %501, %500 : vector<8x128xf32>
    %503 = math.tanh %502 : vector<8x128xf32>
    %cst_131 = arith.constant 5.000000e-01 : f32
    %504 = vector.broadcast %cst_131 : f32 to vector<8x128xf32>
    %505 = arith.mulf %504, %503 : vector<8x128xf32>
    %cst_132 = arith.constant 5.000000e-01 : f32
    %506 = vector.broadcast %cst_132 : f32 to vector<8x128xf32>
    %507 = arith.addf %505, %506 : vector<8x128xf32>
    %508 = vector.extract_strided_slice %497 {offsets = [0, 128], sizes = [8, 128], strides = [1, 1]} : vector<8x384xf32> to vector<8x128xf32>
    %509 = vector.extract_strided_slice %462 {offsets = [0, 128], sizes = [8, 128], strides = [1, 1]} : vector<8x384xf32> to vector<8x128xf32>
    %510 = arith.addf %508, %509 : vector<8x128xf32>
    %cst_133 = arith.constant 5.000000e-01 : f32
    %511 = vector.broadcast %cst_133 : f32 to vector<8x128xf32>
    %512 = arith.mulf %511, %510 : vector<8x128xf32>
    %513 = math.tanh %512 : vector<8x128xf32>
    %cst_134 = arith.constant 5.000000e-01 : f32
    %514 = vector.broadcast %cst_134 : f32 to vector<8x128xf32>
    %515 = arith.mulf %514, %513 : vector<8x128xf32>
    %cst_135 = arith.constant 5.000000e-01 : f32
    %516 = vector.broadcast %cst_135 : f32 to vector<8x128xf32>
    %517 = arith.addf %515, %516 : vector<8x128xf32>
    %518 = vector.extract_strided_slice %497 {offsets = [0, 256], sizes = [8, 128], strides = [1, 1]} : vector<8x384xf32> to vector<8x128xf32>
    %519 = vector.extract_strided_slice %462 {offsets = [0, 256], sizes = [8, 128], strides = [1, 1]} : vector<8x384xf32> to vector<8x128xf32>
    %520 = arith.addf %519, %14 : vector<8x128xf32>
    %521 = arith.mulf %507, %520 : vector<8x128xf32>
    %522 = arith.addf %518, %521 : vector<8x128xf32>
    %523 = math.tanh %522 : vector<8x128xf32>
    %cst_136 = arith.constant 1.000000e+00 : f32
    %524 = vector.broadcast %cst_136 : f32 to vector<8x128xf32>
    %525 = arith.subf %524, %517 : vector<8x128xf32>
    %526 = arith.mulf %525, %523 : vector<8x128xf32>
    %527 = arith.mulf %517, %460 : vector<8x128xf32>
    %528 = arith.addf %526, %527 : vector<8x128xf32>
    %cst_137 = arith.constant dense<0.000000e+00> : vector<8x768xf32>
    %529 = tpu.matmul %495, %15, %cst_137 {dimension_numbers = #tpu.dot_dimension_numbers<[1], [0], [0], [1], [0, 0, 1, 1], [], []>} : vector<8x128xf32>, vector<128x768xf32>, vector<8x768xf32> -> vector<8x768xf32>
    %cst_138 = arith.constant dense<0.000000e+00> : vector<8x384xf32>
    %530 = tpu.matmul %528, %16, %cst_138 {dimension_numbers = #tpu.dot_dimension_numbers<[1], [0], [0], [1], [0, 0, 1, 1], [], []>} : vector<8x128xf32>, vector<128x384xf32>, vector<8x384xf32> -> vector<8x384xf32>
    %531 = vector.extract_strided_slice %529 {offsets = [0, 384], sizes = [8, 384], strides = [1, 1]} : vector<8x768xf32> to vector<8x384xf32>
    %532 = arith.addf %531, %8 : vector<8x384xf32>
    %533 = vector.extract_strided_slice %532 {offsets = [0, 0], sizes = [8, 128], strides = [1, 1]} : vector<8x384xf32> to vector<8x128xf32>
    %534 = vector.extract_strided_slice %530 {offsets = [0, 0], sizes = [8, 128], strides = [1, 1]} : vector<8x384xf32> to vector<8x128xf32>
    %535 = arith.addf %533, %534 : vector<8x128xf32>
    %cst_139 = arith.constant 5.000000e-01 : f32
    %536 = vector.broadcast %cst_139 : f32 to vector<8x128xf32>
    %537 = arith.mulf %536, %535 : vector<8x128xf32>
    %538 = math.tanh %537 : vector<8x128xf32>
    %cst_140 = arith.constant 5.000000e-01 : f32
    %539 = vector.broadcast %cst_140 : f32 to vector<8x128xf32>
    %540 = arith.mulf %539, %538 : vector<8x128xf32>
    %cst_141 = arith.constant 5.000000e-01 : f32
    %541 = vector.broadcast %cst_141 : f32 to vector<8x128xf32>
    %542 = arith.addf %540, %541 : vector<8x128xf32>
    %543 = vector.extract_strided_slice %532 {offsets = [0, 128], sizes = [8, 128], strides = [1, 1]} : vector<8x384xf32> to vector<8x128xf32>
    %544 = vector.extract_strided_slice %530 {offsets = [0, 128], sizes = [8, 128], strides = [1, 1]} : vector<8x384xf32> to vector<8x128xf32>
    %545 = arith.addf %543, %544 : vector<8x128xf32>
    %cst_142 = arith.constant 5.000000e-01 : f32
    %546 = vector.broadcast %cst_142 : f32 to vector<8x128xf32>
    %547 = arith.mulf %546, %545 : vector<8x128xf32>
    %548 = math.tanh %547 : vector<8x128xf32>
    %cst_143 = arith.constant 5.000000e-01 : f32
    %549 = vector.broadcast %cst_143 : f32 to vector<8x128xf32>
    %550 = arith.mulf %549, %548 : vector<8x128xf32>
    %cst_144 = arith.constant 5.000000e-01 : f32
    %551 = vector.broadcast %cst_144 : f32 to vector<8x128xf32>
    %552 = arith.addf %550, %551 : vector<8x128xf32>
    %553 = vector.extract_strided_slice %532 {offsets = [0, 256], sizes = [8, 128], strides = [1, 1]} : vector<8x384xf32> to vector<8x128xf32>
    %554 = vector.extract_strided_slice %530 {offsets = [0, 256], sizes = [8, 128], strides = [1, 1]} : vector<8x384xf32> to vector<8x128xf32>
    %555 = arith.addf %554, %14 : vector<8x128xf32>
    %556 = arith.mulf %542, %555 : vector<8x128xf32>
    %557 = arith.addf %553, %556 : vector<8x128xf32>
    %558 = math.tanh %557 : vector<8x128xf32>
    %cst_145 = arith.constant 1.000000e+00 : f32
    %559 = vector.broadcast %cst_145 : f32 to vector<8x128xf32>
    %560 = arith.subf %559, %552 : vector<8x128xf32>
    %561 = arith.mulf %560, %558 : vector<8x128xf32>
    %562 = arith.mulf %552, %528 : vector<8x128xf32>
    %563 = arith.addf %561, %562 : vector<8x128xf32>
    %c0_146 = arith.constant 0 : index
    %c0_147 = arith.constant 0 : index
    %564 = vector.load %arg8[%c0_146, %c0_147] : memref<128x1xf32, #tpu.memory_space<vmem>>, vector<128x1xf32>
    %cst_148 = arith.constant dense<0.000000e+00> : vector<8x1xf32>
    %565 = tpu.matmul %563, %564, %cst_148 {dimension_numbers = #tpu.dot_dimension_numbers<[1], [0], [0], [1], [0, 0, 1, 1], [], []>} : vector<8x128xf32>, vector<128x1xf32>, vector<8x1xf32> -> vector<8x1xf32>
    %c0_149 = arith.constant 0 : index
    %c0_150 = arith.constant 0 : index
    %566 = memref.load %arg9[%c0_149, %c0_150] : memref<1x1xf32, #tpu.memory_space<smem>>
    %567 = vector.broadcast %566 : f32 to vector<8x1xf32>
    %568 = arith.addf %565, %567 : vector<8x1xf32>
    %c0_151 = arith.constant 0 : index
    %c0_152 = arith.constant 0 : index
    %569 = vector.load %arg10[%c0_151, %c0_152] : memref<8x1xf32, #tpu.memory_space<vmem>>, vector<8x1xf32>
    tpu.vector_store %arg10[%c0_151, %c0_152], %568 {strides = array<i32>} : memref<8x1xf32, #tpu.memory_space<vmem>>, vector<8x1xf32>,
    return
  }
}

</mosaic_0001>

<bundles_post_ra>
// kernel: gru_model_forward.1
= control target key start
LH: loop header
LB: loop body
LE: loop exit
PB: predicated region body
PF: predicated region fallthrough
CT: control target
= control target key end

     0   :  { %16 = vsyncpa [#allocation4], 0  ;;  %s7200_s0 = inlined_call_operand.vmem [shape: f32[64,128], index: 0, kind: input, shape index: {}]   ;;  %s7201_s1 = inlined_call_operand.hbm [shape: f32[128,384], index: 1, kind: input, shape index: {}]   ;;  %s7202_s2 = inlined_call_operand.vmem [shape: f32[1,384], index: 2, kind: input, shape index: {}]   ;;  %s7203_s3 = inlined_call_operand.hbm [shape: f32[128,768], index: 3, kind: input, shape index: {}]   ;;  %s7204_s4 = inlined_call_operand.hbm [shape: f32[128,384], index: 4, kind: input, shape index: {}]   ;;  %s7205_s5 = inlined_call_operand.vmem [shape: f32[1,384], index: 5, kind: input, shape index: {}]   ;;  %s7206_s6 = inlined_call_operand.vmem [shape: f32[1,128], index: 6, kind: input, shape index: {}]   ;;  %s7207_s7 = inlined_call_operand.vmem [shape: f32[1,128], index: 7, kind: input, shape index: {}]   ;;  %s7208_s8 = inlined_call_operand.vmem [shape: f32[128,1], index: 8, kind: input, shape index: {}]   ;;  %s7209_s9 = inlined_call_operand.<no memory space> [shape: f32[1,1], index: 9, kind: input, shape index: {}]   ;;  %s7210_s10 = inlined_call_operand.vmem [shape: f32[8,1], index: 10, kind: output, shape index: {}]  }
   0x1   :  { %17 = vsyncpa [#allocation6], 0  ;;  %s5937_s13 = smov [#allocation5]   ;;  %s5867_s17 = scalar_lea.hbm %s7203_s3, 12288 }
   0x2   :  { %s39_s14 = sshll.u32 %s5937_s13, 4  ;;  %p5868_p0 = scmp.ne.s32.totalorder %s7203_s3, %s5867_s17  ;;  %s40_s14 = int_to_ptr.vmem [resolvable:$true] %s39_s14 }
   0x3   :  { %p5871_p1 = scmp.lt.u32.totalorder %s5867_s17, %s7203_s3 }
   0x5   :  { %p5873_p2 = pnand %p5871_p1, %p5868_p0 }
   0x7   :  { %5876 = shalt.err (!%p5873_p2)
}
   0x8   :  { %s5877_s22 = scalar_lea.vmem %s40_s14, 12288  ;;  %p5882_p4 = scmp.lt.s32.totalorder %s40_s14, %s40_s14 }
   0x9   :  { %p5878_p3 = scmp.ne.s32.totalorder %s40_s14, %s5877_s22  ;;  %p5883_p5 = scmp.lt.s32.totalorder %s5877_s22, %s5877_s22 }
   0xb   :  { %p5884_p6 = por %p5883_p5, %p5882_p4 }
   0xd   :  { %p5885_p7 = pnand %p5884_p6, %p5878_p3 }
   0xf   :  { %5888 = shalt.err (!%p5885_p7)
}
  0x10   :  { %s5938_s23 = smov 768   ;;  %s5939_s24 = smov 48  }
  0x11   :  { %45 = dma.hbm_to_vmem [thread:$0]  %s7203_s3, 12288, %s40_s14, [#allocation6], %s5938_s23, %s5938_s23, %s5939_s24  }
  0x12   :  { %s5940_s27 = smov [#allocation3]   ;;  %s5889_s11 = scalar_lea.hbm %s7201_s1, 6144 }
  0x13   :  { %s25_s28 = sshll.u32 %s5940_s27, 4  ;;  %p5890_p8 = scmp.ne.s32.totalorder %s7201_s1, %s5889_s11  ;;  %s26_s28 = int_to_ptr.vmem [resolvable:$true] %s25_s28 }
  0x14   :  { %p5893_p9 = scmp.lt.u32.totalorder %s5889_s11, %s7201_s1 }
  0x16   :  { %p5895_p10 = pnand %p5893_p9, %p5890_p8 }
  0x18   :  { %5898 = shalt.err (!%p5895_p10)
}
  0x19   :  { %s5899_s17 = scalar_lea.vmem %s26_s28, 6144  ;;  %p5904_p12 = scmp.lt.s32.totalorder %s26_s28, %s26_s28 }
  0x1a   :  { %p5900_p11 = scmp.ne.s32.totalorder %s26_s28, %s5899_s17  ;;  %p5905_p13 = scmp.lt.s32.totalorder %s5899_s17, %s5899_s17 }
  0x1c   :  { %p5906_p0 = por %p5905_p13, %p5904_p12 }
  0x1e   :  { %p5907_p1 = pnand %p5906_p0, %p5900_p11 }
  0x20   :  { %5910 = shalt.err (!%p5907_p1)
}
  0x21   :  { %s5941_s3 = smov 384   ;;  %s5942_s14 = smov 24  }
  0x22   :  { %31 = dma.hbm_to_vmem [thread:$0]  %s7201_s1, 6144, %s26_s28, [#allocation4], %s5941_s3, %s5941_s3, %s5942_s14  }
  0x23   :  { %s5943_s20 = smov [#allocation7]   ;;  %s5911_s24 = scalar_lea.hbm %s7204_s4, 6144 }
  0x24   :  { %s51_s21 = sshll.u32 %s5943_s20, 4  ;;  %p5912_p2 = scmp.ne.s32.totalorder %s7204_s4, %s5911_s24  ;;  %s52_s21 = int_to_ptr.vmem [resolvable:$true] %s51_s21 }
  0x25   :  { %p5915_p3 = scmp.lt.u32.totalorder %s5911_s24, %s7204_s4 }
  0x27   :  { %p5917_p4 = pnand %p5915_p3, %p5912_p2 }
  0x29   :  { %5920 = shalt.err (!%p5917_p4)
}
  0x2a   :  { %s5921_s30 = scalar_lea.vmem %s52_s21, 6144  ;;  %p5926_p6 = scmp.lt.s32.totalorder %s52_s21, %s52_s21 }
  0x2b   :  { %p5922_p5 = scmp.ne.s32.totalorder %s52_s21, %s5921_s30  ;;  %p5927_p7 = scmp.lt.s32.totalorder %s5921_s30, %s5921_s30 }
  0x2d   :  { %p5928_p8 = por %p5927_p7, %p5926_p6 }
  0x2f   :  { %p5929_p9 = pnand %p5928_p8, %p5922_p5 }
  0x31   :  { %5932 = shalt.err (!%p5929_p9)
}
  0x32   :  { %57 = dma.hbm_to_vmem [thread:$0]  %s7204_s4, 6144, %s52_s21, [#allocation6], %s5941_s3, %s5941_s3, %s5942_s14  }
  0x33   :  { %5933 = dma.done.wait [#allocation4], 6144  }
  0x34   :  { %5934 = vsyncadd [#allocation4], 4294961152 }
  0x35   :  { %5935 = dma.done.wait [#allocation6], 18432  }
  0x36   :  { %5936 = vsyncadd [#allocation6], 4294948864  ;;  %v7214_v0 = vmov 0.0   ;;  %v86_v1 = vld [vmem:[#allocation3 + $0x8] sm:$0xff]  ;;  %v89_v2 = vld [vmem:[#allocation3 + $0x20] sm:$0xff]  ;;  %vm5946_vm0 = vmmov 0  }
  0x37   :  { %214 = vmatprep.mubr.f32.mxu0 %v7214_v0  ;;  %v85_v3 = vld [vmem:[#allocation3] sm:$0xff]  ;;  %v4390_v4 = vpack.c.bf16 %v89_v2, %v86_v1  ;;  %v88_v5 = vld [vmem:[#allocation3 + $0x18] sm:$0xff]  ;;  %v95_v7 = vld [vmem:[#allocation3 + $0x50] sm:$0xff]  ;;  %vm3844_vm1 = vcmask 7168  }
  0x38   :  { %v92_v6 = vld [vmem:[#allocation3 + $0x38] sm:$0xff]  ;;  %v4392_v8 = vpack.c.bf16 %v88_v5, %v85_v3  ;;  %v91_v10 = vld [vmem:[#allocation3 + $0x30] sm:$0xff]  ;;  %v94_v11 = vld [vmem:[#allocation3 + $0x48] sm:$0xff] }
  0x39   :  { %v4394_v9 = vpack.c.bf16 %v95_v7, %v92_v6  ;;  %v98_v12 = vld [vmem:[#allocation3 + $0x68] sm:$0xff]  ;;  %4391 = vmatprep.subr.bf16.mxu0 %v4390_v4  ;;  %v101_v13 = vld [vmem:[#allocation3 + $0x80] sm:$0xff]  ;;  %v4396_v14 = vpack.c.bf16 %v94_v11, %v91_v10  ;;  %v100_v17 = vld [vmem:[#allocation3 + $0x78] sm:$0xff] }
  0x3a   :  { %4393 = vmatpush1.bf16.msra.mxu0 %v4392_v8  ;;  %v4398_v15 = vpack.c.bf16 %v101_v13, %v98_v12  ;;  %v97_v16 = vld [vmem:[#allocation3 + $0x60] sm:$0xff]  ;;  %v104_v18 = vld [vmem:[#allocation3 + $0x98] sm:$0xff]  ;;  %v107_v19 = vld [vmem:[#allocation3 + $0xb0] sm:$0xff] }
  0x3b   :  { %4395 = vmatprep.subr.bf16.mxu0 %v4394_v9  ;;  %v87_v20 = vld [vmem:[#allocation3 + $0x10] sm:$0xff]  ;;  %v90_v21 = vld [vmem:[#allocation3 + $0x28] sm:$0xff]  ;;  %v4400_v22 = vpack.c.bf16 %v100_v17, %v97_v16  ;;  %v93_v24 = vld [vmem:[#allocation3 + $0x40] sm:$0xff]  ;;  %v4402_v25 = vpack.c.bf16 %v107_v19, %v104_v18 }
  0x3c   :  { %v4422_v23 = vpack.c.bf16 %v90_v21, %v87_v20  ;;  %v103_v26 = vld [vmem:[#allocation3 + $0x90] sm:$0xff]  ;;  %v106_v27 = vld [vmem:[#allocation3 + $0xa8] sm:$0xff]  ;;  %v96_v28 = vld [vmem:[#allocation3 + $0x58] sm:$0xff] }
  0x3d   :  { %v110_v29 = vld [vmem:[#allocation3 + $0xc8] sm:$0xff]  ;;  %v113_v30 = vld [vmem:[#allocation3 + $0xe0] sm:$0xff]  ;;  %v4426_v31 = vpack.c.bf16 %v96_v28, %v93_v24  ;;  %v99_v32 = vld [vmem:[#allocation3 + $0x70] sm:$0xff]  ;;  %v4404_v34 = vpack.c.bf16 %v106_v27, %v103_v26 }
  0x3e   :  { %4397 = vmatpush1.bf16.msra.mxu0 %v4396_v14  ;;  %4423 = vmatprep.subr.bf16.mxu1 %v4422_v23  ;;  %v102_v33 = vld [vmem:[#allocation3 + $0x88] sm:$0xff]  ;;  %v109_v35 = vld [vmem:[#allocation3 + $0xc0] sm:$0xff]  ;;  %v112_v36 = vld [vmem:[#allocation3 + $0xd8] sm:$0xff]  ;;  %v4406_v38 = vpack.c.bf16 %v113_v30, %v110_v29 }
  0x3f   :  { %4399 = vmatprep.subr.bf16.mxu0 %v4398_v15  ;;  %4425 = vmatpush3.bf16.msra.mxu1 %v4422_v23  ;;  %v4430_v37 = vpack.c.bf16 %v102_v33, %v99_v32  ;;  %v105_v39 = vld [vmem:[#allocation3 + $0xa0] sm:$0xff]  ;;  %v108_v40 = vld [vmem:[#allocation3 + $0xb8] sm:$0xff]  ;;  %v119_v43 = vld [vmem:[#allocation3 + $0x110] sm:$0xff]  ;;  %v4408_v44 = vpack.c.bf16 %v112_v36, %v109_v35 }
  0x40   :  { %4427 = vmatprep.subr.bf16.mxu1 %v4426_v31  ;;  %v6042_v41 = vld [vmem:[%s7200_s0] sm:$0xff]  ;;  %v116_v42 = vld [vmem:[#allocation3 + $0xf8] sm:$0xff]  ;;  %v115_v45 = vld [vmem:[#allocation3 + $0xf0] sm:$0xff]  ;;  %v4434_v46 = vpack.c.bf16 %v108_v40, %v105_v39 }
  0x41   :  { %4063 = vmatprep.mubr.f32.mxu1 %v6042_v41  ;;  %v4410_v47 = vpack.c.bf16 %v119_v43, %v116_v42  ;;  %v118_v48 = vld [vmem:[#allocation3 + $0x108] sm:$0xff]  ;;  %v111_v49 = vld [vmem:[#allocation3 + $0xd0] sm:$0xff]  ;;  %v125_v52 = vld [vmem:[#allocation3 + $0x140] sm:$0xff] }
  0x42   :  { %4401 = vmatpush1.bf16.msra.mxu0 %v4400_v22  ;;  %v114_v50 = vld [vmem:[#allocation3 + $0xe8] sm:$0xff]  ;;  %v4412_v53 = vpack.c.bf16 %v118_v48, %v115_v45  ;;  %v121_v54 = vld [vmem:[#allocation3 + $0x120] sm:$0xff]  ;;  %v124_v57 = vld [vmem:[#allocation3 + $0x138] sm:$0xff] }
  0x43   :  { %4403 = vmatprep.subr.bf16.mxu0 %v4402_v25  ;;  %4429 = vmatpush3.bf16.msra.mxu1 %v4426_v31  ;;  %v122_v51 = vld [vmem:[#allocation3 + $0x128] sm:$0xff]  ;;  %v4438_v55 = vpack.c.bf16 %v114_v50, %v111_v49  ;;  %v117_v58 = vld [vmem:[#allocation3 + $0x100] sm:$0xff]  ;;  %v120_v59 = vld [vmem:[#allocation3 + $0x118] sm:$0xff]  ;;  %v4416_v62 = vpack.c.bf16 %v124_v57, %v121_v54 }
  0x44   :  { %4431 = vmatprep.subr.bf16.mxu1 %v4430_v37  ;;  %v4414_v56 = vpack.c.bf16 %v125_v52, %v122_v51  ;;  %v128_v60 = vld [vmem:[#allocation3 + $0x158] sm:$0xff]  ;;  %v131_v61 = vld [vmem:[#allocation3 + $0x170] sm:$0xff]  ;;  %v4442_v1 = vpack.c.bf16 %v120_v59, %v117_v58  ;;  %v130_v3 = vld [vmem:[#allocation3 + $0x168] sm:$0xff] }
  0x45   :  { %v127_v63 = vld [vmem:[#allocation3 + $0x150] sm:$0xff]  ;;  %v4418_v2 = vpack.c.bf16 %v131_v61, %v128_v60  ;;  %v126_v5 = vld [vmem:[#allocation3 + $0x148] sm:$0xff]  ;;  %v406_v7 = vld [vmem:[#allocation5 + $0x38] sm:$0xff] }
  0x46   :  { %4405 = vmatpush1.bf16.msra.mxu0 %v4404_v34  ;;  %v123_v4 = vld [vmem:[#allocation3 + $0x130] sm:$0xff]  ;;  %v400_v6 = vld [vmem:[#allocation5 + $0x8] sm:$0xff]  ;;  %v4420_v8 = vpack.c.bf16 %v130_v3, %v127_v63  ;;  %v399_v11 = vld [vmem:[#allocation5] sm:$0xff] }
  0x47   :  { %4407 = vmatprep.subr.bf16.mxu0 %v4406_v38  ;;  %4433 = vmatpush3.bf16.msra.mxu1 %v4430_v37  ;;  %v4446_v9 = vpack.c.bf16 %v126_v5, %v123_v4  ;;  %v6045_v10 = vpack.c.bf16 %v406_v7, %v400_v6  ;;  %v405_v12 = vld [vmem:[#allocation5 + $0x30] sm:$0xff]  ;;  %v412_v13 = vld [vmem:[#allocation5 + $0x68] sm:$0xff]  ;;  %v418_v14 = vld [vmem:[#allocation5 + $0x98] sm:$0xff] }
  0x48   :  { %4435 = vmatprep.subr.bf16.mxu1 %v4434_v46  ;;  %v129_v15 = vld [vmem:[#allocation3 + $0x160] sm:$0xff]  ;;  %v132_v16 = vld [vmem:[#allocation3 + $0x178] sm:$0xff]  ;;  %v6047_v17 = vpack.c.bf16 %v405_v12, %v399_v11  ;;  %v6050_v18 = vpack.c.bf16 %v418_v14, %v412_v13  ;;  %v417_v20 = vld [vmem:[#allocation5 + $0x90] sm:$0xff] }
  0x49   :  { %7359 = vst [vmem:[#allocation10_spill] sm:$0xff] %v6045_v10  ;;  %v411_v19 = vld [vmem:[#allocation5 + $0x60] sm:$0xff]  ;;  %v424_v21 = vld [vmem:[#allocation5 + $0xc8] sm:$0xff]  ;;  %v4450_v22 = vpack.c.bf16 %v132_v16, %v129_v15  ;;  %v430_v23 = vld [vmem:[#allocation5 + $0xf8] sm:$0xff] }
  0x4a   :  { %4409 = vmatpush1.bf16.msra.mxu0 %v4408_v44  ;;  %7360 = vst [vmem:[#allocation11_spill] sm:$0xff] %v6047_v17  ;;  %7361 = vst [vmem:[#allocation12_spill] sm:$0xff] %v6050_v18  ;;  %v402_v24 = vld [vmem:[#allocation5 + $0x18] sm:$0xff]  ;;  %v408_v25 = vld [vmem:[#allocation5 + $0x48] sm:$0xff]  ;;  %v6058_v27 = vpack.c.bf16 %v417_v20, %v411_v19  ;;  %v6061_v30 = vpack.c.bf16 %v430_v23, %v424_v21 }
  0x4b   :  { %4411 = vmatprep.subr.bf16.mxu0 %v4410_v47  ;;  %4437 = vmatpush3.bf16.msra.mxu1 %v4434_v46  ;;  %v78_v26 = vld [vmem:[%s7200_s0 + $0x8] sm:$0xff]  ;;  %v401_v28 = vld [vmem:[#allocation5 + $0x10] sm:$0xff]  ;;  %v407_v29 = vld [vmem:[#allocation5 + $0x40] sm:$0xff]  ;;  %v6063_v34 = vpack.c.bf16 %v408_v25, %v402_v24 }
  0x4c   :  { %4439 = vmatprep.subr.bf16.mxu1 %v4438_v55  ;;  %7362 = vst [vmem:[#allocation13_spill] sm:$0xff] %v6058_v27  ;;  %7363 = vst [vmem:[#allocation14_spill] sm:$0xff] %v6061_v30  ;;  %v423_v31 = vld [vmem:[#allocation5 + $0xc0] sm:$0xff]  ;;  %v429_v32 = vld [vmem:[#allocation5 + $0xf0] sm:$0xff]  ;;  %v6065_v38 = vpack.c.bf16 %v407_v29, %v401_v28 }
  0x4d   :  { %v436_v33 = vld [vmem:[#allocation5 + $0x128] sm:$0xff]  ;;  %7364 = vst [vmem:[#allocation15_spill] sm:$0xff] %v6063_v34  ;;  %v442_v35 = vld [vmem:[#allocation5 + $0x158] sm:$0xff]  ;;  %v79_v39 = vld [vmem:[%s7200_s0 + $0x10] sm:$0xff]  ;;  %v6072_v40 = vpack.c.bf16 %v429_v32, %v423_v31 }
  0x4e   :  { %4413 = vmatpush1.bf16.msra.mxu0 %v4412_v53  ;;  %v414_v36 = vld [vmem:[#allocation5 + $0x78] sm:$0xff]  ;;  %v420_v37 = vld [vmem:[#allocation5 + $0xa8] sm:$0xff]  ;;  %7365 = vst [vmem:[#allocation16_spill] sm:$0xff] %v6065_v38  ;;  %v419_v42 = vld [vmem:[#allocation5 + $0xa0] sm:$0xff]  ;;  %v6075_v43 = vpack.c.bf16 %v442_v35, %v436_v33 }
  0x4f   :  { %4415 = vmatprep.subr.bf16.mxu0 %v4414_v56  ;;  %4441 = vmatpush3.bf16.msra.mxu1 %v4438_v55  ;;  %7366 = vst [vmem:[#allocation17_spill] sm:$0xff] %v6072_v40  ;;  %v435_v44 = vld [vmem:[#allocation5 + $0x120] sm:$0xff]  ;;  %v441_v45 = vld [vmem:[#allocation5 + $0x150] sm:$0xff]  ;;  %v448_v46 = vld [vmem:[#allocation5 + $0x188] sm:$0xff]  ;;  %v6078_v47 = vpack.c.bf16 %v420_v37, %v414_v36 }
  0x50   :  { %4443 = vmatprep.subr.bf16.mxu1 %v4442_v1  ;;  %7367 = vst [vmem:[#allocation18_spill] sm:$0xff] %v6075_v43  ;;  %v454_v48 = vld [vmem:[#allocation5 + $0x1b8] sm:$0xff]  ;;  %v432_v50 = vld [vmem:[#allocation5 + $0x108] sm:$0xff]  ;;  %v6088_v53 = vpack.c.bf16 %v441_v45, %v435_v44  ;;  %v425_v54 = vld [vmem:[#allocation5 + $0xd0] sm:$0xff] }
  0x51   :  { %7368 = vst [vmem:[#allocation19_spill] sm:$0xff] %v6078_v47  ;;  %v426_v49 = vld [vmem:[#allocation5 + $0xd8] sm:$0xff]  ;;  %v431_v55 = vld [vmem:[#allocation5 + $0x100] sm:$0xff]  ;;  %v6091_v56 = vpack.c.bf16 %v454_v48, %v448_v46  ;;  %v453_v58 = vld [vmem:[#allocation5 + $0x1b0] sm:$0xff] }
  0x52   :  { %4417 = vmatpush1.bf16.msra.mxu0 %v4416_v62  ;;  %v80_v52 = vld [vmem:[%s7200_s0 + $0x18] sm:$0xff]  ;;  %7370 = vst [vmem:[#allocation21_spill] sm:$0xff] %v6088_v53  ;;  %v447_v57 = vld [vmem:[#allocation5 + $0x180] sm:$0xff]  ;;  %v460_v59 = vld [vmem:[#allocation5 + $0x1e8] sm:$0xff]  ;;  %v6094_v60 = vpack.c.bf16 %v432_v50, %v426_v49 }
  0x53   :  { %4419 = vmatprep.subr.bf16.mxu0 %v4418_v2  ;;  %4445 = vmatpush3.bf16.msra.mxu1 %v4442_v1  ;;  %7371 = vst [vmem:[#allocation22_spill] sm:$0xff] %v6091_v56  ;;  %v466_v61 = vld [vmem:[#allocation5 + $0x218] sm:$0xff]  ;;  %v444_v63 = vld [vmem:[#allocation5 + $0x168] sm:$0xff]  ;;  %v6097_v1 = vpack.c.bf16 %v431_v55, %v425_v54  ;;  %v81_v2 = vld [vmem:[%s7200_s0 + $0x20] sm:$0xff]  ;;  %v6104_v3 = vpack.c.bf16 %v453_v58, %v447_v57 }
  0x54   :  { %4447 = vmatprep.subr.bf16.mxu1 %v4446_v9  ;;  %7372 = vst [vmem:[#allocation23_spill] sm:$0xff] %v6094_v60  ;;  %v438_v62 = vld [vmem:[#allocation5 + $0x138] sm:$0xff]  ;;  %v437_v4 = vld [vmem:[#allocation5 + $0x130] sm:$0xff]  ;;  %v443_v5 = vld [vmem:[#allocation5 + $0x160] sm:$0xff]  ;;  %v6107_v6 = vpack.c.bf16 %v466_v61, %v460_v59 }
  0x55   :  { %7373 = vst [vmem:[#allocation24_spill] sm:$0xff] %v6097_v1  ;;  %7374 = vst [vmem:[#allocation25_spill] sm:$0xff] %v6104_v3  ;;  %v459_v7 = vld [vmem:[#allocation5 + $0x1e0] sm:$0xff]  ;;  %v6110_v11 = vpack.c.bf16 %v444_v63, %v438_v62  ;;  %v478_v12 = vld [vmem:[#allocation5 + $0x278] sm:$0xff]  ;;  %v6113_v15 = vpack.c.bf16 %v443_v5, %v437_v4 }
  0x56   :  { %4421 = vmatpush1.bf16.msra.mxu0 %v4420_v8  ;;  %7375 = vst [vmem:[#allocation26_spill] sm:$0xff] %v6107_v6  ;;  %v465_v8 = vld [vmem:[#allocation5 + $0x210] sm:$0xff]  ;;  %v450_v13 = vld [vmem:[#allocation5 + $0x198] sm:$0xff]  ;;  %v456_v14 = vld [vmem:[#allocation5 + $0x1c8] sm:$0xff] }
  0x57   :  { %4455 = vmatprep.subr.bf16.mxu0 %v6045_v10  ;;  %4449 = vmatpush3.bf16.msra.mxu1 %v4446_v9  ;;  %v472_v9 = vld [vmem:[#allocation5 + $0x248] sm:$0xff]  ;;  %7376 = vst [vmem:[#allocation27_spill] sm:$0xff] %v6110_v11  ;;  %7377 = vst [vmem:[#allocation28_spill] sm:$0xff] %v6113_v15  ;;  %v6120_v19 = vpack.c.bf16 %v465_v8, %v459_v7  ;;  %v449_v20 = vld [vmem:[#allocation5 + $0x190] sm:$0xff] }
  0x58   :  { %4451 = vmatprep.subr.bf16.mxu1 %v4450_v22  ;;  %v82_v16 = vld [vmem:[%s7200_s0 + $0x28] sm:$0xff]  ;;  %v455_v21 = vld [vmem:[#allocation5 + $0x1c0] sm:$0xff]  ;;  %v477_v24 = vld [vmem:[#allocation5 + $0x270] sm:$0xff] }
  0x59   :  { %215 = vmatmul.mubr.f32.vlgmr.msra.gmra.mrb[0].mxu0 %v6042_v41  ;;  %v413_v41 = vld [vmem:[#allocation5 + $0x70] sm:$0xff]  ;;  %7378 = vst [vmem:[#allocation29_spill] sm:$0xff] %v6120_v19  ;;  %v471_v23 = vld [vmem:[#allocation5 + $0x240] sm:$0xff]  ;;  %v484_v25 = vld [vmem:[#allocation5 + $0x2a8] sm:$0xff]  ;;  %v6129_v32 = vpack.c.bf16 %v455_v21, %v449_v20 }
  0x5a   :  { %4457 = vmatpush1.bf16.msra.mxu0 %v6047_v17  ;;  %220 = vmatprep.mubr.f32.mxu0 %v7214_v0  ;;  %v6081_v51 = vpack.c.bf16 %v419_v42, %v413_v41  ;;  %v490_v28 = vld [vmem:[#allocation5 + $0x2d8] sm:$0xff]  ;;  %v468_v31 = vld [vmem:[#allocation5 + $0x228] sm:$0xff]  ;;  %v83_v33 = vld [vmem:[%s7200_s0 + $0x30] sm:$0xff]  ;;  %v6136_v35 = vpack.c.bf16 %v477_v24, %v471_v23 }
  0x5b   :  { %4459 = vmatprep.subr.bf16.mxu0 %v6050_v18  ;;  %4453 = vmatpush3.bf16.msra.mxu1 %v4450_v22  ;;  %v6123_v22 = vpack.c.bf16 %v478_v12, %v472_v9  ;;  %v462_v29 = vld [vmem:[#allocation5 + $0x1f8] sm:$0xff]  ;;  %7381 = vst [vmem:[#allocation32_spill] sm:$0xff] %v6129_v32  ;;  %v461_v36 = vld [vmem:[#allocation5 + $0x1f0] sm:$0xff]  ;;  %v467_v37 = vld [vmem:[#allocation5 + $0x220] sm:$0xff] }
  0x5c   :  { %4487 = vmatprep.subr.bf16.mxu1 %v6063_v34  ;;  %7369 = vst [vmem:[#allocation20_spill] sm:$0xff] %v6081_v51  ;;  %7382 = vst [vmem:[#allocation33_spill] sm:$0xff] %v6136_v35  ;;  %v483_v41 = vld [vmem:[#allocation5 + $0x2a0] sm:$0xff]  ;;  %v489_v42 = vld [vmem:[#allocation5 + $0x2d0] sm:$0xff]  ;;  %v6142_v44 = vpack.c.bf16 %v468_v31, %v462_v29  ;;  %v6145_v48 = vpack.c.bf16 %v467_v37, %v461_v36 }
  0x5d   :  { %221 = vmatmul.mubr.f32.gmra.mrb[2].mxu0 %v78_v26  ;;  %7379 = vst [vmem:[#allocation30_spill] sm:$0xff] %v6123_v22  ;;  %v474_v45 = vld [vmem:[#allocation5 + $0x258] sm:$0xff]  ;;  %v480_v46 = vld [vmem:[#allocation5 + $0x288] sm:$0xff]  ;;  %v6152_v50 = vpack.c.bf16 %v489_v42, %v483_v41  ;;  %v479_v54 = vld [vmem:[#allocation5 + $0x280] sm:$0xff] }
  0x5e   :  { %4461 = vmatpush1.bf16.msra.mxu0 %v6058_v27  ;;  %226 = vmatprep.mubr.f32.mxu0 %v7214_v0  ;;  %7384 = vst [vmem:[#allocation35_spill] sm:$0xff] %v6142_v44  ;;  %7385 = vst [vmem:[#allocation36_spill] sm:$0xff] %v6145_v48  ;;  %v84_v49 = vld [vmem:[%s7200_s0 + $0x38] sm:$0xff]  ;;  %v6156_v55 = vpack.c.bf16 %v480_v46, %v474_v45  ;;  %v492_v58 = vld [vmem:[#allocation5 + $0x2e8] sm:$0xff] }
  0x5f   :  { %4463 = vmatprep.subr.bf16.mxu0 %v6061_v30  ;;  %4064 = vmatmul.mubr.f32.vlgmr.msra.gmra.mrb[0].mxu1 %v78_v26  ;;  %v6126_v26 = vpack.c.bf16 %v456_v14, %v450_v13  ;;  %7386 = vst [vmem:[#allocation37_spill] sm:$0xff] %v6152_v50  ;;  %v486_v57 = vld [vmem:[#allocation5 + $0x2b8] sm:$0xff]  ;;  %v485_v62 = vld [vmem:[#allocation5 + $0x2b0] sm:$0xff]  ;;  %v491_v63 = vld [vmem:[#allocation5 + $0x2e0] sm:$0xff]  ;;  %v135_v13 = vlaneseq }
  0x60   :  { %4489 = vmatpush1.bf16.msra.mxu1 %v6065_v38  ;;  %4066 = vmatprep.mubr.f32.mxu1 %v79_v39  ;;  %7387 = vst [vmem:[#allocation38_spill] sm:$0xff] %v6156_v55  ;;  %v6163_v61 = vpack.c.bf16 %v492_v58, %v486_v57  ;;  %v404_v4 = vld [vmem:[#allocation5 + $0x28] sm:$0xff]  ;;  %v410_v5 = vld [vmem:[#allocation5 + $0x58] sm:$0xff]  ;;  %v499_v9 = vld [vmem:[#allocation7 + $0x20] sm:$0xff] }
  0x61   :  { %227 = vmatmul.mubr.f32.gmra.mrb[4].mxu0 %v79_v39  ;;  %4491 = vmatprep.subr.bf16.mxu1 %v6078_v47  ;;  %7380 = vst [vmem:[#allocation31_spill] sm:$0xff] %v6126_v26  ;;  %v6139_v39 = vpack.c.bf16 %v490_v28, %v484_v25  ;;  %v496_v7 = vld [vmem:[#allocation7 + $0x8] sm:$0xff]  ;;  %v6208_v8 = vpack.c.bf16 %v410_v5, %v404_v4  ;;  %v6214_v14 = vshrl.u32 %v135_v13, 7  ;;  %v133_v20 = vld [vmem:[%s7202_s2] sm:$0x7] }
  0x62   :  { %4465 = vmatpush1.bf16.msra.mxu0 %v6072_v40  ;;  %232 = vmatprep.mubr.f32.mxu0 %v7214_v0  ;;  %7389 = vst [vmem:[#allocation40_spill] sm:$0xff] %v6163_v61  ;;  %v6210_v12 = vpack.c.bf16 %v499_v9, %v496_v7 }
  0x63   :  { %4467 = vmatprep.subr.bf16.mxu0 %v6075_v43  ;;  %4067 = vmatmul.mubr.f32.gmra.mrb[2].mxu1 %v80_v52  ;;  %7383 = vst [vmem:[#allocation34_spill] sm:$0xff] %v6139_v39  ;;  %7391 = vst [vmem:[#allocation42_spill] sm:$0xff] %v6208_v8  ;;  %v7213_v42 = vsub.s32 0, %v6214_v14  ;;  %v7212_v46 = vsub.s32 1, %v6214_v14 }
  0x64   :  { %4493 = vmatpush1.bf16.msra.mxu1 %v6081_v51  ;;  %4069 = vmatprep.mubr.f32.mxu1 %v81_v2  ;;  %7392 = vst [vmem:[#allocation43_spill] sm:$0xff] %v6210_v12  ;;  %7393 = vst [vmem:[#allocation44_spill] sm:$0xff] %v6214_v14 }
  0x65   :  { %233 = vmatmul.mubr.f32.gmra.mrb[6].mxu0 %v80_v52  ;;  %4495 = vmatprep.subr.bf16.mxu1 %v6094_v60  ;;  %v473_v52 = vld [vmem:[#allocation5 + $0x250] sm:$0xff] }
  0x66   :  { %4469 = vmatpush1.bf16.msra.mxu0 %v6088_v53  ;;  %238 = vmatprep.mubr.f32.mxu0 %v7214_v0  ;;  %v6159_v59 = vpack.c.bf16 %v479_v54, %v473_v52 }
  0x67   :  { %4471 = vmatprep.subr.bf16.mxu0 %v6091_v56  ;;  %4070 = vmatmul.mubr.f32.gmra.mrb[4].mxu1 %v82_v16 }
  0x68   :  { %4497 = vmatpush1.bf16.msra.mxu1 %v6097_v1  ;;  %4072 = vmatprep.mubr.f32.mxu1 %v83_v33  ;;  %7388 = vst [vmem:[#allocation39_spill] sm:$0xff] %v6159_v59 }
  0x69   :  { %239 = vmatmul.mubr.f32.gmra.mrb[8].mxu0 %v81_v2  ;;  %4499 = vmatprep.subr.bf16.mxu1 %v6110_v11  ;;  %v6170_v2 = vpack.c.bf16 %v491_v63, %v485_v62  ;;  %v6242_v62 = vrot.slane %v133_v20, %v7212_v46  ;;  %v495_v46 = vld [vmem:[#allocation7] sm:$0xff] }
  0x6a   :  { %4473 = vmatpush1.bf16.msra.mxu0 %v6104_v3  ;;  %244 = vmatprep.mubr.f32.mxu0 %v7214_v0 }
  0x6b   :  { %4475 = vmatprep.subr.bf16.mxu0 %v6107_v6  ;;  %4073 = vmatmul.mubr.f32.gmra.mrb[6].mxu1 %v84_v49  ;;  %7390 = vst [vmem:[#allocation41_spill] sm:$0xff] %v6170_v2  ;;  %7400 = vst [vmem:[#allocation51_spill] sm:$0xff] %v6242_v62 }
  0x6c   :  { %4501 = vmatpush1.bf16.msra.mxu1 %v6113_v15  ;;  %678 = vmatprep.mubr.f32.mxu1 %v7214_v0 }
  0x6d   :  { %245 = vmatmul.mubr.f32.gmra.mrb[10].mxu0 %v82_v16  ;;  %4503 = vmatprep.subr.bf16.mxu1 %v6126_v26  ;;  %v7211_v16 = vsub.s32 2, %v6214_v14  ;;  %v511_v14 = vld [vmem:[#allocation7 + $0x80] sm:$0xff] }
  0x6e   :  { %4477 = vmatpush1.bf16.msra.mxu0 %v6120_v19  ;;  %250 = vmatprep.mubr.f32.mxu0 %v7214_v0 }
  0x6f   :  { %4479 = vmatprep.subr.bf16.mxu0 %v6123_v22  ;;  %v146_v21 = vrot.slane %v133_v20, %v7211_v16 }
  0x70   :  { %4505 = vmatpush1.bf16.msra.mxu1 %v6129_v32 }
  0x71   :  { %251 = vmatmul.mubr.f32.gmra.mrb[12].mxu0 %v83_v33  ;;  %4507 = vmatprep.subr.bf16.mxu1 %v6142_v44 }
  0x72   :  { %4481 = vmatpush1.bf16.msra.mxu0 %v6136_v35  ;;  %256 = vmatprep.mubr.f32.mxu0 %v7214_v0 }
  0x73   :  { %4483 = vmatprep.subr.bf16.mxu0 %v6139_v39 }
  0x74   :  { %4509 = vmatpush1.bf16.msra.mxu1 %v6145_v48 }
  0x75   :  { %257 = vmatmul.mubr.f32.gmra.mrb[14].mxu0 %v84_v49  ;;  %4511 = vmatprep.subr.bf16.mxu1 %v6156_v55  ;;  %v6236_v49 = vrot.slane %v133_v20, %v7213_v42  ;;  %v498_v42 = vld [vmem:[#allocation7 + $0x18] sm:$0xff] }
  0x76   :  { %4485 = vmatpush1.bf16.msra.mxu0 %v6152_v50  ;;  %607 = vmatprep.mubr.f32.mxu0 %v7214_v0 }
  0x77   :  { %4519 = vmatprep.subr.bf16.mxu0 %v6045_v10  ;;  %7398 = vst [vmem:[#allocation49_spill] sm:$0xff] %v6236_v49 }
  0x78   :  { %4513 = vmatpush1.bf16.msra.mxu1 %v6159_v59 }
  0x79   :  { %608 = vmatmul.mubr.f32.vlgmr.msra.gmra.mrb[0].mxu0 %v7214_v0  ;;  %4515 = vmatprep.subr.bf16.mxu1 %v6163_v61 }
  0x7a   :  { %4521 = vmatpush1.bf16.msra.mxu0 %v6047_v17  ;;  %766 = vmatprep.mubr.f32.mxu0 %v7214_v0 }
  0x7b   :  { %4523 = vmatprep.subr.bf16.mxu0 %v6050_v18 }
  0x7c   :  { %4517 = vmatpush1.bf16.msra.mxu1 %v6170_v2 }
  0x7d   :  { %4551 = vmatprep.subr.bf16.mxu1 %v6063_v34 }
  0x7e   :  { %4525 = vmatpush1.bf16.msra.mxu0 %v6058_v27 }
  0x7f   :  { %4527 = vmatprep.subr.bf16.mxu0 %v6061_v30  ;;  %679 = vmatmul.mubr.f32.vlgmr.msra.gmra.mrb[8].mxu1 %v7214_v0 }
  0x80   :  { %4553 = vmatpush1.bf16.msra.mxu1 %v6065_v38  ;;  %837 = vmatprep.mubr.f32.mxu1 %v7214_v0  ;;  %v416_v0 = vld [vmem:[#allocation5 + $0x88] sm:$0xff] }
  0x81   :  { %4555 = vmatprep.subr.bf16.mxu1 %v6078_v47 }
  0x82   :  { %4529 = vmatpush1.bf16.msra.mxu0 %v6072_v40 }
  0x83   :  { %4531 = vmatprep.subr.bf16.mxu0 %v6075_v43 }
  0x84   :  { %4557 = vmatpush1.bf16.msra.mxu1 %v6081_v51 }
  0x85   :  { %4559 = vmatprep.subr.bf16.mxu1 %v6094_v60 }
  0x86   :  { %4533 = vmatpush1.bf16.msra.mxu0 %v6088_v53 }
  0x87   :  { %4535 = vmatprep.subr.bf16.mxu0 %v6091_v56 }
  0x88   :  { %4561 = vmatpush1.bf16.msra.mxu1 %v6097_v1 }
  0x89   :  { %4563 = vmatprep.subr.bf16.mxu1 %v6110_v11 }
  0x8a   :  { %4537 = vmatpush1.bf16.msra.mxu0 %v6104_v3 }
  0x8b   :  { %4539 = vmatprep.subr.bf16.mxu0 %v6107_v6 }
  0x8c   :  { %4565 = vmatpush1.bf16.msra.mxu1 %v6113_v15 }
  0x8d   :  { %4567 = vmatprep.subr.bf16.mxu1 %v6126_v26 }
  0x8e   :  { %4541 = vmatpush1.bf16.msra.mxu0 %v6120_v19 }
  0x8f   :  { %4543 = vmatprep.subr.bf16.mxu0 %v6123_v22 }
  0x90   :  { %4569 = vmatpush1.bf16.msra.mxu1 %v6129_v32 }
  0x91   :  { %4571 = vmatprep.subr.bf16.mxu1 %v6142_v44 }
  0x92   :  { %4545 = vmatpush1.bf16.msra.mxu0 %v6136_v35 }
  0x93   :  { %4547 = vmatprep.subr.bf16.mxu0 %v6139_v39 }
  0x94   :  { %4573 = vmatpush1.bf16.msra.mxu1 %v6145_v48 }
  0x95   :  { %4575 = vmatprep.subr.bf16.mxu1 %v6156_v55 }
  0x96   :  { %4549 = vmatpush1.bf16.msra.mxu0 %v6152_v50 }
  0x97   :  { %4583 = vmatprep.subr.bf16.mxu0 %v6208_v8 }
  0x98   :  { %4577 = vmatpush1.bf16.msra.mxu1 %v6159_v59 }
  0x99   :  { %4579 = vmatprep.subr.bf16.mxu1 %v6163_v61 }
  0x9c   :  { %4581 = vmatpush1.bf16.msra.mxu1 %v6170_v2 }
  0x9d   :  { %4615 = vmatprep.subr.bf16.mxu1 %v6210_v12 }
 0x132   :  { %v4065_v23 = vpop.f32.mrb[0].mxu1 }
 0x133   :  { %v6222_v24 = vadd.f32 %v4065_v23, %v146_v21  ;;  %v329_v25 = vpop.f32.mrb[1].mxu1 }
 0x136   :  { %v4068_v28 = vpop.f32.mrb[2].mxu1 }
 0x137   :  { %v6224_v29 = vadd.f32 %v4068_v28, %v146_v21  ;;  %v339_v31 = vpop.f32.mrb[3].mxu1 }
 0x138   :  { %v6226_v33 = vadd.f32 %v339_v31, %v146_v21  ;;  %v6251_v31 = vld [vmem:[%s7206_s6] ss:$0 sm:$0xff] }
 0x139   :  { %7394 = vst [vmem:[#allocation45_spill] sm:$0xff] %v6224_v29  ;;  %7402 = vst [vmem:[#allocation53_spill] sm:$0xff] %v6251_v31  ;;  %v434_v29 = vld [vmem:[#allocation5 + $0x118] sm:$0xff] }
 0x13a   :  { %7395 = vst [vmem:[#allocation46_spill] sm:$0xff] %v6226_v33  ;;  %v4071_v36 = vpop.f32.mrb[4].mxu1  ;;  %v508_v33 = vld [vmem:[#allocation7 + $0x68] sm:$0xff] }
 0x13b   :  { %v6228_v37 = vadd.f32 %v4071_v36, %v146_v21  ;;  %v349_v41 = vpop.f32.mrb[5].mxu1 }
 0x13c   :  { %v6231_v45 = vadd.f32 %v349_v41, %v146_v21 }
 0x13d   :  { %7396 = vst [vmem:[#allocation47_spill] sm:$0xff] %v6228_v37  ;;  %v502_v37 = vld [vmem:[#allocation7 + $0x38] sm:$0xff] }
 0x13e   :  { %7397 = vst [vmem:[#allocation48_spill] sm:$0xff] %v6231_v45  ;;  %v4074_v52 = vpop.f32.mrb[6].mxu1 }
 0x13f   :  { %v6238_v54 = vadd.f32 %v4074_v52, %v146_v21  ;;  %v359_v57 = vpop.f32.mrb[7].mxu1 }
 0x140   :  { %v6244_v63 = vadd.f32 %v359_v57, %v146_v21  ;;  %v330_v57 = vadd.f32 %v329_v25, %v146_v21  ;;  %v6256_v21 = vpack.c.bf16 %v498_v42, %v495_v46  ;;  %v415_v25 = vld [vmem:[#allocation5 + $0x80] sm:$0xff] }
 0x141   :  { %7399 = vst [vmem:[#allocation50_spill] sm:$0xff] %v6238_v54 }
 0x142   :  { %7401 = vst [vmem:[#allocation52_spill] sm:$0xff] %v6244_v63  ;;  %v422_v63 = vld [vmem:[#allocation5 + $0xb8] sm:$0xff] }
 0x14c   :  { %v609_v58 = vpop.f32.mrb[0].mxu0 }
 0x14d   :  { %v5726_v4 = vadd.f32 %v609_v58, %v6236_v49  ;;  %v611_v5 = vpop.f32.mrb[1].mxu0 }
 0x14e   :  { %v5727_v9 = vadd.f32 %v611_v5, %v6242_v62 }
 0x14f   :  { %v685_v7 = vmul.f32 0.5, %v5726_v4 }
 0x150   :  { %v690_v23 = vmul.f32 0.5, %v5727_v9  ;;  %v403_v9 = vld [vmem:[#allocation5 + $0x20] sm:$0xff] }
 0x151   :  { %5768 = vtanh.f32 %v685_v7 }
 0x152   :  { %v680_v13 = vpop.f32.mrb[8].mxu1  ;;  %5770 = vtanh.f32 %v690_v23 }
 0x153   :  { %v682_v28 = vpop.f32.mrb[9].mxu1  ;;  %v694_v41 = vadd.f32 %v6251_v31, %v680_v13 }
 0x154   :  { %v409_v28 = vld [vmem:[#allocation5 + $0x50] sm:$0xff] }
 0x15b   :  { %v5769_v20 = vpop.eup %5768 }
 0x15c   :  { %v687_v36 = vmul.f32 0.5, %v5769_v20  ;;  %v5771_v4 = vpop.eup %5770  ;;  %v505_v20 = vld [vmem:[#allocation7 + $0x50] sm:$0xff] }
 0x15d   :  { %v692_v5 = vmul.f32 0.5, %v5771_v4  ;;  %v504_v4 = vld [vmem:[#allocation7 + $0x48] sm:$0xff] }
 0x15e   :  { %v688_v52 = vadd.f32 0.5, %v687_v36  ;;  %v6254_v36 = vpack.c.bf16 %v409_v28, %v403_v9  ;;  %v440_v9 = vld [vmem:[#allocation5 + $0x148] sm:$0xff]  ;;  %v446_v28 = vld [vmem:[#allocation5 + $0x178] sm:$0xff] }
 0x15f   :  { %v693_v7 = vadd.f32 0.5, %v692_v5  ;;  %v428_v5 = vld [vmem:[#allocation5 + $0xe8] sm:$0xff] }
 0x160   :  { %v695_v58 = vmul.f32 %v694_v41, %v688_v52  ;;  %v6260_v52 = vpack.c.bf16 %v422_v63, %v416_v0  ;;  %v6274_v46 = vpack.c.bf16 %v434_v29, %v428_v5  ;;  %v507_v63 = vld [vmem:[#allocation7 + $0x60] sm:$0xff]  ;;  %v516_v5 = vld [vmem:[#allocation7 + $0xa8] sm:$0xff] }
 0x161   :  { %v698_v23 = vsub.f32 1.0, %v693_v7  ;;  %v700_v45 = vmul.f32 0.0, %v693_v7  ;;  %v510_v7 = vld [vmem:[#allocation7 + $0x78] sm:$0xff] }
 0x162   :  { %v696_v16 = vadd.f32 %v695_v58, %v330_v57  ;;  %7403 = vst [vmem:[#allocation54_spill] sm:$0xff] %v6260_v52  ;;  %v6262_v57 = vpack.c.bf16 %v505_v20, %v502_v37  ;;  %v501_v58 = vld [vmem:[#allocation7 + $0x30] sm:$0xff]  ;;  %v427_v37 = vld [vmem:[#allocation5 + $0xe0] sm:$0xff]  ;;  %7407 = vst [vmem:[#allocation58_spill] sm:$0xff] %v6274_v46  ;;  %v6284_v29 = vpack.c.bf16 %v510_v7, %v507_v63 }
 0x163   :  { %v6270_v0 = vpack.c.bf16 %v504_v4, %v501_v58  ;;  %v517_v20 = vld [vmem:[#allocation7 + $0xb0] sm:$0xff]  ;;  %v451_v63 = vld [vmem:[#allocation5 + $0x1a0] sm:$0xff] }
 0x164   :  { %5772 = vtanh.f32 %v696_v16  ;;  %v421_v16 = vld [vmem:[#allocation5 + $0xb0] sm:$0xff]  ;;  %7404 = vst [vmem:[#allocation55_spill] sm:$0xff] %v6262_v57  ;;  %7411 = vst [vmem:[#allocation61_spill] sm:$0xff] %v6284_v29 }
 0x165   :  { %v6268_v42 = vpack.c.bf16 %v421_v16, %v415_v25  ;;  %7406 = vst [vmem:[#allocation57_spill] sm:$0xff] %v6270_v0  ;;  %v6288_v16 = vpack.c.bf16 %v446_v28, %v440_v9  ;;  %v513_v4 = vld [vmem:[#allocation7 + $0x90] sm:$0xff] }
 0x166   :  { %v457_v7 = vld [vmem:[#allocation5 + $0x1d0] sm:$0xff] }
 0x167   :  { %7405 = vst [vmem:[#allocation56_spill] sm:$0xff] %v6268_v42  ;;  %7412 = vst [vmem:[#allocation62_spill] sm:$0xff] %v6288_v16 }
 0x16e   :  { %v5773_v54 = vpop.eup %5772 }
 0x16f   :  { %v699_v13 = vmul.f32 %v5773_v54, %v698_v23  ;;  %v6276_v54 = vpack.c.bf16 %v511_v14, %v508_v33  ;;  %v514_v23 = vld [vmem:[#allocation7 + $0x98] sm:$0xff]  ;;  %v439_v14 = vld [vmem:[#allocation5 + $0x140] sm:$0xff]  ;;  %v445_v33 = vld [vmem:[#allocation5 + $0x170] sm:$0xff] }
 0x170   :  { %v6290_v58 = vpack.c.bf16 %v517_v20, %v514_v23  ;;  %v519_v23 = vld [vmem:[#allocation7 + $0xc0] sm:$0xff]  ;;  %v522_v20 = vld [vmem:[#allocation7 + $0xd8] sm:$0xff] }
 0x171   :  { %v6258_v41 = vadd.f32 %v700_v45, %v699_v13  ;;  %v433_v45 = vld [vmem:[#allocation5 + $0x110] sm:$0xff]  ;;  %7408 = vst [vmem:[#allocation59_spill] sm:$0xff] %v6276_v54  ;;  %v7409_v13 = vmov 0.0  }
 0x172   :  { %v6282_v25 = vpack.c.bf16 %v433_v45, %v427_v37  ;;  %7413 = vst [vmem:[#allocation63_spill] sm:$0xff] %v6290_v58  ;;  %v6294_v37 = vpack.c.bf16 %v445_v33, %v439_v14  ;;  %v6296_v45 = vpack.c.bf16 %v516_v5, %v513_v4  ;;  %v6306_v14 = vpack.c.bf16 %v457_v7, %v451_v63  ;;  %v463_v4 = vld [vmem:[#allocation5 + $0x200] sm:$0xff]  ;;  %v469_v5 = vld [vmem:[#allocation5 + $0x230] sm:$0xff] }
 0x173   :  { %767 = vmatmul.mubr.f32.vlgmr.msra.gmra.mrb[2].mxu0 %v6258_v41  ;;  %838 = vmatmul.mubr.f32.vlgmr.msra.gmra.mrb[10].mxu1 %v6258_v41  ;;  %v6308_v33 = vpack.c.bf16 %v522_v20, %v519_v23  ;;  %v6318_v63 = vpack.c.bf16 %v469_v5, %v463_v4  ;;  %v475_v23 = vld [vmem:[#allocation5 + $0x260] sm:$0xff]  ;;  %v481_v20 = vld [vmem:[#allocation5 + $0x290] sm:$0xff] }
 0x174   :  { %4585 = vmatpush1.bf16.msra.mxu0 %v6254_v36  ;;  %4617 = vmatpush1.bf16.msra.mxu1 %v6256_v21  ;;  %7410 = vst [vmem:[#allocation60_spill] sm:$0xff] %v6282_v25  ;;  %7414 = vst [vmem:[#allocation64_spill] sm:$0xff] %v6294_v37  ;;  %v6330_v4 = vpack.c.bf16 %v481_v20, %v475_v23 }
 0x175   :  { %4587 = vmatprep.subr.bf16.mxu0 %v6260_v52  ;;  %4619 = vmatprep.subr.bf16.mxu1 %v6262_v57  ;;  %v452_v57 = vld [vmem:[#allocation5 + $0x1a8] sm:$0xff]  ;;  %7415 = vst [vmem:[#allocation65_spill] sm:$0xff] %v6296_v45  ;;  %7418 = vst [vmem:[#allocation68_spill] sm:$0xff] %v6306_v14 }
 0x176   :  { %908 = vmatprep.mubr.f32.mxu0 %v7409_v13  ;;  %979 = vmatprep.mubr.f32.mxu1 %v7409_v13  ;;  %v520_v52 = vld [vmem:[#allocation7 + $0xc8] sm:$0xff]  ;;  %7419 = vst [vmem:[#allocation69_spill] sm:$0xff] %v6308_v33 }
 0x178   :  { %4589 = vmatpush1.bf16.msra.mxu0 %v6268_v42  ;;  %4621 = vmatpush1.bf16.msra.mxu1 %v6270_v0  ;;  %v458_v42 = vld [vmem:[#allocation5 + $0x1d8] sm:$0xff]  ;;  %v523_v0 = vld [vmem:[#allocation7 + $0xe0] sm:$0xff] }
 0x179   :  { %4591 = vmatprep.subr.bf16.mxu0 %v6274_v46  ;;  %4623 = vmatprep.subr.bf16.mxu1 %v6276_v54  ;;  %v6300_v9 = vpack.c.bf16 %v458_v42, %v452_v57  ;;  %v6302_v28 = vpack.c.bf16 %v523_v0, %v520_v52  ;;  %v464_v54 = vld [vmem:[#allocation5 + $0x208] sm:$0xff]  ;;  %v526_v46 = vld [vmem:[#allocation7 + $0xf8] sm:$0xff]  ;;  %v525_v42 = vld [vmem:[#allocation7 + $0xf0] sm:$0xff] }
 0x17a   :  { %v528_v0 = vld [vmem:[#allocation7 + $0x108] sm:$0xff] }
 0x17b   :  { %7416 = vst [vmem:[#allocation66_spill] sm:$0xff] %v6300_v9  ;;  %7417 = vst [vmem:[#allocation67_spill] sm:$0xff] %v6302_v28  ;;  %v6320_v7 = vpack.c.bf16 %v528_v0, %v525_v42  ;;  %v487_v42 = vld [vmem:[#allocation5 + $0x2c0] sm:$0xff]  ;;  %v540_v0 = vld [vmem:[#allocation7 + $0x168] sm:$0xff] }
 0x17c   :  { %4593 = vmatpush1.bf16.msra.mxu0 %v6282_v25  ;;  %4625 = vmatpush1.bf16.msra.mxu1 %v6284_v29  ;;  %v470_v25 = vld [vmem:[#allocation5 + $0x238] sm:$0xff]  ;;  %v529_v29 = vld [vmem:[#allocation7 + $0x110] sm:$0xff] }
 0x17d   :  { %4595 = vmatprep.subr.bf16.mxu0 %v6288_v16  ;;  %4627 = vmatprep.subr.bf16.mxu1 %v6290_v58  ;;  %v6312_v52 = vpack.c.bf16 %v470_v25, %v464_v54  ;;  %v6314_v57 = vpack.c.bf16 %v529_v29, %v526_v46  ;;  %v476_v58 = vld [vmem:[#allocation5 + $0x268] sm:$0xff]  ;;  %7422 = vst [vmem:[#allocation72_spill] sm:$0xff] %v6320_v7  ;;  %v531_v25 = vld [vmem:[#allocation7 + $0x120] sm:$0xff]  ;;  %v534_v29 = vld [vmem:[#allocation7 + $0x138] sm:$0xff] }
 0x17e   :  { %v532_v16 = vld [vmem:[#allocation7 + $0x128] sm:$0xff]  ;;  %v6332_v5 = vpack.c.bf16 %v534_v29, %v531_v25  ;;  %v497_v25 = vld [vmem:[#allocation7 + $0x10] sm:$0xff]  ;;  %v506_v29 = vld [vmem:[#allocation7 + $0x58] sm:$0xff] }
 0x17f   :  { %7420 = vst [vmem:[#allocation70_spill] sm:$0xff] %v6312_v52  ;;  %7421 = vst [vmem:[#allocation71_spill] sm:$0xff] %v6314_v57 }
 0x180   :  { %4597 = vmatpush1.bf16.msra.mxu0 %v6294_v37  ;;  %4629 = vmatpush1.bf16.msra.mxu1 %v6296_v45  ;;  %v482_v37 = vld [vmem:[#allocation5 + $0x298] sm:$0xff]  ;;  %v535_v45 = vld [vmem:[#allocation7 + $0x140] sm:$0xff] }
 0x181   :  { %4599 = vmatprep.subr.bf16.mxu0 %v6300_v9  ;;  %4631 = vmatprep.subr.bf16.mxu1 %v6302_v28  ;;  %v6324_v46 = vpack.c.bf16 %v482_v37, %v476_v58  ;;  %v6326_v54 = vpack.c.bf16 %v535_v45, %v532_v16  ;;  %v488_v28 = vld [vmem:[#allocation5 + $0x2c8] sm:$0xff]  ;;  %v538_v9 = vld [vmem:[#allocation7 + $0x158] sm:$0xff]  ;;  %v493_v37 = vld [vmem:[#allocation5 + $0x2f0] sm:$0xff] }
 0x182   :  { %v537_v45 = vld [vmem:[#allocation7 + $0x150] sm:$0xff]  ;;  %v6342_v23 = vpack.c.bf16 %v493_v37, %v487_v42 }
 0x183   :  { %7423 = vst [vmem:[#allocation73_spill] sm:$0xff] %v6324_v46  ;;  %7424 = vst [vmem:[#allocation74_spill] sm:$0xff] %v6326_v54  ;;  %v6344_v20 = vpack.c.bf16 %v540_v0, %v537_v45  ;;  %v509_v37 = vld [vmem:[#allocation7 + $0x70] sm:$0xff]  ;;  %v512_v45 = vld [vmem:[#allocation7 + $0x88] sm:$0xff] }
 0x184   :  { %4601 = vmatpush1.bf16.msra.mxu0 %v6306_v14  ;;  %4633 = vmatpush1.bf16.msra.mxu1 %v6308_v33  ;;  %v494_v14 = vld [vmem:[#allocation5 + $0x2f8] sm:$0xff]  ;;  %v541_v33 = vld [vmem:[#allocation7 + $0x170] sm:$0xff]  ;;  %v6366_v0 = vpack.c.bf16 %v512_v45, %v509_v37  ;;  %v527_v45 = vld [vmem:[#allocation7 + $0x100] sm:$0xff] }
 0x185   :  { %4603 = vmatprep.subr.bf16.mxu0 %v6312_v52  ;;  %4635 = vmatprep.subr.bf16.mxu1 %v6314_v57  ;;  %v6336_v16 = vpack.c.bf16 %v494_v14, %v488_v28  ;;  %v6338_v58 = vpack.c.bf16 %v541_v33, %v538_v9  ;;  %v500_v28 = vld [vmem:[#allocation7 + $0x28] sm:$0xff]  ;;  %v7258_v14 = vmov 0.0|0.0   ;;  %v503_v33 = vld [vmem:[#allocation7 + $0x40] sm:$0xff] }
 0x186   :  { %v6350_v9 = vpack.c.bf16 %v500_v28, %v497_v25  ;;  %v6357_v42 = vpack.c.bf16 %v506_v29, %v503_v33  ;;  %v515_v25 = vld [vmem:[#allocation7 + $0xa0] sm:$0xff]  ;;  %v518_v28 = vld [vmem:[#allocation7 + $0xb8] sm:$0xff]  ;;  %v521_v29 = vld [vmem:[#allocation7 + $0xd0] sm:$0xff] }
 0x187   :  { %v6372_v33 = vpack.c.bf16 %v518_v28, %v515_v25  ;;  %v533_v28 = vld [vmem:[#allocation7 + $0x130] sm:$0xff] }
 0x188   :  { %4605 = vmatpush1.bf16.msra.mxu0 %v6318_v63  ;;  %4637 = vmatpush1.bf16.msra.mxu1 %v6320_v7 }
 0x189   :  { %4607 = vmatprep.subr.bf16.mxu0 %v6324_v46  ;;  %4639 = vmatprep.subr.bf16.mxu1 %v6326_v54  ;;  %7425 = vst [vmem:[#allocation75_spill] sm:$0xff] %v6372_v33 }
 0x18c   :  { %4609 = vmatpush1.bf16.msra.mxu0 %v6330_v4  ;;  %4641 = vmatpush1.bf16.msra.mxu1 %v6332_v5 }
 0x18d   :  { %4611 = vmatprep.subr.bf16.mxu0 %v6336_v16  ;;  %4643 = vmatprep.subr.bf16.mxu1 %v6338_v58 }
 0x190   :  { %4613 = vmatpush1.bf16.msra.mxu0 %v6342_v23  ;;  %4645 = vmatpush1.bf16.msra.mxu1 %v6344_v20 }
 0x191   :  { %4646 = vmatprep.subr.bf16.mxu0 %v7258_v14  ;;  %4703 = vmatprep.subr.bf16.mxu1 %v6063_v34 }
 0x193   :  { %909 = vmatmul.mubr.f32.vlgmr.msra.gmra.mrb[16].mxu0 %v6258_v41  ;;  %980 = vmatmul.mubr.f32.vlgmr.msra.gmra.mrb[12].mxu1 %v7409_v13 }
 0x194   :  { %4648 = vmatpush3.bf16.msra.mxu0 %v6350_v9  ;;  %4107 = vmatprep.mubr.msk.f32.mxu0 %vm5946_vm0, %v7409_v13 }
 0x195   :  { %4649 = vmatprep.subr.bf16.mxu0 %v7258_v14  ;;  %4705 = vmatpush1.bf16.msra.mxu1 %v6065_v38 }
 0x196   :  { %4707 = vmatprep.subr.bf16.mxu1 %v6078_v47  ;;  %1230 = vmatprep.mubr.f32.mxu1 %v7409_v13  ;;  %v524_v47 = vld [vmem:[#allocation7 + $0xe8] sm:$0xff] }
 0x197   :  { %v6378_v37 = vpack.c.bf16 %v524_v47, %v521_v29  ;;  %v539_v29 = vld [vmem:[#allocation7 + $0x160] sm:$0xff] }
 0x198   :  { %4651 = vmatpush3.bf16.msra.mxu0 %v6357_v42 }
 0x199   :  { %4652 = vmatprep.subr.bf16.mxu0 %v7258_v14  ;;  %4709 = vmatpush1.bf16.msra.mxu1 %v6081_v51  ;;  %7426 = vst [vmem:[#allocation76_spill] sm:$0xff] %v6378_v37 }
 0x19a   :  { %4711 = vmatprep.subr.bf16.mxu1 %v6094_v60  ;;  %v530_v60 = vld [vmem:[#allocation7 + $0x118] sm:$0xff] }
 0x19b   :  { %v6384_v25 = vpack.c.bf16 %v530_v60, %v527_v45 }
 0x19c   :  { %4654 = vmatpush3.bf16.msra.mxu0 %v6366_v0 }
 0x19d   :  { %4655 = vmatprep.subr.bf16.mxu0 %v7258_v14  ;;  %4713 = vmatpush1.bf16.msra.mxu1 %v6097_v1  ;;  %7427 = vst [vmem:[#allocation77_spill] sm:$0xff] %v6384_v25 }
 0x19e   :  { %4715 = vmatprep.subr.bf16.mxu1 %v6110_v11  ;;  %v536_v11 = vld [vmem:[#allocation7 + $0x148] sm:$0xff] }
 0x19f   :  { %v6390_v47 = vpack.c.bf16 %v536_v11, %v533_v28 }
 0x1a0   :  { %4657 = vmatpush3.bf16.msra.mxu0 %v6372_v33 }
 0x1a1   :  { %4658 = vmatprep.subr.bf16.mxu0 %v7258_v14  ;;  %4717 = vmatpush1.bf16.msra.mxu1 %v6113_v15  ;;  %7428 = vst [vmem:[#allocation78_spill] sm:$0xff] %v6390_v47 }
 0x1a2   :  { %4719 = vmatprep.subr.bf16.mxu1 %v6126_v26  ;;  %v542_v26 = vld [vmem:[#allocation7 + $0x178] sm:$0xff] }
 0x1a3   :  { %v6396_v60 = vpack.c.bf16 %v542_v26, %v539_v29 }
 0x1a4   :  { %4660 = vmatpush3.bf16.msra.mxu0 %v6378_v37 }
 0x1a5   :  { %4661 = vmatprep.subr.bf16.mxu0 %v7258_v14  ;;  %4721 = vmatpush1.bf16.msra.mxu1 %v6129_v32  ;;  %7429 = vst [vmem:[#allocation79_spill] sm:$0xff] %v6396_v60 }
 0x1a6   :  { %4723 = vmatprep.subr.bf16.mxu1 %v6142_v44 }
 0x1a8   :  { %4663 = vmatpush3.bf16.msra.mxu0 %v6384_v25 }
 0x1a9   :  { %4664 = vmatprep.subr.bf16.mxu0 %v7258_v14  ;;  %4725 = vmatpush1.bf16.msra.mxu1 %v6145_v48 }
 0x1aa   :  { %4727 = vmatprep.subr.bf16.mxu1 %v6156_v55 }
 0x1ac   :  { %4666 = vmatpush3.bf16.msra.mxu0 %v6390_v47 }
 0x1ad   :  { %4667 = vmatprep.subr.bf16.mxu0 %v7258_v14  ;;  %4729 = vmatpush1.bf16.msra.mxu1 %v6159_v59 }
 0x1ae   :  { %4731 = vmatprep.subr.bf16.mxu1 %v6163_v61 }
 0x1b0   :  { %4669 = vmatpush3.bf16.msra.mxu0 %v6396_v60 }
 0x1b1   :  { %4671 = vmatprep.subr.bf16.mxu0 %v6045_v10  ;;  %4733 = vmatpush1.bf16.msra.mxu1 %v6170_v2 }
 0x1b2   :  { %4735 = vmatprep.subr.bf16.mxu1 %v6208_v8 }
 0x1b3   :  { %4108 = vmatmul.mubr.f32.vlgmr.msra.gmra.mrb[18].mxu0 %v7409_v13 }
 0x1b4   :  { %4673 = vmatpush1.bf16.msra.mxu0 %v6047_v17  ;;  %1159 = vmatprep.mubr.f32.mxu0 %v7409_v13 }
 0x1b5   :  { %4675 = vmatprep.subr.bf16.mxu0 %v6050_v18 }
 0x1b8   :  { %4677 = vmatpush1.bf16.msra.mxu0 %v6058_v27 }
 0x1b9   :  { %4679 = vmatprep.subr.bf16.mxu0 %v6061_v30 }
 0x1bc   :  { %4681 = vmatpush1.bf16.msra.mxu0 %v6072_v40 }
 0x1bd   :  { %4683 = vmatprep.subr.bf16.mxu0 %v6075_v43 }
 0x1c0   :  { %4685 = vmatpush1.bf16.msra.mxu0 %v6088_v53 }
 0x1c1   :  { %4687 = vmatprep.subr.bf16.mxu0 %v6091_v56 }
 0x1c4   :  { %4689 = vmatpush1.bf16.msra.mxu0 %v6104_v3 }
 0x1c5   :  { %4691 = vmatprep.subr.bf16.mxu0 %v6107_v6 }
 0x1c8   :  { %4693 = vmatpush1.bf16.msra.mxu0 %v6120_v19 }
 0x1c9   :  { %4695 = vmatprep.subr.bf16.mxu0 %v6123_v22 }
 0x1cc   :  { %4697 = vmatpush1.bf16.msra.mxu0 %v6136_v35 }
 0x1cd   :  { %4699 = vmatprep.subr.bf16.mxu0 %v6139_v39 }
 0x1d0   :  { %4701 = vmatpush1.bf16.msra.mxu0 %v6152_v50 }
 0x1d1   :  { %4767 = vmatprep.subr.bf16.mxu0 %v6210_v12 }
 0x246   :  { %v768_v11 = vpop.f32.mrb[2].mxu0  ;;  %v839_v26 = vpop.f32.mrb[10].mxu1 }
 0x247   :  { %v5728_v45 = vadd.f32 %v768_v11, %v6236_v49  ;;  %v770_v28 = vpop.f32.mrb[3].mxu0  ;;  %v841_v29 = vpop.f32.mrb[11].mxu1  ;;  %v1066_v44 = vadd.f32 %v6251_v31, %v839_v26  ;;  %v368_v11 = vld [vmem:[%s7205_s5] sm:$0x7]  ;;  %v7430_v49 = vld [vmem:[#allocation44_spill] sm:$0xff] }
 0x248   :  { %v5729_v2 = vadd.f32 %v770_v28, %v6242_v62  ;;  %v7431_v28 = vsub.s32 0, %v7430_v49 }
 0x249   :  { %v1057_v14 = vmul.f32 0.5, %v5728_v45 }
 0x24a   :  { %v1062_v61 = vmul.f32 0.5, %v5729_v2 }
 0x24b   :  { %5774 = vtanh.f32 %v1057_v14  ;;  %v6432_v14 = vrot.slane %v368_v11, %v7431_v28 }
 0x24c   :  { %5776 = vtanh.f32 %v1062_v61 }
 0x24d   :  { %7432 = vst [vmem:[#allocation44_spill] sm:$0xff] %v6432_v14 }
 0x255   :  { %v5775_v59 = vpop.eup %5774 }
 0x256   :  { %v1059_v55 = vmul.f32 0.5, %v5775_v59  ;;  %v5777_v8 = vpop.eup %5776  ;;  %v7433_v59 = vsub.s32 1, %v7430_v49 }
 0x257   :  { %v1064_v45 = vmul.f32 0.5, %v5777_v8 }
 0x258   :  { %v1060_v48 = vadd.f32 0.5, %v1059_v55  ;;  %v6436_v55 = vrot.slane %v368_v11, %v7433_v59  ;;  %v7436_v59 = vld [vmem:[#allocation55_spill] sm:$0xff] }
 0x259   :  { %v1065_v61 = vadd.f32 0.5, %v1064_v45 }
 0x25a   :  { %v1067_v32 = vmul.f32 %v1066_v44, %v1060_v48  ;;  %7434 = vst [vmem:[#allocation80_spill] sm:$0xff] %v6436_v55  ;;  %v1074_v44 = vadd.f32 %v841_v29, %v6432_v14  ;;  %v7435_v29 = vld [vmem:[#allocation54_spill] sm:$0xff] }
 0x25b   :  { %v1072_v28 = vmul.f32 %v1065_v61, %v6258_v41 }
 0x25c   :  { %v1068_v12 = vadd.f32 %v1067_v32, %v6222_v24  ;;  %v1070_v32 = vsub.f32 1.0, %v1065_v61  ;;  %v7439_v61 = vld [vmem:[#allocation58_spill] sm:$0xff] }
 0x25e   :  { %5778 = vtanh.f32 %v1068_v12 }
 0x266   :  { %v910_v48 = vpop.f32.mrb[16].mxu0  ;;  %v981_v2 = vpop.f32.mrb[12].mxu1 }
 0x267   :  { %v1075_v12 = vadd.f32 %v910_v48, %v6436_v55  ;;  %v1077_v24 = vadd.f32 %v1074_v44, %v981_v2  ;;  %v912_v26 = vpop.f32.mrb[17].mxu0  ;;  %v983_v31 = vpop.f32.mrb[13].mxu1  ;;  %v7440_v44 = vld [vmem:[#allocation59_spill] sm:$0xff]  ;;  %v7441_v48 = vld [vmem:[#allocation60_spill] sm:$0xff]  ;;  %v7442_v2 = vld [vmem:[#allocation61_spill] sm:$0xff] }
 0x268   :  { %v5779_v8 = vpop.eup %5778  ;;  %v7448_v55 = vld [vmem:[#allocation67_spill] sm:$0xff] }
 0x269   :  { %v1071_v62 = vmul.f32 %v5779_v8, %v1070_v32  ;;  %v1082_v15 = vadd.f32 %v1075_v12, %v983_v31  ;;  %v1078_v41 = vmul.f32 0.5, %v1077_v24  ;;  %v7437_v31 = vld [vmem:[#allocation56_spill] sm:$0xff]  ;;  %v7443_v32 = vld [vmem:[#allocation62_spill] sm:$0xff]  ;;  %v7444_v12 = vld [vmem:[#allocation63_spill] sm:$0xff] }
 0x26a   :  { %v7445_v8 = vld [vmem:[#allocation64_spill] sm:$0xff]  ;;  %v7446_v24 = vld [vmem:[#allocation65_spill] sm:$0xff] }
 0x26b   :  { %v6441_v45 = vadd.f32 %v1072_v28, %v1071_v62  ;;  %v7438_v62 = vld [vmem:[#allocation57_spill] sm:$0xff]  ;;  %5780 = vtanh.f32 %v1078_v41  ;;  %v7447_v28 = vld [vmem:[#allocation66_spill] sm:$0xff]  ;;  %v1083_v14 = vmul.f32 0.5, %v1082_v15 }
 0x26c   :  { %v7450_v41 = vld [vmem:[#allocation69_spill] sm:$0xff]  ;;  %v6474_v15 = vld [vmem:[%s7207_s7] ss:$0 sm:$0xff] }
 0x26d   :  { %1160 = vmatmul.mubr.f32.vlgmr.msra.gmra.mrb[4].mxu0 %v6441_v45  ;;  %1231 = vmatmul.mubr.f32.vlgmr.msra.gmra.mrb[14].mxu1 %v6441_v45  ;;  %5782 = vtanh.f32 %v1083_v14 }
 0x26e   :  { %4737 = vmatpush1.bf16.msra.mxu1 %v6254_v36  ;;  %4769 = vmatpush1.bf16.msra.mxu0 %v6256_v21 }
 0x26f   :  { %4739 = vmatprep.subr.bf16.mxu1 %v7435_v29  ;;  %4771 = vmatprep.subr.bf16.mxu0 %v7436_v59 }
 0x270   :  { %1301 = vmatprep.mubr.f32.mxu1 %v7409_v13  ;;  %1372 = vmatprep.mubr.f32.mxu0 %v7409_v13 }
 0x272   :  { %4741 = vmatpush1.bf16.msra.mxu1 %v7437_v31  ;;  %4773 = vmatpush1.bf16.msra.mxu0 %v7438_v62 }
 0x273   :  { %4743 = vmatprep.subr.bf16.mxu1 %v7439_v61  ;;  %4775 = vmatprep.subr.bf16.mxu0 %v7440_v44  ;;  %v7449_v61 = vld [vmem:[#allocation68_spill] sm:$0xff] }
 0x276   :  { %4745 = vmatpush1.bf16.msra.mxu1 %v7441_v48  ;;  %4777 = vmatpush1.bf16.msra.mxu0 %v7442_v2 }
 0x277   :  { %4747 = vmatprep.subr.bf16.mxu1 %v7443_v32  ;;  %4779 = vmatprep.subr.bf16.mxu0 %v7444_v12  ;;  %v5781_v32 = vpop.eup %5780 }
 0x27a   :  { %4749 = vmatpush1.bf16.msra.mxu1 %v7445_v8  ;;  %4781 = vmatpush1.bf16.msra.mxu0 %v7446_v24  ;;  %v1080_v24 = vmul.f32 0.5, %v5781_v32 }
 0x27b   :  { %4751 = vmatprep.subr.bf16.mxu1 %v7447_v28  ;;  %4783 = vmatprep.subr.bf16.mxu0 %v7448_v55 }
 0x27c   :  { %v1081_v14 = vadd.f32 0.5, %v1080_v24 }
 0x27e   :  { %4753 = vmatpush1.bf16.msra.mxu1 %v7449_v61  ;;  %4785 = vmatpush1.bf16.msra.mxu0 %v7450_v41 }
 0x27f   :  { %4755 = vmatprep.subr.bf16.mxu1 %v6312_v52  ;;  %4787 = vmatprep.subr.bf16.mxu0 %v6314_v57  ;;  %v7451_v52 = vsub.s32 2, %v7430_v49  ;;  %v5783_v49 = vpop.eup %5782 }
 0x281   :  { %v6478_v41 = vrot.slane %v368_v11, %v7451_v52  ;;  %v7452_v11 = vmov 0.0|0.0  }
 0x282   :  { %4757 = vmatpush1.bf16.msra.mxu1 %v6318_v63  ;;  %4789 = vmatpush1.bf16.msra.mxu0 %v6320_v7 }
 0x283   :  { %4759 = vmatprep.subr.bf16.mxu1 %v6324_v46  ;;  %4791 = vmatprep.subr.bf16.mxu0 %v6326_v54  ;;  %v1076_v54 = vadd.f32 %v912_v26, %v6478_v41 }
 0x286   :  { %v1052_v57 = vpop.f32.mrb[18].mxu0  ;;  %4761 = vmatpush1.bf16.msra.mxu1 %v6330_v4  ;;  %4793 = vmatpush1.bf16.msra.mxu0 %v6332_v5 }
 0x287   :  { %v1087_v32 = vadd.f32 %v6474_v15, %v1052_v57  ;;  %v4109_v46 = vpop.f32.mrb[19].mxu0  ;;  %4763 = vmatprep.subr.bf16.mxu1 %v6336_v16  ;;  %4795 = vmatprep.subr.bf16.mxu0 %v6338_v58  ;;  %v1085_v57 = vmul.f32 0.5, %v5783_v49  ;;  %v7454_v49 = vld [vmem:[#allocation23_spill] sm:$0xff] }
 0x289   :  { %v1088_v7 = vmul.f32 %v1087_v32, %v1081_v14  ;;  %v1086_v46 = vadd.f32 0.5, %v1085_v57  ;;  %v7453_v32 = vld [vmem:[#allocation19_spill] sm:$0xff]  ;;  %v7456_v57 = vld [vmem:[#allocation28_spill] sm:$0xff] }
 0x28a   :  { %4765 = vmatpush1.bf16.msra.mxu1 %v6342_v23  ;;  %4797 = vmatpush1.bf16.msra.mxu0 %v6344_v20 }
 0x28b   :  { %v1089_v52 = vadd.f32 %v1088_v7, %v1076_v54  ;;  %4798 = vmatprep.subr.bf16.mxu1 %v7452_v11  ;;  %4823 = vmatprep.subr.bf16.mxu0 %v6045_v10  ;;  %v1091_v7 = vsub.f32 1.0, %v1086_v46  ;;  %v1093_v26 = vmul.f32 0.0, %v1086_v46  ;;  %v7457_v46 = vld [vmem:[#allocation42_spill] sm:$0xff] }
 0x28d   :  { %5784 = vtanh.f32 %v1089_v52  ;;  %1302 = vmatmul.mubr.f32.vlgmr.msra.gmra.mrb[16].mxu1 %v6441_v45  ;;  %v7455_v52 = vld [vmem:[#allocation27_spill] sm:$0xff] }
 0x28e   :  { %4800 = vmatpush3.bf16.msra.mxu1 %v6350_v9  ;;  %4142 = vmatprep.mubr.msk.f32.mxu1 %vm5946_vm0, %v7409_v13 }
 0x28f   :  { %4801 = vmatprep.subr.bf16.mxu1 %v7452_v11 }
 0x292   :  { %4803 = vmatpush3.bf16.msra.mxu1 %v6357_v42 }
 0x293   :  { %4804 = vmatprep.subr.bf16.mxu1 %v7452_v11 }
 0x296   :  { %4806 = vmatpush3.bf16.msra.mxu1 %v6366_v0 }
 0x297   :  { %v5785_v54 = vpop.eup %5784  ;;  %4807 = vmatprep.subr.bf16.mxu1 %v7452_v11 }
 0x298   :  { %v1092_v24 = vmul.f32 %v5785_v54, %v1091_v7  ;;  %v7458_v7 = vld [vmem:[#allocation31_spill] sm:$0xff]  ;;  %v7459_v54 = vld [vmem:[#allocation32_spill] sm:$0xff] }
 0x29a   :  { %4809 = vmatpush3.bf16.msra.mxu1 %v6372_v33  ;;  %v6500_v14 = vadd.f32 %v1093_v26, %v1092_v24  ;;  %v7460_v26 = vld [vmem:[#allocation35_spill] sm:$0xff]  ;;  %v7461_v24 = vld [vmem:[#allocation36_spill] sm:$0xff] }
 0x29b   :  { %4810 = vmatprep.subr.bf16.mxu1 %v7452_v11 }
 0x29c   :  { %1373 = vmatmul.mubr.f32.vlgmr.msra.gmra.mrb[20].mxu0 %v6500_v14 }
 0x29d   :  { %4825 = vmatpush1.bf16.msra.mxu0 %v6047_v17  ;;  %1552 = vmatprep.mubr.f32.mxu0 %v7409_v13 }
 0x29e   :  { %4812 = vmatpush3.bf16.msra.mxu1 %v6378_v37  ;;  %4827 = vmatprep.subr.bf16.mxu0 %v6050_v18 }
 0x29f   :  { %4813 = vmatprep.subr.bf16.mxu1 %v7452_v11 }
 0x2a1   :  { %4829 = vmatpush1.bf16.msra.mxu0 %v6058_v27 }
 0x2a2   :  { %4815 = vmatpush3.bf16.msra.mxu1 %v6384_v25  ;;  %4831 = vmatprep.subr.bf16.mxu0 %v6061_v30  ;;  %v7468_v30 = vld [vmem:[#allocation51_spill] sm:$0xff] }
 0x2a3   :  { %4816 = vmatprep.subr.bf16.mxu1 %v7452_v11 }
 0x2a5   :  { %4833 = vmatpush1.bf16.msra.mxu0 %v6072_v40 }
 0x2a6   :  { %4818 = vmatpush3.bf16.msra.mxu1 %v6390_v47  ;;  %4835 = vmatprep.subr.bf16.mxu0 %v6075_v43 }
 0x2a7   :  { %4819 = vmatprep.subr.bf16.mxu1 %v7452_v11 }
 0x2a9   :  { %4837 = vmatpush1.bf16.msra.mxu0 %v6088_v53 }
 0x2aa   :  { %4821 = vmatpush3.bf16.msra.mxu1 %v6396_v60  ;;  %4839 = vmatprep.subr.bf16.mxu0 %v6091_v56  ;;  %v7467_v56 = vld [vmem:[#allocation49_spill] sm:$0xff] }
 0x2ab   :  { %4855 = vmatprep.subr.bf16.mxu1 %v6063_v34 }
 0x2ad   :  { %4143 = vmatmul.mubr.f32.vlgmr.msra.gmra.mrb[18].mxu1 %v6500_v14  ;;  %4841 = vmatpush1.bf16.msra.mxu0 %v6104_v3 }
 0x2ae   :  { %4857 = vmatpush1.bf16.msra.mxu1 %v6065_v38  ;;  %4843 = vmatprep.subr.bf16.mxu0 %v6107_v6 }
 0x2af   :  { %4859 = vmatprep.subr.bf16.mxu1 %v7453_v32  ;;  %1623 = vmatprep.mubr.f32.mxu1 %v7409_v13 }
 0x2b1   :  { %4845 = vmatpush1.bf16.msra.mxu0 %v6120_v19  ;;  %v7465_v19 = vld [vmem:[#allocation41_spill] sm:$0xff] }
 0x2b2   :  { %4861 = vmatpush1.bf16.msra.mxu1 %v6081_v51  ;;  %4847 = vmatprep.subr.bf16.mxu0 %v6123_v22  ;;  %v7463_v22 = vld [vmem:[#allocation39_spill] sm:$0xff] }
 0x2b3   :  { %4863 = vmatprep.subr.bf16.mxu1 %v7454_v49 }
 0x2b5   :  { %4849 = vmatpush1.bf16.msra.mxu0 %v6136_v35  ;;  %v7462_v35 = vld [vmem:[#allocation38_spill] sm:$0xff] }
 0x2b6   :  { %4865 = vmatpush1.bf16.msra.mxu1 %v6097_v1  ;;  %4851 = vmatprep.subr.bf16.mxu0 %v6139_v39  ;;  %v7464_v39 = vld [vmem:[#allocation40_spill] sm:$0xff] }
 0x2b7   :  { %4867 = vmatprep.subr.bf16.mxu1 %v7455_v52 }
 0x2b9   :  { %4853 = vmatpush1.bf16.msra.mxu0 %v6152_v50  ;;  %v7466_v50 = vld [vmem:[#allocation43_spill] sm:$0xff] }
 0x2ba   :  { %4869 = vmatpush1.bf16.msra.mxu1 %v7456_v57  ;;  %4887 = vmatprep.subr.bf16.mxu0 %v7457_v46 }
 0x2bb   :  { %4871 = vmatprep.subr.bf16.mxu1 %v7458_v7 }
 0x2be   :  { %4873 = vmatpush1.bf16.msra.mxu1 %v7459_v54 }
 0x2bf   :  { %4875 = vmatprep.subr.bf16.mxu1 %v7460_v26 }
 0x2c2   :  { %4877 = vmatpush1.bf16.msra.mxu1 %v7461_v24 }
 0x2c3   :  { %4879 = vmatprep.subr.bf16.mxu1 %v7462_v35 }
 0x2c6   :  { %4881 = vmatpush1.bf16.msra.mxu1 %v7463_v22 }
 0x2c7   :  { %4883 = vmatprep.subr.bf16.mxu1 %v7464_v39  ;;  %v7469_v39 = vld [vmem:[#allocation53_spill] sm:$0xff] }
 0x2ca   :  { %4885 = vmatpush1.bf16.msra.mxu1 %v7465_v19 }
 0x2cb   :  { %4919 = vmatprep.subr.bf16.mxu1 %v7466_v50  ;;  %v7470_v50 = vld [vmem:[#allocation46_spill] sm:$0xff] }
 0x340   :  { %v1161_v6 = vpop.f32.mrb[4].mxu0  ;;  %v1232_v3 = vpop.f32.mrb[14].mxu1 }
 0x341   :  { %v5730_v46 = vadd.f32 %v1161_v6, %v7467_v56  ;;  %v1163_v53 = vpop.f32.mrb[5].mxu0  ;;  %v1234_v43 = vpop.f32.mrb[15].mxu1  ;;  %v1459_v26 = vadd.f32 %v7469_v39, %v1232_v3  ;;  %v7473_v3 = vld [vmem:[#allocation80_spill] sm:$0xff] }
 0x342   :  { %v5731_v27 = vadd.f32 %v1163_v53, %v7468_v30 }
 0x343   :  { %v1450_v40 = vmul.f32 0.5, %v5730_v46 }
 0x344   :  { %v1455_v24 = vmul.f32 0.5, %v5731_v27 }
 0x345   :  { %5786 = vtanh.f32 %v1450_v40 }
 0x346   :  { %5788 = vtanh.f32 %v1455_v24  ;;  %v7479_v24 = vld [vmem:[#allocation72_spill] sm:$0xff] }
 0x34f   :  { %v5787_v35 = vpop.eup %5786 }
 0x350   :  { %v1452_v22 = vmul.f32 0.5, %v5787_v35  ;;  %v5789_v17 = vpop.eup %5788 }
 0x351   :  { %v1457_v10 = vmul.f32 0.5, %v5789_v17  ;;  %v7472_v17 = vld [vmem:[#allocation44_spill] sm:$0xff] }
 0x352   :  { %v1453_v18 = vadd.f32 0.5, %v1452_v22 }
 0x353   :  { %v1458_v6 = vadd.f32 0.5, %v1457_v10  ;;  %v7471_v10 = vld [vmem:[#allocation58_spill] sm:$0xff] }
 0x354   :  { %v1460_v19 = vmul.f32 %v1459_v26, %v1453_v18  ;;  %v1467_v18 = vadd.f32 %v1234_v43, %v7472_v17  ;;  %v7478_v26 = vld [vmem:[#allocation71_spill] sm:$0xff] }
 0x355   :  { %v1463_v7 = vsub.f32 1.0, %v1458_v6  ;;  %v1465_v27 = vmul.f32 %v1458_v6, %v6441_v45  ;;  %v7480_v6 = vld [vmem:[#allocation73_spill] sm:$0xff] }
 0x356   :  { %v1461_v54 = vadd.f32 %v1460_v19, %v7470_v50 }
 0x358   :  { %5790 = vtanh.f32 %v1461_v54  ;;  %v7477_v54 = vld [vmem:[#allocation70_spill] sm:$0xff] }
 0x360   :  { %v1303_v56 = vpop.f32.mrb[16].mxu1 }
 0x361   :  { %v1305_v46 = vpop.f32.mrb[17].mxu1  ;;  %v1468_v19 = vadd.f32 %v1303_v56, %v7473_v3  ;;  %v7476_v56 = vld [vmem:[#allocation69_spill] sm:$0xff] }
 0x362   :  { %v5791_v60 = vpop.eup %5790 }
 0x363   :  { %v1464_v53 = vmul.f32 %v5791_v60, %v1463_v7  ;;  %v7474_v60 = vld [vmem:[#allocation62_spill] sm:$0xff]  ;;  %v7475_v7 = vld [vmem:[#allocation65_spill] sm:$0xff] }
 0x365   :  { %v6552_v40 = vadd.f32 %v1465_v27, %v1464_v53  ;;  %v7481_v53 = vld [vmem:[#allocation74_spill] sm:$0xff] }
 0x367   :  { %1553 = vmatmul.mubr.f32.vlgmr.msra.gmra.mrb[6].mxu0 %v6552_v40  ;;  %1624 = vmatmul.mubr.f32.vlgmr.msra.gmra.mrb[20].mxu1 %v6552_v40 }
 0x368   :  { %4889 = vmatpush1.bf16.msra.mxu0 %v6254_v36  ;;  %4921 = vmatpush1.bf16.msra.mxu1 %v6256_v21 }
 0x369   :  { %4891 = vmatprep.subr.bf16.mxu0 %v7435_v29  ;;  %4923 = vmatprep.subr.bf16.mxu1 %v7436_v59 }
 0x36a   :  { %1694 = vmatprep.mubr.f32.mxu0 %v7409_v13  ;;  %1765 = vmatprep.mubr.f32.mxu1 %v7409_v13 }
 0x36c   :  { %4893 = vmatpush1.bf16.msra.mxu0 %v7437_v31  ;;  %4925 = vmatpush1.bf16.msra.mxu1 %v7438_v62 }
 0x36d   :  { %4895 = vmatprep.subr.bf16.mxu0 %v7471_v10  ;;  %4927 = vmatprep.subr.bf16.mxu1 %v7440_v44 }
 0x36f   :  { %v1374_v22 = vpop.f32.mrb[20].mxu0 }
 0x370   :  { %v1470_v35 = vadd.f32 %v1467_v18, %v1374_v22  ;;  %v1376_v39 = vpop.f32.mrb[21].mxu0  ;;  %4897 = vmatpush1.bf16.msra.mxu0 %v7441_v48  ;;  %4929 = vmatpush1.bf16.msra.mxu1 %v7442_v2 }
 0x371   :  { %v1475_v50 = vadd.f32 %v1468_v19, %v1376_v39  ;;  %4899 = vmatprep.subr.bf16.mxu0 %v7474_v60  ;;  %4931 = vmatprep.subr.bf16.mxu1 %v7444_v12 }
 0x372   :  { %v1471_v45 = vmul.f32 0.5, %v1470_v35 }
 0x373   :  { %v1476_v43 = vmul.f32 0.5, %v1475_v50  ;;  %v1469_v50 = vadd.f32 %v1305_v46, %v6478_v41 }
 0x374   :  { %5792 = vtanh.f32 %v1471_v45  ;;  %4901 = vmatpush1.bf16.msra.mxu0 %v7445_v8  ;;  %4933 = vmatpush1.bf16.msra.mxu1 %v7475_v7 }
 0x375   :  { %4903 = vmatprep.subr.bf16.mxu0 %v7447_v28  ;;  %4935 = vmatprep.subr.bf16.mxu1 %v7448_v55  ;;  %5794 = vtanh.f32 %v1476_v43 }
 0x378   :  { %4905 = vmatpush1.bf16.msra.mxu0 %v7449_v61  ;;  %4937 = vmatpush1.bf16.msra.mxu1 %v7476_v56 }
 0x379   :  { %4907 = vmatprep.subr.bf16.mxu0 %v7477_v54  ;;  %4939 = vmatprep.subr.bf16.mxu1 %v7478_v26 }
 0x37c   :  { %4909 = vmatpush1.bf16.msra.mxu0 %v6318_v63  ;;  %4941 = vmatpush1.bf16.msra.mxu1 %v7479_v24 }
 0x37d   :  { %4911 = vmatprep.subr.bf16.mxu0 %v7480_v6  ;;  %4943 = vmatprep.subr.bf16.mxu1 %v7481_v53 }
 0x37e   :  { %v5793_v27 = vpop.eup %5792 }
 0x37f   :  { %v1473_v18 = vmul.f32 0.5, %v5793_v27  ;;  %v5795_v43 = vpop.eup %5794 }
 0x380   :  { %v1445_v19 = vpop.f32.mrb[18].mxu1  ;;  %4913 = vmatpush1.bf16.msra.mxu0 %v6330_v4  ;;  %4945 = vmatpush1.bf16.msra.mxu1 %v6332_v5 }
 0x381   :  { %v1474_v22 = vadd.f32 0.5, %v1473_v18  ;;  %v1480_v35 = vadd.f32 %v6474_v15, %v1445_v19  ;;  %v4144_v39 = vpop.f32.mrb[19].mxu1  ;;  %4915 = vmatprep.subr.bf16.mxu0 %v6336_v16  ;;  %4947 = vmatprep.subr.bf16.mxu1 %v6338_v58  ;;  %v1478_v18 = vmul.f32 0.5, %v5795_v43  ;;  %v7484_v43 = vld [vmem:[#allocation10_spill] sm:$0xff] }
 0x383   :  { %v1481_v45 = vmul.f32 %v1480_v35, %v1474_v22  ;;  %v1479_v46 = vadd.f32 0.5, %v1478_v18  ;;  %v7486_v18 = vld [vmem:[#allocation11_spill] sm:$0xff] }
 0x384   :  { %4917 = vmatpush1.bf16.msra.mxu0 %v6342_v23  ;;  %4949 = vmatpush1.bf16.msra.mxu1 %v6344_v20 }
 0x385   :  { %v1482_v27 = vadd.f32 %v1481_v45, %v1469_v50  ;;  %4950 = vmatprep.subr.bf16.mxu0 %v7452_v11  ;;  %5007 = vmatprep.subr.bf16.mxu1 %v6063_v34  ;;  %v1484_v19 = vsub.f32 1.0, %v1479_v46  ;;  %v1486_v35 = vmul.f32 %v1479_v46, %v6500_v14  ;;  %v7482_v14 = vld [vmem:[#allocation79_spill] sm:$0xff]  ;;  %v7505_v34 = vld [vmem:[#allocation33_spill] sm:$0xff] }
 0x386   :  { %v7483_v45 = vld [vmem:[#allocation31_spill] sm:$0xff] }
 0x387   :  { %5796 = vtanh.f32 %v1482_v27  ;;  %1695 = vmatmul.mubr.f32.vlgmr.msra.gmra.mrb[22].mxu0 %v6552_v40  ;;  %v7485_v27 = vld [vmem:[#allocation32_spill] sm:$0xff]  ;;  %v7487_v46 = vld [vmem:[#allocation35_spill] sm:$0xff] }
 0x388   :  { %4952 = vmatpush3.bf16.msra.mxu0 %v6350_v9  ;;  %4177 = vmatprep.mubr.msk.f32.mxu0 %vm5946_vm0, %v7409_v13 }
 0x389   :  { %4953 = vmatprep.subr.bf16.mxu0 %v7452_v11 }
 0x38c   :  { %4955 = vmatpush3.bf16.msra.mxu0 %v6357_v42 }
 0x38d   :  { %4956 = vmatprep.subr.bf16.mxu0 %v7452_v11 }
 0x390   :  { %4958 = vmatpush3.bf16.msra.mxu0 %v6366_v0 }
 0x391   :  { %v5797_v22 = vpop.eup %5796  ;;  %4959 = vmatprep.subr.bf16.mxu0 %v7452_v11 }
 0x392   :  { %v1485_v39 = vmul.f32 %v5797_v22, %v1484_v19  ;;  %v7488_v19 = vld [vmem:[#allocation12_spill] sm:$0xff] }
 0x393   :  { %v7489_v22 = vld [vmem:[#allocation36_spill] sm:$0xff] }
 0x394   :  { %4961 = vmatpush3.bf16.msra.mxu0 %v6372_v33  ;;  %v6605_v50 = vadd.f32 %v1486_v35, %v1485_v39  ;;  %v7490_v35 = vld [vmem:[#allocation13_spill] sm:$0xff]  ;;  %v7491_v39 = vld [vmem:[#allocation38_spill] sm:$0xff] }
 0x395   :  { %4962 = vmatprep.subr.bf16.mxu0 %v7452_v11 }
 0x396   :  { %1766 = vmatmul.mubr.f32.vlgmr.msra.gmra.mrb[22].mxu1 %v6605_v50 }
 0x397   :  { %5009 = vmatpush1.bf16.msra.mxu1 %v6065_v38  ;;  %2016 = vmatprep.mubr.f32.mxu1 %v7409_v13  ;;  %v7503_v38 = vld [vmem:[#allocation29_spill] sm:$0xff] }
 0x398   :  { %4964 = vmatpush3.bf16.msra.mxu0 %v6378_v37  ;;  %5011 = vmatprep.subr.bf16.mxu1 %v7453_v32  ;;  %v7501_v32 = vld [vmem:[#allocation25_spill] sm:$0xff] }
 0x399   :  { %4965 = vmatprep.subr.bf16.mxu0 %v7452_v11 }
 0x39b   :  { %5013 = vmatpush1.bf16.msra.mxu1 %v6081_v51  ;;  %v7499_v51 = vld [vmem:[#allocation42_spill] sm:$0xff] }
 0x39c   :  { %4967 = vmatpush3.bf16.msra.mxu0 %v6384_v25  ;;  %5015 = vmatprep.subr.bf16.mxu1 %v7454_v49  ;;  %v7498_v49 = vld [vmem:[#allocation21_spill] sm:$0xff] }
 0x39d   :  { %4968 = vmatprep.subr.bf16.mxu0 %v7452_v11 }
 0x39f   :  { %5017 = vmatpush1.bf16.msra.mxu1 %v6097_v1  ;;  %v7496_v1 = vld [vmem:[#allocation18_spill] sm:$0xff] }
 0x3a0   :  { %4970 = vmatpush3.bf16.msra.mxu0 %v6390_v47  ;;  %5019 = vmatprep.subr.bf16.mxu1 %v7455_v52  ;;  %v7494_v52 = vld [vmem:[#allocation17_spill] sm:$0xff] }
 0x3a1   :  { %4971 = vmatprep.subr.bf16.mxu0 %v7452_v11 }
 0x3a3   :  { %5021 = vmatpush1.bf16.msra.mxu1 %v7456_v57  ;;  %v7493_v57 = vld [vmem:[#allocation39_spill] sm:$0xff] }
 0x3a4   :  { %4973 = vmatpush3.bf16.msra.mxu0 %v7482_v14  ;;  %5023 = vmatprep.subr.bf16.mxu1 %v7483_v45  ;;  %v7492_v45 = vld [vmem:[#allocation14_spill] sm:$0xff]  ;;  %v7507_v14 = vld [vmem:[#allocation37_spill] sm:$0xff] }
 0x3a5   :  { %4975 = vmatprep.subr.bf16.mxu0 %v7484_v43 }
 0x3a7   :  { %4178 = vmatmul.mubr.f32.vlgmr.msra.gmra.mrb[24].mxu0 %v6605_v50  ;;  %5025 = vmatpush1.bf16.msra.mxu1 %v7485_v27  ;;  %v7495_v27 = vld [vmem:[#allocation40_spill] sm:$0xff] }
 0x3a8   :  { %4977 = vmatpush1.bf16.msra.mxu0 %v7486_v18  ;;  %5027 = vmatprep.subr.bf16.mxu1 %v7487_v46  ;;  %v7497_v46 = vld [vmem:[#allocation41_spill] sm:$0xff] }
 0x3a9   :  { %4979 = vmatprep.subr.bf16.mxu0 %v7488_v19  ;;  %1945 = vmatprep.mubr.f32.mxu0 %v7409_v13 }
 0x3ab   :  { %5029 = vmatpush1.bf16.msra.mxu1 %v7489_v22  ;;  %v7500_v22 = vld [vmem:[#allocation22_spill] sm:$0xff] }
 0x3ac   :  { %4981 = vmatpush1.bf16.msra.mxu0 %v7490_v35  ;;  %5031 = vmatprep.subr.bf16.mxu1 %v7491_v39  ;;  %v7502_v39 = vld [vmem:[#allocation26_spill] sm:$0xff] }
 0x3ad   :  { %4983 = vmatprep.subr.bf16.mxu0 %v7492_v45 }
 0x3af   :  { %5033 = vmatpush1.bf16.msra.mxu1 %v7493_v57  ;;  %v7504_v57 = vld [vmem:[#allocation30_spill] sm:$0xff] }
 0x3b0   :  { %4985 = vmatpush1.bf16.msra.mxu0 %v7494_v52  ;;  %5035 = vmatprep.subr.bf16.mxu1 %v7495_v27  ;;  %v7506_v27 = vld [vmem:[#allocation34_spill] sm:$0xff] }
 0x3b1   :  { %4987 = vmatprep.subr.bf16.mxu0 %v7496_v1  ;;  %v7509_v1 = vld [vmem:[#allocation49_spill] sm:$0xff] }
 0x3b3   :  { %5037 = vmatpush1.bf16.msra.mxu1 %v7497_v46  ;;  %v7508_v46 = vld [vmem:[#allocation43_spill] sm:$0xff] }
 0x3b4   :  { %4989 = vmatpush1.bf16.msra.mxu0 %v7498_v49  ;;  %5039 = vmatprep.subr.bf16.mxu1 %v7499_v51 }
 0x3b5   :  { %4991 = vmatprep.subr.bf16.mxu0 %v7500_v22 }
 0x3b8   :  { %4993 = vmatpush1.bf16.msra.mxu0 %v7501_v32 }
 0x3b9   :  { %4995 = vmatprep.subr.bf16.mxu0 %v7502_v39 }
 0x3bc   :  { %4997 = vmatpush1.bf16.msra.mxu0 %v7503_v38 }
 0x3bd   :  { %4999 = vmatprep.subr.bf16.mxu0 %v7504_v57 }
 0x3c0   :  { %5001 = vmatpush1.bf16.msra.mxu0 %v7505_v34 }
 0x3c1   :  { %5003 = vmatprep.subr.bf16.mxu0 %v7506_v27 }
 0x3c4   :  { %5005 = vmatpush1.bf16.msra.mxu0 %v7507_v14  ;;  %v6657_v14 = vld [vmem:[%s7206_s6] ss:$0 sm:$0xff] }
 0x3c5   :  { %5071 = vmatprep.subr.bf16.mxu0 %v7508_v46 }
 0x43a   :  { %v1554_v49 = vpop.f32.mrb[6].mxu0  ;;  %v1625_v51 = vpop.f32.mrb[20].mxu1 }
 0x43b   :  { %v5732_v22 = vadd.f32 %v1554_v49, %v7509_v1  ;;  %v1556_v47 = vpop.f32.mrb[7].mxu0  ;;  %v1627_v32 = vpop.f32.mrb[21].mxu1  ;;  %v1852_v46 = vadd.f32 %v6657_v14, %v1625_v51  ;;  %v7510_v1 = vld [vmem:[#allocation45_spill] sm:$0xff] }
 0x43c   :  { %v5733_v39 = vadd.f32 %v1556_v47, %v7468_v30 }
 0x43d   :  { %v1843_v52 = vmul.f32 0.5, %v5732_v22 }
 0x43e   :  { %v1848_v38 = vmul.f32 0.5, %v5733_v39 }
 0x43f   :  { %5798 = vtanh.f32 %v1843_v52 }
 0x440   :  { %5800 = vtanh.f32 %v1848_v38 }
 0x449   :  { %v5799_v57 = vpop.eup %5798 }
 0x44a   :  { %v1845_v34 = vmul.f32 0.5, %v5799_v57  ;;  %v5801_v49 = vpop.eup %5800 }
 0x44b   :  { %v1850_v22 = vmul.f32 0.5, %v5801_v49 }
 0x44c   :  { %v1846_v45 = vadd.f32 0.5, %v1845_v34 }
 0x44d   :  { %v1851_v47 = vadd.f32 0.5, %v1850_v22 }
 0x44e   :  { %v1853_v27 = vmul.f32 %v1852_v46, %v1846_v45 }
 0x44f   :  { %v1856_v39 = vsub.f32 1.0, %v1851_v47  ;;  %v1858_v34 = vmul.f32 %v1851_v47, %v6552_v40 }
 0x450   :  { %v1854_v25 = vadd.f32 %v1853_v27, %v7510_v1 }
 0x452   :  { %5802 = vtanh.f32 %v1854_v25 }
 0x45a   :  { %v1696_v52 = vpop.f32.mrb[22].mxu0 }
 0x45b   :  { %v1698_v38 = vpop.f32.mrb[23].mxu0  ;;  %v1861_v51 = vadd.f32 %v1696_v52, %v7473_v3 }
 0x45c   :  { %v5803_v30 = vpop.eup %5802 }
 0x45d   :  { %v1857_v57 = vmul.f32 %v5803_v30, %v1856_v39  ;;  %v1860_v30 = vadd.f32 %v1627_v32, %v7472_v17 }
 0x45f   :  { %v6662_v35 = vadd.f32 %v1858_v34, %v1857_v57  ;;  %v1862_v57 = vadd.f32 %v1698_v38, %v6478_v41 }
 0x461   :  { %1946 = vmatmul.mubr.f32.vlgmr.msra.gmra.mrb[8].mxu0 %v6662_v35  ;;  %2017 = vmatmul.mubr.f32.vlgmr.msra.gmra.mrb[24].mxu1 %v6662_v35 }
 0x462   :  { %5041 = vmatpush1.bf16.msra.mxu1 %v6254_v36  ;;  %5073 = vmatpush1.bf16.msra.mxu0 %v6256_v21 }
 0x463   :  { %5043 = vmatprep.subr.bf16.mxu1 %v7435_v29  ;;  %5075 = vmatprep.subr.bf16.mxu0 %v7436_v59 }
 0x464   :  { %2087 = vmatprep.mubr.f32.mxu1 %v7409_v13  ;;  %2158 = vmatprep.mubr.f32.mxu0 %v7409_v13 }
 0x466   :  { %5045 = vmatpush1.bf16.msra.mxu1 %v7437_v31  ;;  %5077 = vmatpush1.bf16.msra.mxu0 %v7438_v62 }
 0x467   :  { %5047 = vmatprep.subr.bf16.mxu1 %v7471_v10  ;;  %5079 = vmatprep.subr.bf16.mxu0 %v7440_v44 }
 0x469   :  { %v1767_v1 = vpop.f32.mrb[22].mxu1 }
 0x46a   :  { %v1863_v25 = vadd.f32 %v1860_v30, %v1767_v1  ;;  %v1769_v40 = vpop.f32.mrb[23].mxu1  ;;  %5049 = vmatpush1.bf16.msra.mxu1 %v7441_v48  ;;  %5081 = vmatpush1.bf16.msra.mxu0 %v7442_v2 }
 0x46b   :  { %v1868_v45 = vadd.f32 %v1861_v51, %v1769_v40  ;;  %5051 = vmatprep.subr.bf16.mxu1 %v7474_v60  ;;  %5083 = vmatprep.subr.bf16.mxu0 %v7444_v12 }
 0x46c   :  { %v1864_v27 = vmul.f32 0.5, %v1863_v25 }
 0x46d   :  { %v1869_v32 = vmul.f32 0.5, %v1868_v45 }
 0x46e   :  { %5804 = vtanh.f32 %v1864_v27  ;;  %5053 = vmatpush1.bf16.msra.mxu1 %v7445_v8  ;;  %5085 = vmatpush1.bf16.msra.mxu0 %v7475_v7 }
 0x46f   :  { %5055 = vmatprep.subr.bf16.mxu1 %v7447_v28  ;;  %5087 = vmatprep.subr.bf16.mxu0 %v7448_v55  ;;  %5806 = vtanh.f32 %v1869_v32 }
 0x472   :  { %5057 = vmatpush1.bf16.msra.mxu1 %v7449_v61  ;;  %5089 = vmatpush1.bf16.msra.mxu0 %v7476_v56 }
 0x473   :  { %5059 = vmatprep.subr.bf16.mxu1 %v7477_v54  ;;  %5091 = vmatprep.subr.bf16.mxu0 %v7478_v26 }
 0x476   :  { %5061 = vmatpush1.bf16.msra.mxu1 %v6318_v63  ;;  %5093 = vmatpush1.bf16.msra.mxu0 %v7479_v24 }
 0x477   :  { %5063 = vmatprep.subr.bf16.mxu1 %v7480_v6  ;;  %5095 = vmatprep.subr.bf16.mxu0 %v7481_v53 }
 0x478   :  { %v5805_v46 = vpop.eup %5804 }
 0x479   :  { %v1866_v49 = vmul.f32 0.5, %v5805_v46  ;;  %v5807_v30 = vpop.eup %5806  ;;  %v7512_v46 = vld [vmem:[#allocation77_spill] sm:$0xff] }
 0x47a   :  { %v1838_v22 = vpop.f32.mrb[24].mxu0  ;;  %5065 = vmatpush1.bf16.msra.mxu1 %v6330_v4  ;;  %5097 = vmatpush1.bf16.msra.mxu0 %v6332_v5  ;;  %v1871_v1 = vmul.f32 0.5, %v5807_v30  ;;  %v7520_v30 = vld [vmem:[#allocation15_spill] sm:$0xff] }
 0x47b   :  { %v1867_v47 = vadd.f32 0.5, %v1866_v49  ;;  %v1873_v52 = vadd.f32 %v6474_v15, %v1838_v22  ;;  %v4179_v39 = vpop.f32.mrb[25].mxu0  ;;  %5067 = vmatprep.subr.bf16.mxu1 %v6336_v16  ;;  %5099 = vmatprep.subr.bf16.mxu0 %v6338_v58  ;;  %v7513_v49 = vld [vmem:[#allocation14_spill] sm:$0xff]  ;;  %v7514_v22 = vld [vmem:[#allocation17_spill] sm:$0xff] }
 0x47c   :  { %v1872_v38 = vadd.f32 0.5, %v1871_v1  ;;  %v7517_v39 = vld [vmem:[#allocation21_spill] sm:$0xff]  ;;  %v7522_v1 = vld [vmem:[#allocation16_spill] sm:$0xff] }
 0x47d   :  { %v1874_v34 = vmul.f32 %v1873_v52, %v1867_v47  ;;  %v7515_v47 = vld [vmem:[#allocation78_spill] sm:$0xff] }
 0x47e   :  { %5069 = vmatpush1.bf16.msra.mxu1 %v6342_v23  ;;  %5101 = vmatpush1.bf16.msra.mxu0 %v6344_v20  ;;  %v1877_v25 = vsub.f32 1.0, %v1872_v38  ;;  %v1879_v45 = vmul.f32 %v1872_v38, %v6605_v50  ;;  %v7511_v50 = vld [vmem:[#allocation13_spill] sm:$0xff]  ;;  %v7516_v52 = vld [vmem:[#allocation18_spill] sm:$0xff] }
 0x47f   :  { %v1875_v51 = vadd.f32 %v1874_v34, %v1862_v57  ;;  %5102 = vmatprep.subr.bf16.mxu1 %v7452_v11  ;;  %5127 = vmatprep.subr.bf16.mxu0 %v7484_v43  ;;  %v7518_v57 = vld [vmem:[#allocation79_spill] sm:$0xff]  ;;  %v7519_v34 = vld [vmem:[#allocation22_spill] sm:$0xff] }
 0x480   :  { %v7523_v38 = vld [vmem:[#allocation26_spill] sm:$0xff]  ;;  %v7541_v43 = vld [vmem:[#allocation39_spill] sm:$0xff] }
 0x481   :  { %5808 = vtanh.f32 %v1875_v51  ;;  %2088 = vmatmul.mubr.f32.vlgmr.msra.gmra.mrb[26].mxu1 %v6662_v35  ;;  %v7521_v51 = vld [vmem:[#allocation25_spill] sm:$0xff] }
 0x482   :  { %5104 = vmatpush3.bf16.msra.mxu1 %v6350_v9  ;;  %4212 = vmatprep.mubr.msk.f32.mxu1 %vm5946_vm0, %v7409_v13 }
 0x483   :  { %5105 = vmatprep.subr.bf16.mxu1 %v7452_v11 }
 0x486   :  { %5107 = vmatpush3.bf16.msra.mxu1 %v6357_v42 }
 0x487   :  { %5108 = vmatprep.subr.bf16.mxu1 %v7452_v11 }
 0x48a   :  { %5110 = vmatpush3.bf16.msra.mxu1 %v6366_v0 }
 0x48b   :  { %v5809_v40 = vpop.eup %5808  ;;  %5111 = vmatprep.subr.bf16.mxu1 %v7452_v11 }
 0x48c   :  { %v1878_v27 = vmul.f32 %v5809_v40, %v1877_v25  ;;  %v7524_v25 = vld [vmem:[#allocation19_spill] sm:$0xff]  ;;  %v7525_v40 = vld [vmem:[#allocation29_spill] sm:$0xff] }
 0x48e   :  { %5113 = vmatpush3.bf16.msra.mxu1 %v6372_v33  ;;  %v6715_v32 = vadd.f32 %v1879_v45, %v1878_v27  ;;  %v7526_v45 = vld [vmem:[#allocation20_spill] sm:$0xff]  ;;  %v7527_v27 = vld [vmem:[#allocation30_spill] sm:$0xff] }
 0x48f   :  { %5114 = vmatprep.subr.bf16.mxu1 %v7452_v11 }
 0x490   :  { %2159 = vmatmul.mubr.f32.vlgmr.msra.gmra.mrb[26].mxu0 %v6715_v32 }
 0x491   :  { %5129 = vmatpush1.bf16.msra.mxu0 %v7486_v18  ;;  %2338 = vmatprep.mubr.f32.mxu0 %v7409_v13  ;;  %v7539_v18 = vld [vmem:[#allocation36_spill] sm:$0xff] }
 0x492   :  { %5116 = vmatpush3.bf16.msra.mxu1 %v6378_v37  ;;  %5131 = vmatprep.subr.bf16.mxu0 %v7488_v19  ;;  %v7537_v19 = vld [vmem:[#allocation32_spill] sm:$0xff] }
 0x493   :  { %5117 = vmatprep.subr.bf16.mxu1 %v7452_v11 }
 0x495   :  { %5133 = vmatpush1.bf16.msra.mxu0 %v7511_v50  ;;  %v7535_v50 = vld [vmem:[#allocation42_spill] sm:$0xff] }
 0x496   :  { %5119 = vmatpush3.bf16.msra.mxu1 %v7512_v46  ;;  %5135 = vmatprep.subr.bf16.mxu0 %v7513_v49  ;;  %v7534_v49 = vld [vmem:[#allocation28_spill] sm:$0xff] }
 0x497   :  { %5120 = vmatprep.subr.bf16.mxu1 %v7452_v11 }
 0x499   :  { %5137 = vmatpush1.bf16.msra.mxu0 %v7514_v22  ;;  %v7532_v22 = vld [vmem:[#allocation27_spill] sm:$0xff] }
 0x49a   :  { %5122 = vmatpush3.bf16.msra.mxu1 %v7515_v47  ;;  %5139 = vmatprep.subr.bf16.mxu0 %v7516_v52  ;;  %v7530_v52 = vld [vmem:[#allocation24_spill] sm:$0xff] }
 0x49b   :  { %5123 = vmatprep.subr.bf16.mxu1 %v7452_v11 }
 0x49d   :  { %5141 = vmatpush1.bf16.msra.mxu0 %v7517_v39  ;;  %v7529_v39 = vld [vmem:[#allocation33_spill] sm:$0xff] }
 0x49e   :  { %5125 = vmatpush3.bf16.msra.mxu1 %v7518_v57  ;;  %5143 = vmatprep.subr.bf16.mxu0 %v7519_v34  ;;  %v7528_v34 = vld [vmem:[#allocation23_spill] sm:$0xff]  ;;  %v7543_v57 = vld [vmem:[#allocation41_spill] sm:$0xff] }
 0x49f   :  { %5159 = vmatprep.subr.bf16.mxu1 %v7520_v30 }
 0x4a1   :  { %4213 = vmatmul.mubr.f32.vlgmr.msra.gmra.mrb[28].mxu1 %v6715_v32  ;;  %5145 = vmatpush1.bf16.msra.mxu0 %v7521_v51  ;;  %v7531_v51 = vld [vmem:[#allocation34_spill] sm:$0xff] }
 0x4a2   :  { %5161 = vmatpush1.bf16.msra.mxu1 %v7522_v1  ;;  %5147 = vmatprep.subr.bf16.mxu0 %v7523_v38  ;;  %v7533_v38 = vld [vmem:[#allocation37_spill] sm:$0xff] }
 0x4a3   :  { %5163 = vmatprep.subr.bf16.mxu1 %v7524_v25  ;;  %2409 = vmatprep.mubr.f32.mxu1 %v7409_v13 }
 0x4a5   :  { %5149 = vmatpush1.bf16.msra.mxu0 %v7525_v40  ;;  %v7536_v40 = vld [vmem:[#allocation31_spill] sm:$0xff] }
 0x4a6   :  { %5165 = vmatpush1.bf16.msra.mxu1 %v7526_v45  ;;  %5151 = vmatprep.subr.bf16.mxu0 %v7527_v27  ;;  %v7538_v27 = vld [vmem:[#allocation35_spill] sm:$0xff] }
 0x4a7   :  { %5167 = vmatprep.subr.bf16.mxu1 %v7528_v34 }
 0x4a9   :  { %5153 = vmatpush1.bf16.msra.mxu0 %v7529_v39  ;;  %v7540_v39 = vld [vmem:[#allocation38_spill] sm:$0xff] }
 0x4aa   :  { %5169 = vmatpush1.bf16.msra.mxu1 %v7530_v52  ;;  %5155 = vmatprep.subr.bf16.mxu0 %v7531_v51  ;;  %v7542_v51 = vld [vmem:[#allocation40_spill] sm:$0xff] }
 0x4ab   :  { %5171 = vmatprep.subr.bf16.mxu1 %v7532_v22  ;;  %v7545_v22 = vld [vmem:[#allocation49_spill] sm:$0xff] }
 0x4ad   :  { %5157 = vmatpush1.bf16.msra.mxu0 %v7533_v38  ;;  %v7544_v38 = vld [vmem:[#allocation43_spill] sm:$0xff] }
 0x4ae   :  { %5173 = vmatpush1.bf16.msra.mxu1 %v7534_v49  ;;  %5191 = vmatprep.subr.bf16.mxu0 %v7535_v50 }
 0x4af   :  { %5175 = vmatprep.subr.bf16.mxu1 %v7536_v40 }
 0x4b2   :  { %5177 = vmatpush1.bf16.msra.mxu1 %v7537_v19 }
 0x4b3   :  { %5179 = vmatprep.subr.bf16.mxu1 %v7538_v27  ;;  %v7546_v27 = vld [vmem:[#allocation51_spill] sm:$0xff] }
 0x4b6   :  { %5181 = vmatpush1.bf16.msra.mxu1 %v7539_v18 }
 0x4b7   :  { %5183 = vmatprep.subr.bf16.mxu1 %v7540_v39 }
 0x4ba   :  { %5185 = vmatpush1.bf16.msra.mxu1 %v7541_v43 }
 0x4bb   :  { %5187 = vmatprep.subr.bf16.mxu1 %v7542_v51 }
 0x4be   :  { %5189 = vmatpush1.bf16.msra.mxu1 %v7543_v57 }
 0x4bf   :  { %5223 = vmatprep.subr.bf16.mxu1 %v7544_v38  ;;  %v7547_v38 = vld [vmem:[#allocation48_spill] sm:$0xff] }
 0x534   :  { %v1947_v49 = vpop.f32.mrb[8].mxu0  ;;  %v2018_v50 = vpop.f32.mrb[24].mxu1 }
 0x535   :  { %v5734_v40 = vadd.f32 %v1947_v49, %v7545_v22  ;;  %v1949_v47 = vpop.f32.mrb[9].mxu0  ;;  %v2020_v19 = vpop.f32.mrb[25].mxu1  ;;  %v2245_v51 = vadd.f32 %v6657_v14, %v2018_v50 }
 0x536   :  { %v5735_v34 = vadd.f32 %v1949_v47, %v7546_v27 }
 0x537   :  { %v2236_v52 = vmul.f32 0.5, %v5734_v40 }
 0x538   :  { %v2241_v18 = vmul.f32 0.5, %v5735_v34 }
 0x539   :  { %5810 = vtanh.f32 %v2236_v52 }
 0x53a   :  { %5812 = vtanh.f32 %v2241_v18 }
 0x543   :  { %v5811_v39 = vpop.eup %5810 }
 0x544   :  { %v2238_v43 = vmul.f32 0.5, %v5811_v39  ;;  %v5813_v45 = vpop.eup %5812 }
 0x545   :  { %v2243_v37 = vmul.f32 0.5, %v5813_v45 }
 0x546   :  { %v2239_v46 = vadd.f32 0.5, %v2238_v43 }
 0x547   :  { %v2244_v49 = vadd.f32 0.5, %v2243_v37 }
 0x548   :  { %v2246_v57 = vmul.f32 %v2245_v51, %v2239_v46 }
 0x549   :  { %v2249_v1 = vsub.f32 1.0, %v2244_v49  ;;  %v2251_v52 = vmul.f32 %v2244_v49, %v6662_v35 }
 0x54a   :  { %v2247_v25 = vadd.f32 %v2246_v57, %v7547_v38 }
 0x54c   :  { %5814 = vtanh.f32 %v2247_v25 }
 0x554   :  { %v2089_v22 = vpop.f32.mrb[26].mxu1 }
 0x555   :  { %v2091_v40 = vpop.f32.mrb[27].mxu1  ;;  %v2254_v37 = vadd.f32 %v2089_v22, %v7473_v3 }
 0x556   :  { %v5815_v33 = vpop.eup %5814  ;;  %v2255_v25 = vadd.f32 %v2091_v40, %v6478_v41 }
 0x557   :  { %v2250_v47 = vmul.f32 %v5815_v33, %v2249_v1  ;;  %v2253_v33 = vadd.f32 %v2020_v19, %v7472_v17 }
 0x559   :  { %v6767_v18 = vadd.f32 %v2251_v52, %v2250_v47 }
 0x55b   :  { %2339 = vmatmul.mubr.f32.vlgmr.msra.gmra.mrb[10].mxu0 %v6767_v18  ;;  %2410 = vmatmul.mubr.f32.vlgmr.msra.gmra.mrb[30].mxu1 %v6767_v18 }
 0x55c   :  { %5193 = vmatpush1.bf16.msra.mxu0 %v6254_v36  ;;  %5225 = vmatpush1.bf16.msra.mxu1 %v6256_v21 }
 0x55d   :  { %5195 = vmatprep.subr.bf16.mxu0 %v7435_v29  ;;  %5227 = vmatprep.subr.bf16.mxu1 %v7436_v59 }
 0x55e   :  { %2480 = vmatprep.mubr.f32.mxu0 %v7409_v13  ;;  %2551 = vmatprep.mubr.f32.mxu1 %v7409_v13 }
 0x560   :  { %5197 = vmatpush1.bf16.msra.mxu0 %v7437_v31  ;;  %5229 = vmatpush1.bf16.msra.mxu1 %v7438_v62 }
 0x561   :  { %5199 = vmatprep.subr.bf16.mxu0 %v7471_v10  ;;  %5231 = vmatprep.subr.bf16.mxu1 %v7440_v44 }
 0x563   :  { %v2160_v43 = vpop.f32.mrb[26].mxu0 }
 0x564   :  { %v2256_v35 = vadd.f32 %v2253_v33, %v2160_v43  ;;  %v2162_v50 = vpop.f32.mrb[27].mxu0  ;;  %5201 = vmatpush1.bf16.msra.mxu0 %v7441_v48  ;;  %5233 = vmatpush1.bf16.msra.mxu1 %v7442_v2 }
 0x565   :  { %v2261_v46 = vadd.f32 %v2254_v37, %v2162_v50  ;;  %5203 = vmatprep.subr.bf16.mxu0 %v7474_v60  ;;  %5235 = vmatprep.subr.bf16.mxu1 %v7444_v12 }
 0x566   :  { %v2257_v39 = vmul.f32 0.5, %v2256_v35  ;;  %v7548_v35 = vld [vmem:[#allocation75_spill] sm:$0xff] }
 0x567   :  { %v2262_v19 = vmul.f32 0.5, %v2261_v46  ;;  %v7549_v46 = vld [vmem:[#allocation16_spill] sm:$0xff] }
 0x568   :  { %5816 = vtanh.f32 %v2257_v39  ;;  %5205 = vmatpush1.bf16.msra.mxu0 %v7445_v8  ;;  %5237 = vmatpush1.bf16.msra.mxu1 %v7475_v7  ;;  %v7550_v39 = vld [vmem:[#allocation76_spill] sm:$0xff] }
 0x569   :  { %5207 = vmatprep.subr.bf16.mxu0 %v7447_v28  ;;  %5239 = vmatprep.subr.bf16.mxu1 %v7448_v55  ;;  %5818 = vtanh.f32 %v2262_v19  ;;  %v7551_v19 = vld [vmem:[#allocation19_spill] sm:$0xff] }
 0x56c   :  { %5209 = vmatpush1.bf16.msra.mxu0 %v7449_v61  ;;  %5241 = vmatpush1.bf16.msra.mxu1 %v7476_v56 }
 0x56d   :  { %5211 = vmatprep.subr.bf16.mxu0 %v7477_v54  ;;  %5243 = vmatprep.subr.bf16.mxu1 %v7478_v26 }
 0x570   :  { %5213 = vmatpush1.bf16.msra.mxu0 %v6318_v63  ;;  %5245 = vmatpush1.bf16.msra.mxu1 %v7479_v24 }
 0x571   :  { %5215 = vmatprep.subr.bf16.mxu0 %v7480_v6  ;;  %5247 = vmatprep.subr.bf16.mxu1 %v7481_v53 }
 0x572   :  { %v5817_v22 = vpop.eup %5816 }
 0x573   :  { %v2259_v57 = vmul.f32 0.5, %v5817_v22  ;;  %v5819_v49 = vpop.eup %5818  ;;  %v7553_v22 = vld [vmem:[#allocation77_spill] sm:$0xff] }
 0x574   :  { %v2231_v34 = vpop.f32.mrb[28].mxu1  ;;  %5217 = vmatpush1.bf16.msra.mxu0 %v6330_v4  ;;  %5249 = vmatpush1.bf16.msra.mxu1 %v6332_v5 }
 0x575   :  { %v2260_v51 = vadd.f32 0.5, %v2259_v57  ;;  %v2266_v1 = vadd.f32 %v6474_v15, %v2231_v34  ;;  %v4214_v38 = vpop.f32.mrb[29].mxu1  ;;  %5219 = vmatprep.subr.bf16.mxu0 %v6336_v16  ;;  %5251 = vmatprep.subr.bf16.mxu1 %v6338_v58  ;;  %v2264_v15 = vmul.f32 0.5, %v5819_v49  ;;  %v7554_v57 = vld [vmem:[#allocation23_spill] sm:$0xff]  ;;  %v7555_v34 = vld [vmem:[#allocation24_spill] sm:$0xff]  ;;  %v7561_v49 = vld [vmem:[#allocation10_spill] sm:$0xff] }
 0x576   :  { %v7558_v38 = vld [vmem:[#allocation28_spill] sm:$0xff] }
 0x577   :  { %v2267_v45 = vmul.f32 %v2266_v1, %v2260_v51  ;;  %v2265_v40 = vadd.f32 0.5, %v2264_v15  ;;  %v7556_v51 = vld [vmem:[#allocation78_spill] sm:$0xff]  ;;  %v7557_v1 = vld [vmem:[#allocation27_spill] sm:$0xff] }
 0x578   :  { %5221 = vmatpush1.bf16.msra.mxu0 %v6342_v23  ;;  %5253 = vmatpush1.bf16.msra.mxu1 %v6344_v20  ;;  %v7563_v15 = vld [vmem:[#allocation11_spill] sm:$0xff] }
 0x579   :  { %v2268_v47 = vadd.f32 %v2267_v45, %v2255_v25  ;;  %5254 = vmatprep.subr.bf16.mxu0 %v7452_v11  ;;  %5311 = vmatprep.subr.bf16.mxu1 %v7520_v30  ;;  %v2270_v52 = vsub.f32 1.0, %v2265_v40  ;;  %v2272_v37 = vmul.f32 %v2265_v40, %v6715_v32  ;;  %v7552_v32 = vld [vmem:[#allocation20_spill] sm:$0xff]  ;;  %v7559_v25 = vld [vmem:[#allocation79_spill] sm:$0xff]  ;;  %v7582_v30 = vld [vmem:[#allocation33_spill] sm:$0xff] }
 0x57a   :  { %v7560_v45 = vld [vmem:[#allocation31_spill] sm:$0xff] }
 0x57b   :  { %5820 = vtanh.f32 %v2268_v47  ;;  %2481 = vmatmul.mubr.f32.vlgmr.msra.gmra.mrb[28].mxu0 %v6767_v18  ;;  %v7562_v47 = vld [vmem:[#allocation32_spill] sm:$0xff]  ;;  %v7564_v40 = vld [vmem:[#allocation35_spill] sm:$0xff] }
 0x57c   :  { %5256 = vmatpush3.bf16.msra.mxu0 %v6350_v9  ;;  %4247 = vmatprep.mubr.msk.f32.mxu0 %vm5946_vm0, %v7409_v13 }
 0x57d   :  { %5257 = vmatprep.subr.bf16.mxu0 %v7452_v11 }
 0x580   :  { %5259 = vmatpush3.bf16.msra.mxu0 %v6357_v42 }
 0x581   :  { %5260 = vmatprep.subr.bf16.mxu0 %v7452_v11 }
 0x584   :  { %5262 = vmatpush3.bf16.msra.mxu0 %v6366_v0 }
 0x585   :  { %v5821_v33 = vpop.eup %5820  ;;  %5263 = vmatprep.subr.bf16.mxu0 %v7452_v11 }
 0x586   :  { %v2271_v43 = vmul.f32 %v5821_v33, %v2270_v52  ;;  %v7565_v52 = vld [vmem:[#allocation12_spill] sm:$0xff] }
 0x587   :  { %v7566_v33 = vld [vmem:[#allocation36_spill] sm:$0xff] }
 0x588   :  { %5265 = vmatpush3.bf16.msra.mxu0 %v7548_v35  ;;  %v6820_v50 = vadd.f32 %v2272_v37, %v2271_v43  ;;  %v7567_v37 = vld [vmem:[#allocation13_spill] sm:$0xff]  ;;  %v7568_v43 = vld [vmem:[#allocation38_spill] sm:$0xff] }
 0x589   :  { %5266 = vmatprep.subr.bf16.mxu0 %v7452_v11 }
 0x58a   :  { %2552 = vmatmul.mubr.f32.vlgmr.msra.gmra.mrb[32].mxu1 %v6820_v50 }
 0x58b   :  { %5313 = vmatpush1.bf16.msra.mxu1 %v7549_v46  ;;  %2802 = vmatprep.mubr.f32.mxu1 %v7409_v13  ;;  %v7580_v46 = vld [vmem:[#allocation29_spill] sm:$0xff] }
 0x58c   :  { %5268 = vmatpush3.bf16.msra.mxu0 %v7550_v39  ;;  %5315 = vmatprep.subr.bf16.mxu1 %v7551_v19  ;;  %v7578_v19 = vld [vmem:[#allocation25_spill] sm:$0xff] }
 0x58d   :  { %5269 = vmatprep.subr.bf16.mxu0 %v7452_v11 }
 0x58f   :  { %5317 = vmatpush1.bf16.msra.mxu1 %v7552_v32  ;;  %v7576_v32 = vld [vmem:[#allocation42_spill] sm:$0xff] }
 0x590   :  { %5271 = vmatpush3.bf16.msra.mxu0 %v7553_v22  ;;  %5319 = vmatprep.subr.bf16.mxu1 %v7554_v57  ;;  %v7575_v57 = vld [vmem:[#allocation21_spill] sm:$0xff] }
 0x591   :  { %5272 = vmatprep.subr.bf16.mxu0 %v7452_v11 }
 0x593   :  { %5321 = vmatpush1.bf16.msra.mxu1 %v7555_v34  ;;  %v7573_v34 = vld [vmem:[#allocation18_spill] sm:$0xff] }
 0x594   :  { %5274 = vmatpush3.bf16.msra.mxu0 %v7556_v51  ;;  %5323 = vmatprep.subr.bf16.mxu1 %v7557_v1  ;;  %v7571_v1 = vld [vmem:[#allocation17_spill] sm:$0xff] }
 0x595   :  { %5275 = vmatprep.subr.bf16.mxu0 %v7452_v11 }
 0x597   :  { %5325 = vmatpush1.bf16.msra.mxu1 %v7558_v38  ;;  %v7570_v38 = vld [vmem:[#allocation39_spill] sm:$0xff] }
 0x598   :  { %5277 = vmatpush3.bf16.msra.mxu0 %v7559_v25  ;;  %5327 = vmatprep.subr.bf16.mxu1 %v7560_v45  ;;  %v7569_v45 = vld [vmem:[#allocation14_spill] sm:$0xff]  ;;  %v7584_v25 = vld [vmem:[#allocation37_spill] sm:$0xff] }
 0x599   :  { %5279 = vmatprep.subr.bf16.mxu0 %v7561_v49 }
 0x59b   :  { %4248 = vmatmul.mubr.f32.vlgmr.msra.gmra.mrb[30].mxu0 %v6820_v50  ;;  %5329 = vmatpush1.bf16.msra.mxu1 %v7562_v47  ;;  %v7572_v47 = vld [vmem:[#allocation40_spill] sm:$0xff] }
 0x59c   :  { %5281 = vmatpush1.bf16.msra.mxu0 %v7563_v15  ;;  %5331 = vmatprep.subr.bf16.mxu1 %v7564_v40  ;;  %v7574_v40 = vld [vmem:[#allocation41_spill] sm:$0xff] }
 0x59d   :  { %5283 = vmatprep.subr.bf16.mxu0 %v7565_v52  ;;  %2731 = vmatprep.mubr.f32.mxu0 %v7409_v13 }
 0x59f   :  { %5333 = vmatpush1.bf16.msra.mxu1 %v7566_v33  ;;  %v7577_v33 = vld [vmem:[#allocation22_spill] sm:$0xff] }
 0x5a0   :  { %5285 = vmatpush1.bf16.msra.mxu0 %v7567_v37  ;;  %5335 = vmatprep.subr.bf16.mxu1 %v7568_v43  ;;  %v7579_v43 = vld [vmem:[#allocation26_spill] sm:$0xff] }
 0x5a1   :  { %5287 = vmatprep.subr.bf16.mxu0 %v7569_v45 }
 0x5a3   :  { %5337 = vmatpush1.bf16.msra.mxu1 %v7570_v38  ;;  %v7581_v38 = vld [vmem:[#allocation30_spill] sm:$0xff] }
 0x5a4   :  { %5289 = vmatpush1.bf16.msra.mxu0 %v7571_v1  ;;  %5339 = vmatprep.subr.bf16.mxu1 %v7572_v47  ;;  %v7583_v47 = vld [vmem:[#allocation34_spill] sm:$0xff] }
 0x5a5   :  { %5291 = vmatprep.subr.bf16.mxu0 %v7573_v34  ;;  %v7586_v34 = vld [vmem:[#allocation49_spill] sm:$0xff] }
 0x5a7   :  { %5341 = vmatpush1.bf16.msra.mxu1 %v7574_v40  ;;  %v7585_v40 = vld [vmem:[#allocation43_spill] sm:$0xff] }
 0x5a8   :  { %5293 = vmatpush1.bf16.msra.mxu0 %v7575_v57  ;;  %5343 = vmatprep.subr.bf16.mxu1 %v7576_v32 }
 0x5a9   :  { %5295 = vmatprep.subr.bf16.mxu0 %v7577_v33 }
 0x5ac   :  { %5297 = vmatpush1.bf16.msra.mxu0 %v7578_v19 }
 0x5ad   :  { %5299 = vmatprep.subr.bf16.mxu0 %v7579_v43 }
 0x5b0   :  { %5301 = vmatpush1.bf16.msra.mxu0 %v7580_v46 }
 0x5b1   :  { %5303 = vmatprep.subr.bf16.mxu0 %v7581_v38 }
 0x5b4   :  { %5305 = vmatpush1.bf16.msra.mxu0 %v7582_v30 }
 0x5b5   :  { %5307 = vmatprep.subr.bf16.mxu0 %v7583_v47 }
 0x5b8   :  { %5309 = vmatpush1.bf16.msra.mxu0 %v7584_v25 }
 0x5b9   :  { %5375 = vmatprep.subr.bf16.mxu0 %v7585_v40  ;;  %v7587_v40 = vld [vmem:[#allocation47_spill] sm:$0xff] }
 0x62e   :  { %v2340_v57 = vpop.f32.mrb[10].mxu0  ;;  %v2411_v32 = vpop.f32.mrb[30].mxu1 }
 0x62f   :  { %v5736_v33 = vadd.f32 %v2340_v57, %v7586_v34  ;;  %v2342_v51 = vpop.f32.mrb[11].mxu0  ;;  %v2413_v19 = vpop.f32.mrb[31].mxu1  ;;  %v2638_v47 = vadd.f32 %v6657_v14, %v2411_v32 }
 0x630   :  { %v5737_v43 = vadd.f32 %v2342_v51, %v7546_v27 }
 0x631   :  { %v2629_v1 = vmul.f32 0.5, %v5736_v33 }
 0x632   :  { %v2634_v46 = vmul.f32 0.5, %v5737_v43 }
 0x633   :  { %5822 = vtanh.f32 %v2629_v1 }
 0x634   :  { %5824 = vtanh.f32 %v2634_v46 }
 0x63d   :  { %v5823_v38 = vpop.eup %5822 }
 0x63e   :  { %v2631_v30 = vmul.f32 0.5, %v5823_v38  ;;  %v5825_v22 = vpop.eup %5824 }
 0x63f   :  { %v2636_v52 = vmul.f32 0.5, %v5825_v22 }
 0x640   :  { %v2632_v45 = vadd.f32 0.5, %v2631_v30  ;;  %v2646_v30 = vadd.f32 %v2413_v19, %v7472_v17 }
 0x641   :  { %v2637_v57 = vadd.f32 0.5, %v2636_v52 }
 0x642   :  { %v2639_v25 = vmul.f32 %v2638_v47, %v2632_v45 }
 0x643   :  { %v2642_v39 = vsub.f32 1.0, %v2637_v57  ;;  %v2644_v1 = vmul.f32 %v2637_v57, %v6767_v18 }
 0x644   :  { %v2640_v37 = vadd.f32 %v2639_v25, %v7587_v40  ;;  %v6909_v40 = vld [vmem:[%s7207_s7] ss:$0 sm:$0xff] }
 0x646   :  { %5826 = vtanh.f32 %v2640_v37 }
 0x64e   :  { %v2482_v34 = vpop.f32.mrb[28].mxu0 }
 0x64f   :  { %v2484_v33 = vpop.f32.mrb[29].mxu0  ;;  %v2647_v18 = vadd.f32 %v2482_v34, %v7473_v3 }
 0x650   :  { %v5827_v15 = vpop.eup %5826  ;;  %v2648_v43 = vadd.f32 %v2484_v33, %v6478_v41 }
 0x651   :  { %v2643_v51 = vmul.f32 %v5827_v15, %v2642_v39 }
 0x653   :  { %v6872_v46 = vadd.f32 %v2644_v1, %v2643_v51 }
 0x655   :  { %2732 = vmatmul.mubr.f32.vlgmr.msra.gmra.mrb[12].mxu0 %v6872_v46  ;;  %2803 = vmatmul.mubr.f32.vlgmr.msra.gmra.mrb[34].mxu1 %v6872_v46 }
 0x656   :  { %5345 = vmatpush1.bf16.msra.mxu1 %v6254_v36  ;;  %5377 = vmatpush1.bf16.msra.mxu0 %v6256_v21 }
 0x657   :  { %5347 = vmatprep.subr.bf16.mxu1 %v7435_v29  ;;  %5379 = vmatprep.subr.bf16.mxu0 %v7436_v59 }
 0x658   :  { %2873 = vmatprep.mubr.f32.mxu1 %v7409_v13  ;;  %2944 = vmatprep.mubr.f32.mxu0 %v7409_v13 }
 0x65a   :  { %5349 = vmatpush1.bf16.msra.mxu1 %v7437_v31  ;;  %5381 = vmatpush1.bf16.msra.mxu0 %v7438_v62 }
 0x65b   :  { %5351 = vmatprep.subr.bf16.mxu1 %v7471_v10  ;;  %5383 = vmatprep.subr.bf16.mxu0 %v7440_v44 }
 0x65d   :  { %v2553_v39 = vpop.f32.mrb[32].mxu1 }
 0x65e   :  { %v2649_v32 = vadd.f32 %v2646_v30, %v2553_v39  ;;  %v2555_v22 = vpop.f32.mrb[33].mxu1  ;;  %5353 = vmatpush1.bf16.msra.mxu1 %v7441_v48  ;;  %5385 = vmatpush1.bf16.msra.mxu0 %v7442_v2 }
 0x65f   :  { %v2654_v38 = vadd.f32 %v2647_v18, %v2555_v22  ;;  %5355 = vmatprep.subr.bf16.mxu1 %v7474_v60  ;;  %5387 = vmatprep.subr.bf16.mxu0 %v7444_v12 }
 0x660   :  { %v2650_v25 = vmul.f32 0.5, %v2649_v32 }
 0x661   :  { %v2655_v19 = vmul.f32 0.5, %v2654_v38  ;;  %v7588_v38 = vld [vmem:[#allocation11_spill] sm:$0xff] }
 0x662   :  { %5828 = vtanh.f32 %v2650_v25  ;;  %5357 = vmatpush1.bf16.msra.mxu1 %v7445_v8  ;;  %5389 = vmatpush1.bf16.msra.mxu0 %v7475_v7  ;;  %v7589_v25 = vld [vmem:[#allocation76_spill] sm:$0xff] }
 0x663   :  { %5359 = vmatprep.subr.bf16.mxu1 %v7447_v28  ;;  %5391 = vmatprep.subr.bf16.mxu0 %v7448_v55  ;;  %5830 = vtanh.f32 %v2655_v19  ;;  %v7590_v19 = vld [vmem:[#allocation12_spill] sm:$0xff] }
 0x666   :  { %5361 = vmatpush1.bf16.msra.mxu1 %v7449_v61  ;;  %5393 = vmatpush1.bf16.msra.mxu0 %v7476_v56 }
 0x667   :  { %5363 = vmatprep.subr.bf16.mxu1 %v7477_v54  ;;  %5395 = vmatprep.subr.bf16.mxu0 %v7478_v26 }
 0x66a   :  { %5365 = vmatpush1.bf16.msra.mxu1 %v6318_v63  ;;  %5397 = vmatpush1.bf16.msra.mxu0 %v7479_v24 }
 0x66b   :  { %5367 = vmatprep.subr.bf16.mxu1 %v7480_v6  ;;  %5399 = vmatprep.subr.bf16.mxu0 %v7481_v53 }
 0x66c   :  { %v5829_v34 = vpop.eup %5828 }
 0x66d   :  { %v2652_v45 = vmul.f32 0.5, %v5829_v34  ;;  %v5831_v51 = vpop.eup %5830  ;;  %v7592_v34 = vld [vmem:[#allocation77_spill] sm:$0xff] }
 0x66e   :  { %v2624_v47 = vpop.f32.mrb[30].mxu0  ;;  %5369 = vmatpush1.bf16.msra.mxu1 %v6330_v4  ;;  %5401 = vmatpush1.bf16.msra.mxu0 %v6332_v5  ;;  %v2657_v30 = vmul.f32 0.5, %v5831_v51  ;;  %v7600_v51 = vld [vmem:[#allocation15_spill] sm:$0xff] }
 0x66f   :  { %v2653_v15 = vadd.f32 0.5, %v2652_v45  ;;  %v2659_v52 = vadd.f32 %v6909_v40, %v2624_v47  ;;  %v4249_v37 = vpop.f32.mrb[31].mxu0  ;;  %5371 = vmatprep.subr.bf16.mxu1 %v6336_v16  ;;  %5403 = vmatprep.subr.bf16.mxu0 %v6338_v58  ;;  %v7593_v45 = vld [vmem:[#allocation14_spill] sm:$0xff]  ;;  %v7594_v47 = vld [vmem:[#allocation17_spill] sm:$0xff] }
 0x670   :  { %v2658_v33 = vadd.f32 0.5, %v2657_v30  ;;  %v7597_v37 = vld [vmem:[#allocation21_spill] sm:$0xff]  ;;  %v7602_v30 = vld [vmem:[#allocation16_spill] sm:$0xff] }
 0x671   :  { %v2660_v57 = vmul.f32 %v2659_v52, %v2653_v15  ;;  %v7595_v15 = vld [vmem:[#allocation78_spill] sm:$0xff] }
 0x672   :  { %5373 = vmatpush1.bf16.msra.mxu1 %v6342_v23  ;;  %5405 = vmatpush1.bf16.msra.mxu0 %v6344_v20  ;;  %v2663_v18 = vsub.f32 1.0, %v2658_v33  ;;  %v2665_v39 = vmul.f32 %v2658_v33, %v6820_v50  ;;  %v7591_v50 = vld [vmem:[#allocation13_spill] sm:$0xff]  ;;  %v7596_v52 = vld [vmem:[#allocation18_spill] sm:$0xff] }
 0x673   :  { %v2661_v1 = vadd.f32 %v2660_v57, %v2648_v43  ;;  %5406 = vmatprep.subr.bf16.mxu1 %v7452_v11  ;;  %5431 = vmatprep.subr.bf16.mxu0 %v7561_v49  ;;  %v7598_v43 = vld [vmem:[#allocation79_spill] sm:$0xff]  ;;  %v7599_v57 = vld [vmem:[#allocation22_spill] sm:$0xff] }
 0x674   :  { %v7603_v33 = vld [vmem:[#allocation26_spill] sm:$0xff] }
 0x675   :  { %5832 = vtanh.f32 %v2661_v1  ;;  %2874 = vmatmul.mubr.f32.vlgmr.msra.gmra.mrb[36].mxu1 %v6872_v46  ;;  %v7601_v1 = vld [vmem:[#allocation25_spill] sm:$0xff] }
 0x676   :  { %5408 = vmatpush3.bf16.msra.mxu1 %v6350_v9  ;;  %4282 = vmatprep.mubr.msk.f32.mxu1 %vm5946_vm0, %v7409_v13 }
 0x677   :  { %5409 = vmatprep.subr.bf16.mxu1 %v7452_v11 }
 0x67a   :  { %5411 = vmatpush3.bf16.msra.mxu1 %v6357_v42 }
 0x67b   :  { %5412 = vmatprep.subr.bf16.mxu1 %v7452_v11 }
 0x67e   :  { %5414 = vmatpush3.bf16.msra.mxu1 %v6366_v0 }
 0x67f   :  { %v5833_v49 = vpop.eup %5832  ;;  %5415 = vmatprep.subr.bf16.mxu1 %v7452_v11 }
 0x680   :  { %v2664_v32 = vmul.f32 %v5833_v49, %v2663_v18  ;;  %v7604_v18 = vld [vmem:[#allocation19_spill] sm:$0xff]  ;;  %v7605_v49 = vld [vmem:[#allocation29_spill] sm:$0xff] }
 0x682   :  { %5417 = vmatpush3.bf16.msra.mxu1 %v7548_v35  ;;  %v6930_v22 = vadd.f32 %v2665_v39, %v2664_v32  ;;  %v7606_v39 = vld [vmem:[#allocation20_spill] sm:$0xff]  ;;  %v7607_v32 = vld [vmem:[#allocation30_spill] sm:$0xff] }
 0x683   :  { %5418 = vmatprep.subr.bf16.mxu1 %v7452_v11 }
 0x684   :  { %2945 = vmatmul.mubr.f32.vlgmr.msra.gmra.mrb[32].mxu0 %v6930_v22 }
 0x685   :  { %5433 = vmatpush1.bf16.msra.mxu0 %v7588_v38  ;;  %3124 = vmatprep.mubr.f32.mxu0 %v7409_v13  ;;  %v7608_v38 = vld [vmem:[#allocation23_spill] sm:$0xff] }
 0x686   :  { %5420 = vmatpush3.bf16.msra.mxu1 %v7589_v25  ;;  %5435 = vmatprep.subr.bf16.mxu0 %v7590_v19  ;;  %v7609_v19 = vld [vmem:[#allocation33_spill] sm:$0xff] }
 0x687   :  { %5421 = vmatprep.subr.bf16.mxu1 %v7452_v11 }
 0x689   :  { %5437 = vmatpush1.bf16.msra.mxu0 %v7591_v50  ;;  %v7610_v50 = vld [vmem:[#allocation24_spill] sm:$0xff] }
 0x68a   :  { %5423 = vmatpush3.bf16.msra.mxu1 %v7592_v34  ;;  %5439 = vmatprep.subr.bf16.mxu0 %v7593_v45  ;;  %v7611_v45 = vld [vmem:[#allocation34_spill] sm:$0xff] }
 0x68b   :  { %5424 = vmatprep.subr.bf16.mxu1 %v7452_v11 }
 0x68d   :  { %5441 = vmatpush1.bf16.msra.mxu0 %v7594_v47  ;;  %v7612_v47 = vld [vmem:[#allocation27_spill] sm:$0xff] }
 0x68e   :  { %5426 = vmatpush3.bf16.msra.mxu1 %v7595_v15  ;;  %5443 = vmatprep.subr.bf16.mxu0 %v7596_v52  ;;  %v7613_v52 = vld [vmem:[#allocation37_spill] sm:$0xff] }
 0x68f   :  { %5427 = vmatprep.subr.bf16.mxu1 %v7452_v11  ;;  %v7625_v15 = vld [vmem:[#allocation49_spill] sm:$0xff] }
 0x691   :  { %5445 = vmatpush1.bf16.msra.mxu0 %v7597_v37  ;;  %v7614_v37 = vld [vmem:[#allocation28_spill] sm:$0xff] }
 0x692   :  { %5429 = vmatpush3.bf16.msra.mxu1 %v7598_v43  ;;  %5447 = vmatprep.subr.bf16.mxu0 %v7599_v57  ;;  %v7615_v57 = vld [vmem:[#allocation42_spill] sm:$0xff]  ;;  %v7621_v43 = vld [vmem:[#allocation39_spill] sm:$0xff] }
 0x693   :  { %5463 = vmatprep.subr.bf16.mxu1 %v7600_v51 }
 0x695   :  { %4283 = vmatmul.mubr.f32.vlgmr.msra.gmra.mrb[38].mxu1 %v6930_v22  ;;  %5449 = vmatpush1.bf16.msra.mxu0 %v7601_v1  ;;  %v7616_v1 = vld [vmem:[#allocation31_spill] sm:$0xff] }
 0x696   :  { %5465 = vmatpush1.bf16.msra.mxu1 %v7602_v30  ;;  %5451 = vmatprep.subr.bf16.mxu0 %v7603_v33  ;;  %v7617_v33 = vld [vmem:[#allocation32_spill] sm:$0xff] }
 0x697   :  { %5467 = vmatprep.subr.bf16.mxu1 %v7604_v18  ;;  %3195 = vmatprep.mubr.f32.mxu1 %v7409_v13 }
 0x699   :  { %5453 = vmatpush1.bf16.msra.mxu0 %v7605_v49  ;;  %v7618_v49 = vld [vmem:[#allocation35_spill] sm:$0xff] }
 0x69a   :  { %5469 = vmatpush1.bf16.msra.mxu1 %v7606_v39  ;;  %5455 = vmatprep.subr.bf16.mxu0 %v7607_v32  ;;  %v7619_v32 = vld [vmem:[#allocation36_spill] sm:$0xff] }
 0x69b   :  { %5471 = vmatprep.subr.bf16.mxu1 %v7608_v38 }
 0x69d   :  { %5457 = vmatpush1.bf16.msra.mxu0 %v7609_v19  ;;  %v7620_v19 = vld [vmem:[#allocation38_spill] sm:$0xff] }
 0x69e   :  { %5473 = vmatpush1.bf16.msra.mxu1 %v7610_v50  ;;  %5459 = vmatprep.subr.bf16.mxu0 %v7611_v45  ;;  %v7622_v45 = vld [vmem:[#allocation40_spill] sm:$0xff] }
 0x69f   :  { %5475 = vmatprep.subr.bf16.mxu1 %v7612_v47  ;;  %v7623_v47 = vld [vmem:[#allocation41_spill] sm:$0xff] }
 0x6a1   :  { %5461 = vmatpush1.bf16.msra.mxu0 %v7613_v52  ;;  %v7624_v52 = vld [vmem:[#allocation43_spill] sm:$0xff] }
 0x6a2   :  { %5477 = vmatpush1.bf16.msra.mxu1 %v7614_v37  ;;  %5495 = vmatprep.subr.bf16.mxu0 %v7615_v57 }
 0x6a3   :  { %5479 = vmatprep.subr.bf16.mxu1 %v7616_v1 }
 0x6a6   :  { %5481 = vmatpush1.bf16.msra.mxu1 %v7617_v33 }
 0x6a7   :  { %5483 = vmatprep.subr.bf16.mxu1 %v7618_v49 }
 0x6aa   :  { %5485 = vmatpush1.bf16.msra.mxu1 %v7619_v32 }
 0x6ab   :  { %5487 = vmatprep.subr.bf16.mxu1 %v7620_v19 }
 0x6ae   :  { %5489 = vmatpush1.bf16.msra.mxu1 %v7621_v43 }
 0x6af   :  { %5491 = vmatprep.subr.bf16.mxu1 %v7622_v45 }
 0x6b2   :  { %5493 = vmatpush1.bf16.msra.mxu1 %v7623_v47 }
 0x6b3   :  { %5527 = vmatprep.subr.bf16.mxu1 %v7624_v52  ;;  %v7626_v52 = vld [vmem:[#allocation52_spill] sm:$0xff] }
 0x728   :  { %v2733_v37 = vpop.f32.mrb[12].mxu0  ;;  %v2804_v57 = vpop.f32.mrb[34].mxu1 }
 0x729   :  { %v5738_v1 = vadd.f32 %v2733_v37, %v7625_v15  ;;  %v2735_v50 = vpop.f32.mrb[13].mxu0  ;;  %v2806_v33 = vpop.f32.mrb[35].mxu1  ;;  %v3031_v45 = vadd.f32 %v6657_v14, %v2804_v57 }
 0x72a   :  { %v5739_v49 = vadd.f32 %v2735_v50, %v7546_v27  ;;  %v3039_v14 = vadd.f32 %v2806_v33, %v7472_v17 }
 0x72b   :  { %v3022_v38 = vmul.f32 0.5, %v5738_v1 }
 0x72c   :  { %v3027_v32 = vmul.f32 0.5, %v5739_v49 }
 0x72d   :  { %5834 = vtanh.f32 %v3022_v38 }
 0x72e   :  { %5836 = vtanh.f32 %v3027_v32 }
 0x737   :  { %v5835_v19 = vpop.eup %5834 }
 0x738   :  { %v3024_v43 = vmul.f32 0.5, %v5835_v19  ;;  %v5837_v39 = vpop.eup %5836 }
 0x739   :  { %v3029_v25 = vmul.f32 0.5, %v5837_v39 }
 0x73a   :  { %v3025_v34 = vadd.f32 0.5, %v3024_v43 }
 0x73b   :  { %v3030_v37 = vadd.f32 0.5, %v3029_v25 }
 0x73c   :  { %v3032_v47 = vmul.f32 %v3031_v45, %v3025_v34 }
 0x73d   :  { %v3035_v30 = vsub.f32 1.0, %v3030_v37  ;;  %v3037_v38 = vmul.f32 %v3030_v37, %v6872_v46 }
 0x73e   :  { %v3033_v18 = vadd.f32 %v3032_v47, %v7626_v52 }
 0x740   :  { %5838 = vtanh.f32 %v3033_v18 }
 0x748   :  { %v2875_v15 = vpop.f32.mrb[36].mxu1 }
 0x749   :  { %v2877_v1 = vpop.f32.mrb[37].mxu1 }
 0x74a   :  { %v5839_v35 = vpop.eup %5838  ;;  %v3041_v19 = vadd.f32 %v2877_v1, %v6478_v41 }
 0x74b   :  { %v3036_v50 = vmul.f32 %v5839_v35, %v3035_v30  ;;  %v3040_v35 = vadd.f32 %v2875_v15, %v7473_v3 }
 0x74d   :  { %v6982_v49 = vadd.f32 %v3037_v38, %v3036_v50 }
 0x74f   :  { %3125 = vmatmul.mubr.f32.vlgmr.msra.gmra.mrb[14].mxu0 %v6982_v49  ;;  %3196 = vmatmul.mubr.f32.vlgmr.msra.gmra.mrb[40].mxu1 %v6982_v49 }
 0x750   :  { %5497 = vmatpush1.bf16.msra.mxu0 %v6254_v36  ;;  %5529 = vmatpush1.bf16.msra.mxu1 %v6256_v21 }
 0x751   :  { %5499 = vmatprep.subr.bf16.mxu0 %v7435_v29  ;;  %5531 = vmatprep.subr.bf16.mxu1 %v7436_v59 }
 0x752   :  { %3266 = vmatprep.mubr.f32.mxu0 %v7409_v13  ;;  %3337 = vmatprep.mubr.f32.mxu1 %v7409_v13 }
 0x754   :  { %5501 = vmatpush1.bf16.msra.mxu0 %v7437_v31  ;;  %5533 = vmatpush1.bf16.msra.mxu1 %v7438_v62 }
 0x755   :  { %5503 = vmatprep.subr.bf16.mxu0 %v7471_v10  ;;  %5535 = vmatprep.subr.bf16.mxu1 %v7440_v44 }
 0x757   :  { %v2946_v46 = vpop.f32.mrb[32].mxu0 }
 0x758   :  { %v3042_v25 = vadd.f32 %v3039_v14, %v2946_v46  ;;  %v2948_v34 = vpop.f32.mrb[33].mxu0  ;;  %5505 = vmatpush1.bf16.msra.mxu0 %v7441_v48  ;;  %5537 = vmatpush1.bf16.msra.mxu1 %v7442_v2  ;;  %v7627_v46 = vld [vmem:[#allocation75_spill] sm:$0xff] }
 0x759   :  { %v3047_v43 = vadd.f32 %v3040_v35, %v2948_v34  ;;  %5507 = vmatprep.subr.bf16.mxu0 %v7474_v60  ;;  %5539 = vmatprep.subr.bf16.mxu1 %v7444_v12  ;;  %v7628_v34 = vld [vmem:[#allocation16_spill] sm:$0xff] }
 0x75a   :  { %v3043_v30 = vmul.f32 0.5, %v3042_v25 }
 0x75b   :  { %v3048_v15 = vmul.f32 0.5, %v3047_v43  ;;  %v7629_v43 = vld [vmem:[#allocation76_spill] sm:$0xff] }
 0x75c   :  { %5840 = vtanh.f32 %v3043_v30  ;;  %5509 = vmatpush1.bf16.msra.mxu0 %v7445_v8  ;;  %5541 = vmatpush1.bf16.msra.mxu1 %v7475_v7  ;;  %v7630_v30 = vld [vmem:[#allocation19_spill] sm:$0xff] }
 0x75d   :  { %5511 = vmatprep.subr.bf16.mxu0 %v7447_v28  ;;  %5543 = vmatprep.subr.bf16.mxu1 %v7448_v55  ;;  %5842 = vtanh.f32 %v3048_v15  ;;  %v7632_v15 = vld [vmem:[#allocation77_spill] sm:$0xff] }
 0x760   :  { %5513 = vmatpush1.bf16.msra.mxu0 %v7449_v61  ;;  %5545 = vmatpush1.bf16.msra.mxu1 %v7476_v56 }
 0x761   :  { %5515 = vmatprep.subr.bf16.mxu0 %v7477_v54  ;;  %5547 = vmatprep.subr.bf16.mxu1 %v7478_v26 }
 0x764   :  { %5517 = vmatpush1.bf16.msra.mxu0 %v6318_v63  ;;  %5549 = vmatpush1.bf16.msra.mxu1 %v7479_v24 }
 0x765   :  { %5519 = vmatprep.subr.bf16.mxu0 %v7480_v6  ;;  %5551 = vmatprep.subr.bf16.mxu1 %v7481_v53 }
 0x766   :  { %v5841_v18 = vpop.eup %5840 }
 0x767   :  { %v3045_v39 = vmul.f32 0.5, %v5841_v18  ;;  %v5843_v52 = vpop.eup %5842  ;;  %v7633_v18 = vld [vmem:[#allocation23_spill] sm:$0xff] }
 0x768   :  { %v3017_v47 = vpop.f32.mrb[38].mxu1  ;;  %5521 = vmatpush1.bf16.msra.mxu0 %v6330_v4  ;;  %5553 = vmatpush1.bf16.msra.mxu1 %v6332_v5  ;;  %v3050_v50 = vmul.f32 0.5, %v5843_v52  ;;  %v7641_v52 = vld [vmem:[#allocation32_spill] sm:$0xff] }
 0x769   :  { %v3046_v57 = vadd.f32 0.5, %v3045_v39  ;;  %v3052_v33 = vadd.f32 %v6909_v40, %v3017_v47  ;;  %v4284_v32 = vpop.f32.mrb[39].mxu1  ;;  %5523 = vmatprep.subr.bf16.mxu0 %v6336_v16  ;;  %5555 = vmatprep.subr.bf16.mxu1 %v6338_v58  ;;  %v7634_v39 = vld [vmem:[#allocation24_spill] sm:$0xff]  ;;  %v7635_v47 = vld [vmem:[#allocation78_spill] sm:$0xff] }
 0x76a   :  { %v3051_v1 = vadd.f32 0.5, %v3050_v50  ;;  %v7638_v32 = vld [vmem:[#allocation79_spill] sm:$0xff]  ;;  %v7643_v50 = vld [vmem:[#allocation36_spill] sm:$0xff] }
 0x76b   :  { %v3053_v45 = vmul.f32 %v3052_v33, %v3046_v57  ;;  %v7636_v57 = vld [vmem:[#allocation27_spill] sm:$0xff]  ;;  %v7637_v33 = vld [vmem:[#allocation28_spill] sm:$0xff] }
 0x76c   :  { %5525 = vmatpush1.bf16.msra.mxu0 %v6342_v23  ;;  %5557 = vmatpush1.bf16.msra.mxu1 %v6344_v20  ;;  %v3056_v38 = vsub.f32 1.0, %v3051_v1  ;;  %v3058_v14 = vmul.f32 %v3051_v1, %v6930_v22  ;;  %v7631_v22 = vld [vmem:[#allocation20_spill] sm:$0xff]  ;;  %v7644_v1 = vld [vmem:[#allocation38_spill] sm:$0xff] }
 0x76d   :  { %v3054_v37 = vadd.f32 %v3053_v45, %v3041_v19  ;;  %5558 = vmatprep.subr.bf16.mxu0 %v7452_v11  ;;  %5583 = vmatprep.subr.bf16.mxu1 %v7600_v51  ;;  %v7639_v19 = vld [vmem:[#allocation31_spill] sm:$0xff]  ;;  %v7640_v45 = vld [vmem:[#allocation42_spill] sm:$0xff] }
 0x76f   :  { %5844 = vtanh.f32 %v3054_v37  ;;  %3267 = vmatmul.mubr.f32.vlgmr.msra.gmra.mrb[34].mxu0 %v6982_v49  ;;  %v7642_v37 = vld [vmem:[#allocation35_spill] sm:$0xff] }
 0x770   :  { %5560 = vmatpush3.bf16.msra.mxu0 %v6350_v9  ;;  %4317 = vmatprep.mubr.msk.f32.mxu0 %vm5946_vm0, %v7409_v13 }
 0x771   :  { %5561 = vmatprep.subr.bf16.mxu0 %v7452_v11 }
 0x774   :  { %5563 = vmatpush3.bf16.msra.mxu0 %v6357_v42 }
 0x775   :  { %5564 = vmatprep.subr.bf16.mxu0 %v7452_v11 }
 0x778   :  { %5566 = vmatpush3.bf16.msra.mxu0 %v6366_v0 }
 0x779   :  { %v5845_v51 = vpop.eup %5844  ;;  %5567 = vmatprep.subr.bf16.mxu0 %v7452_v11 }
 0x77a   :  { %v3057_v35 = vmul.f32 %v5845_v51, %v3056_v38  ;;  %v7645_v38 = vld [vmem:[#allocation39_spill] sm:$0xff]  ;;  %v7646_v51 = vld [vmem:[#allocation40_spill] sm:$0xff] }
 0x77c   :  { %5569 = vmatpush3.bf16.msra.mxu0 %v7627_v46  ;;  %v7035_v25 = vadd.f32 %v3058_v14, %v3057_v35 }
 0x77d   :  { %5570 = vmatprep.subr.bf16.mxu0 %v7452_v11 }
 0x77e   :  { %3338 = vmatmul.mubr.f32.vlgmr.msra.gmra.mrb[42].mxu1 %v7035_v25 }
 0x77f   :  { %5585 = vmatpush1.bf16.msra.mxu1 %v7628_v34  ;;  %3517 = vmatprep.mubr.f32.mxu1 %v7409_v13 }
 0x780   :  { %5572 = vmatpush3.bf16.msra.mxu0 %v7629_v43  ;;  %5587 = vmatprep.subr.bf16.mxu1 %v7630_v30  ;;  %v7650_v30 = vld [vmem:[#allocation50_spill] sm:$0xff] }
 0x781   :  { %5573 = vmatprep.subr.bf16.mxu0 %v7452_v11 }
 0x783   :  { %5589 = vmatpush1.bf16.msra.mxu1 %v7631_v22 }
 0x784   :  { %5575 = vmatpush3.bf16.msra.mxu0 %v7632_v15  ;;  %5591 = vmatprep.subr.bf16.mxu1 %v7633_v18 }
 0x785   :  { %5576 = vmatprep.subr.bf16.mxu0 %v7452_v11 }
 0x787   :  { %5593 = vmatpush1.bf16.msra.mxu1 %v7634_v39 }
 0x788   :  { %5578 = vmatpush3.bf16.msra.mxu0 %v7635_v47  ;;  %5595 = vmatprep.subr.bf16.mxu1 %v7636_v57 }
 0x789   :  { %5579 = vmatprep.subr.bf16.mxu0 %v7452_v11 }
 0x78b   :  { %5597 = vmatpush1.bf16.msra.mxu1 %v7637_v33 }
 0x78c   :  { %5581 = vmatpush3.bf16.msra.mxu0 %v7638_v32  ;;  %5599 = vmatprep.subr.bf16.mxu1 %v7639_v19 }
 0x78d   :  { %5615 = vmatprep.subr.bf16.mxu0 %v7640_v45 }
 0x78f   :  { %4318 = vmatmul.mubr.f32.vlgmr.msra.gmra.mrb[36].mxu0 %v7035_v25  ;;  %5601 = vmatpush1.bf16.msra.mxu1 %v7641_v52 }
 0x790   :  { %5617 = vmatpush1.bf16.msra.mxu0 %v6254_v36  ;;  %5603 = vmatprep.subr.bf16.mxu1 %v7642_v37  ;;  %v7647_v36 = vld [vmem:[#allocation41_spill] sm:$0xff] }
 0x791   :  { %5619 = vmatprep.subr.bf16.mxu0 %v7435_v29  ;;  %3587 = vmatprep.mubr.f32.mxu0 %v7409_v13  ;;  %v7648_v29 = vld [vmem:[#allocation43_spill] sm:$0xff] }
 0x793   :  { %5605 = vmatpush1.bf16.msra.mxu1 %v7643_v50 }
 0x794   :  { %5621 = vmatpush1.bf16.msra.mxu0 %v7437_v31  ;;  %5607 = vmatprep.subr.bf16.mxu1 %v7644_v1 }
 0x795   :  { %5623 = vmatprep.subr.bf16.mxu0 %v7471_v10 }
 0x797   :  { %5609 = vmatpush1.bf16.msra.mxu1 %v7645_v38 }
 0x798   :  { %5625 = vmatpush1.bf16.msra.mxu0 %v7441_v48  ;;  %5611 = vmatprep.subr.bf16.mxu1 %v7646_v51 }
 0x799   :  { %5627 = vmatprep.subr.bf16.mxu0 %v7474_v60 }
 0x79b   :  { %5613 = vmatpush1.bf16.msra.mxu1 %v7647_v36 }
 0x79c   :  { %5629 = vmatpush1.bf16.msra.mxu0 %v7445_v8  ;;  %5647 = vmatprep.subr.bf16.mxu1 %v7648_v29  ;;  %v7649_v8 = vld [vmem:[#allocation49_spill] sm:$0xff]  ;;  %v3760_v29 = vld [vmem:[%s7208_s8 + $0x20] sm:$0xff] }
 0x79d   :  { %5631 = vmatprep.subr.bf16.mxu0 %v7447_v28 }
 0x7a0   :  { %5633 = vmatpush1.bf16.msra.mxu0 %v7449_v61 }
 0x7a1   :  { %5635 = vmatprep.subr.bf16.mxu0 %v7477_v54 }
 0x7a4   :  { %5637 = vmatpush1.bf16.msra.mxu0 %v6318_v63 }
 0x7a5   :  { %5639 = vmatprep.subr.bf16.mxu0 %v7480_v6 }
 0x7a8   :  { %5641 = vmatpush1.bf16.msra.mxu0 %v6330_v4 }
 0x7a9   :  { %5643 = vmatprep.subr.bf16.mxu0 %v6336_v16  ;;  %v5866_v16 = vld [vmem:[%s7206_s6] ss:$0 sm:$0xff] }
 0x7ac   :  { %5645 = vmatpush1.bf16.msra.mxu0 %v6342_v23 }
 0x7ad   :  { %5678 = vmatprep.subr.bf16.mxu0 %v7452_v11 }
 0x822   :  { %v3126_v31 = vpop.f32.mrb[14].mxu0  ;;  %v3197_v48 = vpop.f32.mrb[40].mxu1 }
 0x823   :  { %v5740_v28 = vadd.f32 %v3126_v31, %v7649_v8  ;;  %v3128_v10 = vpop.f32.mrb[15].mxu0  ;;  %v3199_v61 = vpop.f32.mrb[41].mxu1  ;;  %v3424_v23 = vadd.f32 %v5866_v16, %v3197_v48  ;;  %v3761_v31 = vld [vmem:[%s7208_s8 + $0x28] sm:$0xff]  ;;  %v3762_v8 = vld [vmem:[%s7208_s8 + $0x30] sm:$0xff] }
 0x824   :  { %v5741_v54 = vadd.f32 %v3128_v10, %v7546_v27  ;;  %v5709_v48 = vpack.c.bf16 %v3761_v31, %v3760_v29  ;;  %v3769_v16 = vld [vmem:[%s7208_s8 + $0x68] sm:$0xff] }
 0x825   :  { %v3415_v60 = vmul.f32 0.5, %v5740_v28  ;;  %v3763_v28 = vld [vmem:[%s7208_s8 + $0x38] sm:$0xff] }
 0x826   :  { %v3420_v63 = vmul.f32 0.5, %v5741_v54  ;;  %v5712_v10 = vpack.c.bf16 %v3763_v28, %v3762_v8 }
 0x827   :  { %5846 = vtanh.f32 %v3415_v60  ;;  %v3765_v60 = vld [vmem:[%s7208_s8 + $0x48] sm:$0xff] }
 0x828   :  { %5848 = vtanh.f32 %v3420_v63  ;;  %v3766_v63 = vld [vmem:[%s7208_s8 + $0x50] sm:$0xff] }
 0x831   :  { %v5847_v6 = vpop.eup %5846 }
 0x832   :  { %v3417_v4 = vmul.f32 0.5, %v5847_v6  ;;  %v5849_v34 = vpop.eup %5848  ;;  %v3767_v6 = vld [vmem:[%s7208_s8 + $0x58] sm:$0xff] }
 0x833   :  { %v3422_v18 = vmul.f32 0.5, %v5849_v34  ;;  %v3771_v34 = vld [vmem:[%s7208_s8 + $0x78] sm:$0xff] }
 0x834   :  { %v3418_v14 = vadd.f32 0.5, %v3417_v4  ;;  %v5718_v4 = vpack.c.bf16 %v3767_v6, %v3766_v63 }
 0x835   :  { %v3423_v39 = vadd.f32 0.5, %v3422_v18 }
 0x836   :  { %v3425_v35 = vmul.f32 %v3424_v23, %v3418_v14  ;;  %v3768_v14 = vld [vmem:[%s7208_s8 + $0x60] sm:$0xff] }
 0x837   :  { %v3428_v27 = vsub.f32 1.0, %v3423_v39  ;;  %v3430_v52 = vmul.f32 %v3423_v39, %v6982_v49  ;;  %v5721_v23 = vpack.c.bf16 %v3769_v16, %v3768_v14 }
 0x838   :  { %v3426_v22 = vadd.f32 %v3425_v35, %v7650_v30  ;;  %v3770_v35 = vld [vmem:[%s7208_s8 + $0x70] sm:$0xff] }
 0x839   :  { %v5724_v30 = vpack.c.bf16 %v3771_v34, %v3770_v35 }
 0x83a   :  { %5850 = vtanh.f32 %v3426_v22 }
 0x842   :  { %v3268_v57 = vpop.f32.mrb[34].mxu0 }
 0x843   :  { %v3270_v33 = vpop.f32.mrb[35].mxu0 }
 0x844   :  { %v5851_v19 = vpop.eup %5850 }
 0x845   :  { %v3429_v45 = vmul.f32 %v5851_v19, %v3428_v27 }
 0x847   :  { %v3431_v37 = vadd.f32 %v3430_v52, %v3429_v45 }
 0x849   :  { %3518 = vmatmul.mubr.f32.vlgmr.msra.gmra.mrb[44].mxu1 %v3431_v37  ;;  %3588 = vmatmul.mubr.f32.vlgmr.msra.gmra.mrb[38].mxu0 %v3431_v37 }
 0x84a   :  { %5649 = vmatpush1.bf16.msra.mxu1 %v6256_v21  ;;  %5680 = vmatpush3.bf16.msra.mxu0 %v6350_v9  ;;  %v3432_v21 = vadd.f32 %v3199_v61, %v7472_v17  ;;  %v3433_v9 = vadd.f32 %v3268_v57, %v7473_v3  ;;  %v3764_v61 = vld [vmem:[%s7208_s8 + $0x40] sm:$0xff] }
 0x84b   :  { %5651 = vmatprep.subr.bf16.mxu1 %v7436_v59  ;;  %5681 = vmatprep.subr.bf16.mxu0 %v7452_v11  ;;  %v5715_v54 = vpack.c.bf16 %v3765_v60, %v3764_v61 }
 0x84c   :  { %3658 = vmatprep.mubr.f32.mxu1 %v7409_v13  ;;  %4352 = vmatprep.mubr.msk.f32.mxu0 %vm5946_vm0, %v7409_v13 }
 0x84e   :  { %5653 = vmatpush1.bf16.msra.mxu1 %v7438_v62  ;;  %5683 = vmatpush3.bf16.msra.mxu0 %v6357_v42 }
 0x84f   :  { %5655 = vmatprep.subr.bf16.mxu1 %v7440_v44  ;;  %5684 = vmatprep.subr.bf16.mxu0 %v7452_v11 }
 0x851   :  { %v3339_v59 = vpop.f32.mrb[42].mxu1 }
 0x852   :  { %v3435_v49 = vadd.f32 %v3432_v21, %v3339_v59  ;;  %v3341_v50 = vpop.f32.mrb[43].mxu1  ;;  %5657 = vmatpush1.bf16.msra.mxu1 %v7442_v2  ;;  %5686 = vmatpush3.bf16.msra.mxu0 %v6366_v0 }
 0x853   :  { %v3440_v1 = vadd.f32 %v3433_v9, %v3341_v50  ;;  %5659 = vmatprep.subr.bf16.mxu1 %v7444_v12  ;;  %5687 = vmatprep.subr.bf16.mxu0 %v7452_v11 }
 0x854   :  { %v3436_v42 = vmul.f32 0.5, %v3435_v49 }
 0x855   :  { %v3441_v62 = vmul.f32 0.5, %v3440_v1 }
 0x856   :  { %5852 = vtanh.f32 %v3436_v42  ;;  %5661 = vmatpush1.bf16.msra.mxu1 %v7475_v7  ;;  %5689 = vmatpush3.bf16.msra.mxu0 %v7627_v46 }
 0x857   :  { %5663 = vmatprep.subr.bf16.mxu1 %v7448_v55  ;;  %5690 = vmatprep.subr.bf16.mxu0 %v7452_v11  ;;  %5854 = vtanh.f32 %v3441_v62 }
 0x85a   :  { %5665 = vmatpush1.bf16.msra.mxu1 %v7476_v56  ;;  %5692 = vmatpush3.bf16.msra.mxu0 %v7629_v43  ;;  %v3434_v56 = vadd.f32 %v3270_v33, %v6478_v41 }
 0x85b   :  { %5667 = vmatprep.subr.bf16.mxu1 %v7478_v26  ;;  %5693 = vmatprep.subr.bf16.mxu0 %v7452_v11 }
 0x85e   :  { %5669 = vmatpush1.bf16.msra.mxu1 %v7479_v24  ;;  %5695 = vmatpush3.bf16.msra.mxu0 %v7632_v15 }
 0x85f   :  { %5671 = vmatprep.subr.bf16.mxu1 %v7481_v53  ;;  %5696 = vmatprep.subr.bf16.mxu0 %v7452_v11 }
 0x860   :  { %v5853_v0 = vpop.eup %5852 }
 0x861   :  { %v3438_v55 = vmul.f32 0.5, %v5853_v0  ;;  %v5855_v24 = vpop.eup %5854 }
 0x862   :  { %v3410_v44 = vpop.f32.mrb[36].mxu0  ;;  %5673 = vmatpush1.bf16.msra.mxu1 %v6332_v5  ;;  %5698 = vmatpush3.bf16.msra.mxu0 %v7635_v47  ;;  %v3443_v5 = vmul.f32 0.5, %v5855_v24  ;;  %v3773_v24 = vstv %s7209_s9 }
 0x863   :  { %v3439_v2 = vadd.f32 0.5, %v3438_v55  ;;  %v3445_v12 = vadd.f32 %v6909_v40, %v3410_v44  ;;  %v4319_v7 = vpop.f32.mrb[37].mxu0  ;;  %5675 = vmatprep.subr.bf16.mxu1 %v6338_v58  ;;  %5699 = vmatprep.subr.bf16.mxu0 %v7452_v11 }
 0x864   :  { %v3444_v46 = vadd.f32 0.5, %v3443_v5 }
 0x865   :  { %v3446_v26 = vmul.f32 %v3445_v12, %v3439_v2 }
 0x866   :  { %5677 = vmatpush1.bf16.msra.mxu1 %v6344_v20  ;;  %5701 = vmatpush3.bf16.msra.mxu0 %v7638_v32  ;;  %v3449_v43 = vsub.f32 1.0, %v3444_v46  ;;  %v3451_v58 = vmul.f32 %v3444_v46, %v7035_v25  ;;  %v3756_v20 = vld [vmem:[%s7208_s8] sm:$0xff]  ;;  %v3757_v32 = vld [vmem:[%s7208_s8 + $0x8] sm:$0xff]  ;;  %v3758_v25 = vld [vmem:[%s7208_s8 + $0x10] sm:$0xff] }
 0x867   :  { %v3447_v53 = vadd.f32 %v3446_v26, %v3434_v56  ;;  %5702 = vmatprep.subr.bf16.mxu1 %v7452_v11  ;;  %v5703_v51 = vpack.c.bf16 %v3757_v32, %v3756_v20 }
 0x869   :  { %5856 = vtanh.f32 %v3447_v53 }
 0x873   :  { %v5857_v15 = vpop.eup %5856 }
 0x874   :  { %v3450_v47 = vmul.f32 %v5857_v15, %v3449_v43 }
 0x876   :  { %v7128_v38 = vadd.f32 %v3451_v58, %v3450_v47 }
 0x878   :  { %3659 = vmatmul.mubr.f32.vlgmr.msra.gmra.mrb[46].mxu1 %v7128_v38  ;;  %4353 = vmatmul.mubr.f32.vlgmr.msra.gmra.mrb[40].mxu0 %v7128_v38 }
 0x879   :  { %4387 = vmatprep.mubr.msk.f32.mxu1 %vm5946_vm0, %v7409_v13  ;;  %5704 = vmatpush3.bf16.msra.mxu1 %v5703_v51  ;;  %v3759_v13 = vld [vmem:[%s7208_s8 + $0x18] sm:$0xff] }
 0x87a   :  { %5705 = vmatprep.subr.bf16.mxu1 %v7452_v11  ;;  %v5706_v36 = vpack.c.bf16 %v3759_v13, %v3758_v25 }
 0x87d   :  { %5707 = vmatpush3.bf16.msra.mxu1 %v5706_v36 }
 0x87e   :  { %5708 = vmatprep.subr.bf16.mxu1 %v7452_v11 }
 0x881   :  { %5710 = vmatpush3.bf16.msra.mxu1 %v5709_v48 }
 0x882   :  { %5711 = vmatprep.subr.bf16.mxu1 %v7452_v11 }
 0x885   :  { %5713 = vmatpush3.bf16.msra.mxu1 %v5712_v10 }
 0x886   :  { %5714 = vmatprep.subr.bf16.mxu1 %v7452_v11 }
 0x889   :  { %5716 = vmatpush3.bf16.msra.mxu1 %v5715_v54 }
 0x88a   :  { %5717 = vmatprep.subr.bf16.mxu1 %v7452_v11 }
 0x88d   :  { %5719 = vmatpush3.bf16.msra.mxu1 %v5718_v4 }
 0x88e   :  { %5720 = vmatprep.subr.bf16.mxu1 %v7452_v11 }
 0x891   :  { %5722 = vmatpush3.bf16.msra.mxu1 %v5721_v23 }
 0x892   :  { %5723 = vmatprep.subr.bf16.mxu1 %v7452_v11 }
 0x895   :  { %5725 = vmatpush3.bf16.msra.mxu1 %v5724_v30 }
 0x91c   :  { %v3519_v22 = vpop.f32.mrb[44].mxu1  ;;  %v3589_v18 = vpop.f32.mrb[38].mxu0 }
 0x91d   :  { %v3520_v39 = vpop.f32.mrb[45].mxu1  ;;  %v3591_v57 = vpop.f32.mrb[39].mxu0  ;;  %v3736_v33 = vadd.f32 %v3589_v18, %v7473_v3 }
 0x91e   :  { %v3735_v27 = vadd.f32 %v3520_v39, %v7472_v17  ;;  %v3737_v62 = vadd.f32 %v3591_v57, %v6478_v41 }
 0x94b   :  { %v3660_v19 = vpop.f32.mrb[46].mxu1  ;;  %v3731_v11 = vpop.f32.mrb[40].mxu0 }
 0x94c   :  { %v3738_v45 = vadd.f32 %v3735_v27, %v3660_v19  ;;  %v3662_v52 = vpop.f32.mrb[47].mxu1  ;;  %v4354_v37 = vpop.f32.mrb[41].mxu0  ;;  %v3748_v42 = vadd.f32 %v6909_v40, %v3731_v11 }
 0x94d   :  { %v3743_v21 = vadd.f32 %v3736_v33, %v3662_v52 }
 0x94e   :  { %v3739_v9 = vmul.f32 0.5, %v3738_v45 }
 0x94f   :  { %v3744_v59 = vmul.f32 0.5, %v3743_v21 }
 0x950   :  { %5858 = vtanh.f32 %v3739_v9 }
 0x951   :  { %5860 = vtanh.f32 %v3744_v59 }
 0x95a   :  { %v5859_v49 = vpop.eup %5858 }
 0x95b   :  { %v3741_v50 = vmul.f32 0.5, %v5859_v49  ;;  %v5861_v0 = vpop.eup %5860 }
 0x95c   :  { %v3746_v55 = vmul.f32 0.5, %v5861_v0 }
 0x95d   :  { %v3742_v1 = vadd.f32 0.5, %v3741_v50 }
 0x95e   :  { %v3747_v44 = vadd.f32 0.5, %v3746_v55 }
 0x95f   :  { %v3749_v17 = vmul.f32 %v3748_v42, %v3742_v1 }
 0x960   :  { %v3752_v2 = vsub.f32 1.0, %v3747_v44  ;;  %v3754_v56 = vmul.f32 %v3747_v44, %v7128_v38 }
 0x961   :  { %v3750_v3 = vadd.f32 %v3749_v17, %v3737_v62 }
 0x963   :  { %5862 = vtanh.f32 %v3750_v3 }
 0x96d   :  { %v5863_v12 = vpop.eup %5862 }
 0x96e   :  { %v3753_v7 = vmul.f32 %v5863_v12, %v3752_v2 }
 0x970   :  { %v3755_v26 = vadd.f32 %v3754_v56, %v3753_v7 }
 0x972   :  { %4388 = vmatmul.mubr.f32.vlgmr.msra.gmra.mrb[48].mxu1 %v3755_v26 }
 0xa45   :  { %v3840_v40 = vpop.f32.mrb[48].mxu1 }
 0xa46   :  { %v3841_v41 = vadd.f32 %v3840_v40, %v3773_v24  ;;  %v4389_v53 = vpop.f32.mrb[49].mxu1 }
 0xa48   :  { %3845 = vst.msk [vmem:[%s7210_s10] sm:$0xff] %vm3844_vm1, %v3841_v41 }
 0xa49   :  { %3850 = vsyncpa [#allocation4], 1 }
 0xa4a   :  { %3851 = vsyncpa [#allocation6], 1 }

</bundles_post_ra>
